<compile_context>
chip_gen: v5e
topology: v5e:2x2
jax: 0.10.0
libtpu: 0.0.40
codegen_flags: <defaults>
</compile_context>

<pallas_src>
import numpy as np
import jax
import jax.numpy as jnp
from jax import lax
from jax.experimental import pallas as pl
from jax.experimental.pallas import tpu as pltpu

NUM_PARTS = 6
FEAT_DIM = 128
BACKBONE_C = 2048
NUM_CLASSES = 16
BN_EPS = 1e-5
PARTS_PER_STEP = 6            # block of the part axis handled per grid step

_LAYER_CFG = ((64, 3, 1), (128, 4, 2), (256, 6, 2), (512, 3, 2))  # ResNet-50


# -----------------------------------------------------------------------------
# Plain-JAX ResNet-50 backbone (conv1 + layer1..layer4; bn1/relu/maxpool are
# skipped exactly like the reference forward()'s name checks).  Weights are
# synthetic + deterministic; BatchNorm2d in eval mode with (gamma=1, beta=0,
# running stats 0/1) is folded away (identity).
# TODO(synk): the torchvision-pretrained convolutional backbone stays in plain
# JAX (lax.conv); only the module's own head is implemented as a Pallas kernel.
# -----------------------------------------------------------------------------
def _conv_w(key, cout, cin, kh, kw, gain=1.0):
    fan_in = cin * kh * kw
    std = gain * np.sqrt(2.0 / fan_in)
    return (std * jax.random.normal(key, (cout, cin, kh, kw))).astype(jnp.float32)


def _conv2d(x, w, stride=1, padding=0):
    return lax.conv_general_dilated(
        x, w, window_strides=(stride, stride),
        padding=[(padding, padding), (padding, padding)],
        dimension_numbers=("NCHW", "OIHW", "NCHW"))


def make_backbone_params(key):
    keys = iter(jax.random.split(key, 64))
    params = {"conv1": _conv_w(next(keys), 64, 3, 7, 7)}
    inplanes = 64
    layers = []
    for planes, nblocks, _stride in _LAYER_CFG:
        blocks = []
        for b in range(nblocks):
            blk = {
                "w1": _conv_w(next(keys), planes, inplanes, 1, 1),
                "w2": _conv_w(next(keys), planes, planes, 3, 3),
                # damp the residual branch so magnitudes stay O(1) without BN
                "w3": _conv_w(next(keys), 4 * planes, planes, 1, 1, gain=0.2),
            }
            if b == 0:
                blk["wd"] = _conv_w(next(keys), 4 * planes, inplanes, 1, 1)
            blocks.append(blk)
            inplanes = 4 * planes
        layers.append(blocks)
    params["layers"] = layers
    return params


def backbone_forward(params, x):
    # conv1 only (bn1 / relu / maxpool are not applied by the original forward)
    x = _conv2d(x, params["conv1"], stride=2, padding=3)
    for (planes, nblocks, stride), blocks in zip(_LAYER_CFG, params["layers"]):
        for b, blk in enumerate(blocks):
            s = stride if b == 0 else 1
            identity = x
            out = jax.nn.relu(_conv2d(x, blk["w1"]))
            out = jax.nn.relu(_conv2d(out, blk["w2"], stride=s, padding=1))
            out = _conv2d(out, blk["w3"])
            if "wd" in blk:
                identity = _conv2d(x, blk["wd"], stride=s)
            x = jax.nn.relu(out + identity)
    return x  # (B, 2048, H/16, W/16)


# -----------------------------------------------------------------------------
# Head parameters (12 part-heads: rgb p1..p6, th p1..p6) + classifier_all.
# -----------------------------------------------------------------------------
def make_head_params(key, num_classes=NUM_CLASSES):
    n = 2 * NUM_PARTS
    C, F = BACKBONE_C, FEAT_DIM
    ks = jax.random.split(key, 10)
    p = {}
    p["wfc"] = (jax.random.normal(ks[0], (n, C, F)) / np.sqrt(C)).astype(jnp.float32)
    p["bfc"] = (0.01 * jax.random.normal(ks[1], (n, 1, F))).astype(jnp.float32)
    p["gamma"] = (1.0 + 0.1 * jax.random.normal(ks[2], (n, 1, F))).astype(jnp.float32)
    p["beta"] = (0.1 * jax.random.normal(ks[3], (n, 1, F))).astype(jnp.float32)
    p["rmean"] = (0.1 * jax.random.normal(ks[4], (n, 1, F))).astype(jnp.float32)
    p["rvar"] = (1.0 + 0.1 * jax.random.uniform(ks[5], (n, 1, F))).astype(jnp.float32)
    p["wcls"] = (jax.random.normal(ks[6], (n, F, num_classes)) / np.sqrt(F)).astype(jnp.float32)
    p["bcls"] = (0.01 * jax.random.normal(ks[7], (n, 1, num_classes))).astype(jnp.float32)
    # classifier_all weight (1536 x num_classes) stored as 12 chunks of (128, nc)
    p["wall"] = (jax.random.normal(ks[8], (n, F, num_classes)) / np.sqrt(n * F)).astype(jnp.float32)
    p["ball"] = (0.01 * jax.random.normal(ks[9], (1, num_classes))).astype(jnp.float32)
    return p


# -----------------------------------------------------------------------------
# Pallas head kernel.  Grid axis i = block of PARTS_PER_STEP parts ("parallel",
# no carried state).  Per step:
#   h     = pooled @ Wfc                (bf16 MXU operands, f32 accumulation)
#   feat  = ReLU(h * scale + shift)     (BN_eval with fc bias folded into shift)
#   z     = feat @ [Wcls | Wall]        (fused classifier matmul, width 2*nc)
#   out   = lane-dense slab (B, NB*2*nc) holding every part's z side by side.
# Bias adds / splitting / the classifier_all reduction happen in the wrapper.
# -----------------------------------------------------------------------------
def _head_kernel(pooled_ref, wfc_ref, ss_ref, wcat_ref, z_ref):
    pooled = pooled_ref[...]                              # (NB, B, C) f32

    # Linear(2048->128): bf16 operands into the MXU, f32 accumulation.
    h = jnp.einsum("nbc,ncf->nbf",
                   pooled.astype(jnp.bfloat16), wfc_ref[...],
                   preferred_element_type=jnp.float32)    # (NB, B, F)

    scale = ss_ref[:, 0:1, :]                             # (NB, 1, F)
    shift = ss_ref[:, 1:2, :]                             # (NB, 1, F) (bfc folded)
    feat = jnp.maximum(h * scale + shift, 0.0)            # BN1d(eval)+ReLU, f32

    # Fused per-part classifier + classifier_all chunk: (NB, B, 2*nc), f32.
    z = jnp.einsum("nbf,nfk->nbk", feat, wcat_ref[...],
                   preferred_element_type=jnp.float32)

    nb = z.shape[0]
    # Lane-dense output: pack all NB parts side by side along lanes -> (B, NB*2*nc).
    z_ref[0] = jnp.concatenate([z[p] for p in range(nb)], axis=-1)


def run_head(pooled, hp, num_classes=NUM_CLASSES, parts_per_step=PARTS_PER_STEP):
    n, B, C = pooled.shape
    F = FEAT_DIM
    nc = num_classes
    K = 2 * nc
    assert n % parts_per_step == 0
    nsteps = n // parts_per_step
    NB = parts_per_step

    # Glue (plain JAX, tiny): fold eval-mode BatchNorm1d + fc bias into one
    # scale/shift pair packed into a single (n,2,F) side input, fuse wcls||wall,
    # and cast the big fc weight to bf16 (DMA-bytes halved).
    scale = hp["gamma"] / jnp.sqrt(hp["rvar"] + BN_EPS)          # (n,1,F)
    shift = hp["beta"] + (hp["bfc"] - hp["rmean"]) * scale       # (n,1,F)
    ss = jnp.concatenate([scale, shift], axis=1)                 # (n,2,F)
    wfc_bf16 = hp["wfc"].astype(jnp.bfloat16)                    # (n,C,F) bf16
    wcat = jnp.concatenate([hp["wcls"], hp["wall"]], axis=-1)    # (n,F,K)

    z_slab = pl.pallas_call(
        _head_kernel,
        out_shape=jax.ShapeDtypeStruct((nsteps, B, NB * K), jnp.float32),
        grid=(nsteps,),
        in_specs=[
            pl.BlockSpec((NB, B, C), lambda i: (i, 0, 0)),        # pooled
            pl.BlockSpec((NB, C, F), lambda i: (i, 0, 0)),        # wfc (bf16)
            pl.BlockSpec((NB, 2, F), lambda i: (i, 0, 0)),        # scale/shift
            pl.BlockSpec((NB, F, K), lambda i: (i, 0, 0)),        # wcls||wall
        ],
        out_specs=pl.BlockSpec((1, B, NB * K), lambda i: (i, 0, 0)),
        compiler_params=pltpu.CompilerParams(
            dimension_semantics=("parallel",)),                   # 2 TCs on v7x
    )(pooled, wfc_bf16, ss, wcat)

    # Wrapper glue (tiny; fused by XLA): split the slab back into per-part
    # logits and the classifier_all partial sums, add biases, reduce over parts.
    z = z_slab.reshape(nsteps, B, NB, K)
    z = jnp.transpose(z, (0, 2, 1, 3)).reshape(n, B, K)
    logits = z[..., :nc] + hp["bcls"]                             # (n, B, nc)
    final = jnp.sum(z[..., nc:], axis=0) + hp["ball"]             # (B, nc)
    return logits, final


def split_and_pool(f):
    """(B, C, H, W) -> (6, B, C): torch.chunk(6, dim=2) + AdaptiveAvgPool2d(1).

    Done in the wrapper so XLA fuses the mean into the backbone output and the
    Pallas kernel never sees the padded (S=2) spatial axis.
    """
    B, C, H, W = f.shape
    assert H % NUM_PARTS == 0
    hp_ = H // NUM_PARTS
    f = f.reshape(B, C, NUM_PARTS, hp_ * W)
    pooled = jnp.mean(f, axis=3)                   # (B, C, 6)
    return jnp.transpose(pooled, (2, 0, 1))        # (6, B, C)


def resnet2modal_part6_forward(backbone1, backbone2, head, x1, x2):
    f1 = backbone_forward(backbone1, x1)           # (B, 2048, 6, 2)
    f2 = backbone_forward(backbone2, x2)
    pooled = jnp.concatenate([split_and_pool(f1), split_and_pool(f2)], axis=0)  # (12,B,C)
    logits, final = run_head(pooled, head)
    # Return order matches the PyTorch module: (final, rgb_p1..p6, th_p1..p6)
    outs = (final,) + tuple(logits[i] for i in range(2 * NUM_PARTS))
    return outs, pooled


if __name__ == "__main__":
    key = jax.random.PRNGKey(0)
    k_b1, k_b2, k_head, k_x1, k_x2 = jax.random.split(key, 5)
    backbone1 = make_backbone_params(k_b1)
    backbone2 = make_backbone_params(k_b2)
    head = make_head_params(k_head)

    # Small image inputs: (B=2, C=3, H=96, W=32) -> backbone features (2,2048,6,2)
    x1 = jax.random.normal(k_x1, (2, 3, 96, 32), jnp.float32)
    x2 = jax.random.normal(k_x2, (2, 3, 96, 32), jnp.float32)

    fwd = jax.jit(resnet2modal_part6_forward)
    outs, pooled = fwd(backbone1, backbone2, head, x1, x2)
    jax.block_until_ready(outs)

    # Pure-JAX reference for the Pallas head (correctness check).  Uses the same
    # bf16-rounded wfc / pooled operands as the kernel so the comparison is
    # apples-to-apples; everything else is f32.
    scale = head["gamma"] / jnp.sqrt(head["rvar"] + BN_EPS)
    shift = head["beta"] - head["rmean"] * scale
    h = jnp.einsum("nbc,ncf->nbf",
                   pooled.astype(jnp.bfloat16),
                   head["wfc"].astype(jnp.bfloat16),
                   preferred_element_type=jnp.float32) + head["bfc"]
    feat_ref = jnp.maximum(h * scale + shift, 0.0)
    logits_ref = jnp.einsum("nbf,nfk->nbk", feat_ref, head["wcls"]) + head["bcls"]
    final_ref = jnp.einsum("nbf,nfk->bk", feat_ref, head["wall"]) + head["ball"]

    np.testing.assert_allclose(np.asarray(outs[0]), np.asarray(final_ref), rtol=1e-2, atol=1e-2)
    for i in range(2 * NUM_PARTS):
        np.testing.assert_allclose(np.asarray(outs[1 + i]), np.asarray(logits_ref[i]),
                                   rtol=1e-2, atol=1e-2)
    print("KERNEL_OK")
</pallas_src>

<mosaic_0001>
module attributes {stable_mosaic.version = 11 : i64} {
  func.func @_head_kernel(%arg0: i32, %arg1: memref<6x2x2048xf32, #tpu.memory_space<vmem>>, %arg2: memref<6x2048x128xbf16, #tpu.memory_space<vmem>>, %arg3: memref<6x2x128xf32, #tpu.memory_space<vmem>>, %arg4: memref<6x128x32xf32, #tpu.memory_space<vmem>>, %arg5: memref<1x2x192xf32, #tpu.memory_space<vmem>>) attributes {dimension_semantics = [#tpu.dimension_semantics<parallel>], iteration_bounds = array<i64: 2>, scalar_prefetch = 0 : i64, scratch_operands = 0 : i64, tpu.core_type = #tpu.core_type<tc>, window_params = [{transform_indices = @transform_0, window_bounds = array<i64: 6, 2, 2048>}, {transform_indices = @transform_1, window_bounds = array<i64: 6, 2048, 128>}, {transform_indices = @transform_2, window_bounds = array<i64: 6, 2, 128>}, {transform_indices = @transform_3, window_bounds = array<i64: 6, 128, 32>}, {transform_indices = @transform_4, window_bounds = array<i64: 1, 2, 192>}]} {
    %c0 = arith.constant 0 : index
    %c0_0 = arith.constant 0 : index
    %c0_1 = arith.constant 0 : index
    %0 = vector.load %arg1[%c0, %c0_0, %c0_1] : memref<6x2x2048xf32, #tpu.memory_space<vmem>>, vector<6x2x2048xf32>
    %1 = arith.truncf %0 : vector<6x2x2048xf32> to vector<6x2x2048xbf16>
    %c0_2 = arith.constant 0 : index
    %c0_3 = arith.constant 0 : index
    %c0_4 = arith.constant 0 : index
    %2 = vector.load %arg2[%c0_2, %c0_3, %c0_4] : memref<6x2048x128xbf16, #tpu.memory_space<vmem>>, vector<6x2048x128xbf16>
    "tpu.trace_start"() <{level = 10 : i32, message = "nbc,ncf->nbf"}> : () -> ()
    %cst = arith.constant dense<0.000000e+00> : vector<6x2x128xf32>
    %3 = tpu.matmul %1, %2, %cst {dimension_numbers = #tpu.dot_dimension_numbers<[2], [1], [1], [2], [0, 0, 0, 1, 1, 2], [0], [0]>} : vector<6x2x2048xbf16>, vector<6x2048x128xbf16>, vector<6x2x128xf32> -> vector<6x2x128xf32>
    "tpu.trace_stop"() : () -> ()
    %c0_5 = arith.constant 0 : index
    %c0_6 = arith.constant 0 : index
    %c0_7 = arith.constant 0 : index
    %4 = vector.load %arg3[%c0_5, %c0_6, %c0_7] : memref<6x2x128xf32, #tpu.memory_space<vmem>>, vector<6x1x128xf32>
    %c0_8 = arith.constant 0 : index
    %c1 = arith.constant 1 : index
    %c0_9 = arith.constant 0 : index
    %5 = vector.load %arg3[%c0_8, %c1, %c0_9] : memref<6x2x128xf32, #tpu.memory_space<vmem>>, vector<6x1x128xf32>
    %6 = vector.broadcast %4 : vector<6x1x128xf32> to vector<6x2x128xf32>
    %7 = arith.mulf %3, %6 : vector<6x2x128xf32>
    %8 = vector.broadcast %5 : vector<6x1x128xf32> to vector<6x2x128xf32>
    %9 = arith.addf %7, %8 : vector<6x2x128xf32>
    %cst_10 = arith.constant 0.000000e+00 : f32
    %10 = vector.broadcast %cst_10 : f32 to vector<6x2x128xf32>
    %11 = arith.maximumf %9, %10 : vector<6x2x128xf32>
    %c0_11 = arith.constant 0 : index
    %c0_12 = arith.constant 0 : index
    %c0_13 = arith.constant 0 : index
    %12 = vector.load %arg4[%c0_11, %c0_12, %c0_13] : memref<6x128x32xf32, #tpu.memory_space<vmem>>, vector<6x128x32xf32>
    "tpu.trace_start"() <{level = 10 : i32, message = "nbf,nfk->nbk"}> : () -> ()
    %cst_14 = arith.constant dense<0.000000e+00> : vector<6x2x32xf32>
    %13 = tpu.matmul %11, %12, %cst_14 {dimension_numbers = #tpu.dot_dimension_numbers<[2], [1], [1], [2], [0, 0, 0, 1, 1, 2], [0], [0]>} : vector<6x2x128xf32>, vector<6x128x32xf32>, vector<6x2x32xf32> -> vector<6x2x32xf32>
    "tpu.trace_stop"() : () -> ()
    %14 = vector.extract_strided_slice %13 {offsets = [0, 0, 0], sizes = [1, 2, 32], strides = [1, 1, 1]} : vector<6x2x32xf32> to vector<1x2x32xf32>
    %15 = vector.shape_cast %14 : vector<1x2x32xf32> to vector<2x32xf32>
    %16 = vector.extract_strided_slice %13 {offsets = [1, 0, 0], sizes = [1, 2, 32], strides = [1, 1, 1]} : vector<6x2x32xf32> to vector<1x2x32xf32>
    %17 = vector.shape_cast %16 : vector<1x2x32xf32> to vector<2x32xf32>
    %18 = vector.extract_strided_slice %13 {offsets = [2, 0, 0], sizes = [1, 2, 32], strides = [1, 1, 1]} : vector<6x2x32xf32> to vector<1x2x32xf32>
    %19 = vector.shape_cast %18 : vector<1x2x32xf32> to vector<2x32xf32>
    %20 = vector.extract_strided_slice %13 {offsets = [3, 0, 0], sizes = [1, 2, 32], strides = [1, 1, 1]} : vector<6x2x32xf32> to vector<1x2x32xf32>
    %21 = vector.shape_cast %20 : vector<1x2x32xf32> to vector<2x32xf32>
    %22 = vector.extract_strided_slice %13 {offsets = [4, 0, 0], sizes = [1, 2, 32], strides = [1, 1, 1]} : vector<6x2x32xf32> to vector<1x2x32xf32>
    %23 = vector.shape_cast %22 : vector<1x2x32xf32> to vector<2x32xf32>
    %24 = vector.extract_strided_slice %13 {offsets = [5, 0, 0], sizes = [1, 2, 32], strides = [1, 1, 1]} : vector<6x2x32xf32> to vector<1x2x32xf32>
    %25 = vector.shape_cast %24 : vector<1x2x32xf32> to vector<2x32xf32>
    %26 = tpu.concatenate %15, %17, %19, %21, %23, %25 in 1 : vector<2x32xf32>, vector<2x32xf32>, vector<2x32xf32>, vector<2x32xf32>, vector<2x32xf32>, vector<2x32xf32> -> vector<2x192xf32>
    %c0_15 = arith.constant 0 : index
    %c0_16 = arith.constant 0 : index
    %c0_17 = arith.constant 0 : index
    %27 = vector.load %arg5[%c0_15, %c0_16, %c0_17] : memref<1x2x192xf32, #tpu.memory_space<vmem>>, vector<1x2x192xf32>
    %28 = vector.shape_cast %27 : vector<1x2x192xf32> to vector<2x192xf32>
    %29 = vector.shape_cast %26 : vector<2x192xf32> to vector<1x2x192xf32>
    tpu.vector_store %arg5[%c0_15, %c0_16, %c0_17], %29 {strides = array<i32>} : memref<1x2x192xf32, #tpu.memory_space<vmem>>, vector<1x2x192xf32>,
    return
  }
  func.func @transform_0(%arg0: i32) -> (i32, i32, i32) {
    %c0_i32 = arith.constant 0 : i32
    %c0_i32_0 = arith.constant 0 : i32
    %c0_i32_1 = arith.constant 0 : i32
    return %arg0, %c0_i32, %c0_i32_0 : i32, i32, i32
  }
  func.func @transform_1(%arg0: i32) -> (i32, i32, i32) {
    %c0_i32 = arith.constant 0 : i32
    %c0_i32_0 = arith.constant 0 : i32
    %c0_i32_1 = arith.constant 0 : i32
    return %arg0, %c0_i32, %c0_i32_0 : i32, i32, i32
  }
  func.func @transform_2(%arg0: i32) -> (i32, i32, i32) {
    %c0_i32 = arith.constant 0 : i32
    %c0_i32_0 = arith.constant 0 : i32
    %c0_i32_1 = arith.constant 0 : i32
    return %arg0, %c0_i32, %c0_i32_0 : i32, i32, i32
  }
  func.func @transform_3(%arg0: i32) -> (i32, i32, i32) {
    %c0_i32 = arith.constant 0 : i32
    %c0_i32_0 = arith.constant 0 : i32
    %c0_i32_1 = arith.constant 0 : i32
    return %arg0, %c0_i32, %c0_i32_0 : i32, i32, i32
  }
  func.func @transform_4(%arg0: i32) -> (i32, i32, i32) {
    %c0_i32 = arith.constant 0 : i32
    %c0_i32_0 = arith.constant 0 : i32
    %c0_i32_1 = arith.constant 0 : i32
    return %arg0, %c0_i32, %c0_i32_0 : i32, i32, i32
  }
}

</mosaic_0001>

<bundles_post_ra>
// kernel: resnet2modal_part6_forward.1
= control target key start
LH: loop header
LB: loop body
LE: loop exit
PB: predicated region body
PF: predicated region fallthrough
CT: control target
= control target key end

     0   :  { %s12616_s15 = smov 0   ;;  %s13654_s0 = inlined_call_operand.vmem [shape: f32[12,2,2048], index: 0, kind: input, shape index: {}]   ;;  %s13655_s1 = inlined_call_operand.vmem [shape: bf16[12,2048,128], index: 1, kind: input, shape index: {}]   ;;  %s13656_s2 = inlined_call_operand.vmem [shape: f32[12,2,128], index: 2, kind: input, shape index: {}]   ;;  %s13657_s3 = inlined_call_operand.vmem [shape: f32[12,128,32], index: 3, kind: input, shape index: {}]   ;;  %s13658_s4 = inlined_call_operand.vmem [shape: f32[2,2,192], index: 4, kind: output, shape index: {}]  }
   0x1 LB: > { %s12622_s16 = sadd.s32 4294967295, %s12586_s15   ;;  %p8701_p0 = scmp.ge.s32.totalorder %s12586_s15, 1  ;;  %s12586_s15 = sphi %s12616_s15, %s14_s15  }
   0x2   : > { %p199_p1 = scmp.lt.s32.totalorder %s12586_s15, 3 }
   0x4   : > { %p200_p2 = pnand %p8701_p0, %p199_p1 }
   0x5   : > { %s243_s17 = smul.u32 (!%p200_p2), 6, %s12622_s16  ;;  %s12588_s8 = smov (!%p200_p2), 32  }
   0x6   : > { %203 = sbr.rel (%p200_p2) target bundleno = 1172 (0x494), region = 36  ;;  %s12589_s9 = smov (!%p200_p2), 64  }
   0x7   : > { %p244_p3 = scmp.lt.s32.totalorder (!%p200_p2), %s243_s17, 11  ;;  %s12590_s10 = smov (!%p200_p2), 96  }
   0x8   : > { %p270_p4 = scmp.lt.s32.totalorder (!%p200_p2), %s12622_s16, 1 }
   0xb   : > { %s13660_s17 = smov (!%p244_p3, %s243_s17), 11  ;;  %s13662_s16 = smov (!%p270_p4, %s12622_s16), 1  ;;  %vm8590_vm0 = vcmask 261120   ;;  %vm8592_vm1 = vcmask 523264   ;;  %vm8600_vm2 = vcmask 1041408   ;;  %vm8603_vm3 = vcmask 519170  }
   0xc   : > { %s11786_s18 = sshll.u32 %s13660_s17, 10  ;;  %s11785_s22 = sshll.u32 %s13660_s17, 5  ;;  %vm8594_vm4 = vcmask 785408   ;;  %vm8604_vm5 = vmor %vm8603_vm3, %vm8600_vm2 }
   0xd   : > { %s12633_s21 = scalar_lea.vmem %s13655_s1, %s11786_s18  ;;  %s12657_s25 = scalar_lea.vmem %s13654_s0, %s11785_s22 }
   0xe   : > { %v11796_v0 = vld [vmem:[%s12633_s21 + $0x38] sm:$0xff]  ;;  %v11795_v4 = vld [vmem:[%s12633_s21 + $0x30] sm:$0xff]  ;;  %v11794_v8 = vld [vmem:[%s12633_s21 + $0x28] sm:$0xff]  ;;  %s8706_s26 = sshll.u32 %s13660_s17, 1  ;;  %s11787_s30 = sshll.u32 %s13660_s17, 7 }
   0xf   : > { %v11804_v1 = vld [vmem:[%s12633_s21 + $0x78] sm:$0xff]  ;;  %2948 = vmatpush.bf16.msra.mxu0 %v11796_v0  ;;  %v11803_v5 = vld [vmem:[%s12633_s21 + $0x70] sm:$0xff]  ;;  %v11802_v9 = vld [vmem:[%s12633_s21 + $0x68] sm:$0xff]  ;;  %s12794_s29 = scalar_lea.vmem %s13656_s2, %s8706_s26  ;;  %s13517_s7 = scalar_lea.vmem %s13657_s3, %s11787_s30 }
  0x10   : > { %v11812_v2 = vld [vmem:[%s12633_s21 + $0xb8] sm:$0xff]  ;;  %2961 = vmatpush.bf16.msra.mxu1 %v11804_v1  ;;  %v11811_v6 = vld [vmem:[%s12633_s21 + $0xb0] sm:$0xff]  ;;  %v11810_v10 = vld [vmem:[%s12633_s21 + $0xa8] sm:$0xff]  ;;  %s11788_s11 = sshll.u32 %s13662_s16, 2 }
  0x11   : > { %v11820_v3 = vld [vmem:[%s12633_s21 + $0xf8] sm:$0xff]  ;;  %2974 = vmatpush.bf16.msra.mxu2 %v11812_v2  ;;  %v11819_v7 = vld [vmem:[%s12633_s21 + $0xf0] sm:$0xff]  ;;  %v11818_v11 = vld [vmem:[%s12633_s21 + $0xe8] sm:$0xff]  ;;  %s274_s14 = scalar_lea.vmem %s13658_s4, %s11788_s11 }
  0x12   : > { %2987 = vmatpush.bf16.msra.mxu3 %v11820_v3  ;;  %v11793_v12 = vld [vmem:[%s12633_s21 + $0x20] sm:$0xff]  ;;  %v11792_v16 = vld [vmem:[%s12633_s21 + $0x18] sm:$0xff]  ;;  %v11791_v21 = vld [vmem:[%s12633_s21 + $0x10] sm:$0xff] }
  0x13   : > { %2949 = vmatpush.bf16.msra.mxu0 %v11795_v4  ;;  %v11801_v13 = vld [vmem:[%s12633_s21 + $0x60] sm:$0xff]  ;;  %v11800_v17 = vld [vmem:[%s12633_s21 + $0x58] sm:$0xff]  ;;  %v11799_v22 = vld [vmem:[%s12633_s21 + $0x50] sm:$0xff] }
  0x14   : > { %2962 = vmatpush.bf16.msra.mxu1 %v11803_v5  ;;  %v11809_v14 = vld [vmem:[%s12633_s21 + $0xa0] sm:$0xff]  ;;  %v11808_v18 = vld [vmem:[%s12633_s21 + $0x98] sm:$0xff]  ;;  %v11807_v23 = vld [vmem:[%s12633_s21 + $0x90] sm:$0xff] }
  0x15   : > { %2975 = vmatpush.bf16.msra.mxu2 %v11811_v6  ;;  %v11817_v15 = vld [vmem:[%s12633_s21 + $0xe0] sm:$0xff]  ;;  %v11816_v19 = vld [vmem:[%s12633_s21 + $0xd8] sm:$0xff]  ;;  %v11815_v24 = vld [vmem:[%s12633_s21 + $0xd0] sm:$0xff] }
  0x16   : > { %2988 = vmatpush.bf16.msra.mxu3 %v11819_v7  ;;  %v275_v20 = vld [vmem:[%s12657_s25] sm:$0xff]  ;;  %v11790_v25 = vld [vmem:[%s12633_s21 + $0x8] sm:$0xff]  ;;  %v11828_v40 = vld [vmem:[%s12633_s21 + $0x138] sm:$0xff] }
  0x17   : > { %2950 = vmatpush.bf16.msra.mxu0 %v11794_v8  ;;  %323 = vst [vmem:[#allocation1] ss:$4 sm:$0xff] %v275_v20  ;;  %v11798_v26 = vld [vmem:[%s12633_s21 + $0x48] sm:$0xff]  ;;  %v11789_v30 = vld [vmem:[%s12633_s21] sm:$0xff]  ;;  %v11836_v41 = vld [vmem:[%s12633_s21 + $0x178] sm:$0xff] }
  0x18   : > { %2963 = vmatpush.bf16.msra.mxu1 %v11802_v9  ;;  %v276_v27 = vld [vmem:[%s12657_s25 + $0x8] sm:$0xff]  ;;  %v11797_v31 = vld [vmem:[%s12633_s21 + $0x40] sm:$0xff]  ;;  %v11844_v44 = vld [vmem:[%s12633_s21 + $0x1b8] sm:$0xff] }
  0x19   : > { %2976 = vmatpush.bf16.msra.mxu2 %v11810_v10  ;;  %v11806_v28 = vld [vmem:[%s12633_s21 + $0x88] sm:$0xff]  ;;  %325 = vst [vmem:[#allocation1 + $0x20] ss:$4 sm:$0xff] %v276_v27  ;;  %v11805_v37 = vld [vmem:[%s12633_s21 + $0x80] sm:$0xff]  ;;  %v11852_v45 = vld [vmem:[%s12633_s21 + $0x1f8] sm:$0xff] }
  0x1a   : > { %2989 = vmatpush.bf16.msra.mxu3 %v11818_v11  ;;  %v11814_v29 = vld [vmem:[%s12633_s21 + $0xc8] sm:$0xff]  ;;  %v11813_v38 = vld [vmem:[%s12633_s21 + $0xc0] sm:$0xff]  ;;  %v11827_v52 = vld [vmem:[%s12633_s21 + $0x130] sm:$0xff] }
  0x1b   : > { %2951 = vmatpush.bf16.msra.mxu0 %v11793_v12  ;;  %v11835_v53 = vld [vmem:[%s12633_s21 + $0x170] sm:$0xff]  ;;  %v11826_v56 = vld [vmem:[%s12633_s21 + $0x128] sm:$0xff]  ;;  %v11825_v60 = vld [vmem:[%s12633_s21 + $0x120] sm:$0xff] }
  0x1c   : > { %2964 = vmatpush.bf16.msra.mxu1 %v11801_v13  ;;  %v11843_v54 = vld [vmem:[%s12633_s21 + $0x1b0] sm:$0xff]  ;;  %v11834_v57 = vld [vmem:[%s12633_s21 + $0x168] sm:$0xff]  ;;  %v11833_v61 = vld [vmem:[%s12633_s21 + $0x160] sm:$0xff] }
  0x1d   : > { %2977 = vmatpush.bf16.msra.mxu2 %v11809_v14  ;;  %v11851_v55 = vld [vmem:[%s12633_s21 + $0x1f0] sm:$0xff]  ;;  %v11842_v58 = vld [vmem:[%s12633_s21 + $0x1a8] sm:$0xff]  ;;  %v11841_v62 = vld [vmem:[%s12633_s21 + $0x1a0] sm:$0xff] }
  0x1e   : > { %2990 = vmatpush.bf16.msra.mxu3 %v11817_v15  ;;  %v328_v32 = vld.sshfl [vmem:[#allocation1 + $0x10] sm:$0xff pattern:$0x73625140]  ;;  %v329_v33 = vld.sshfl [vmem:[#allocation1 + $0x18] sm:$0xff pattern:$0x73625140] }
  0x1f   : > { %2952 = vmatpush.bf16.msra.mxu0 %v11792_v16  ;;  %v541_v34 = vpack.c.bf16 %v329_v33, %v328_v32  ;;  %v326_v35 = vld.sshfl [vmem:[#allocation1] sm:$0xff pattern:$0x73625140]  ;;  %v327_v36 = vld.sshfl [vmem:[#allocation1 + $0x8] sm:$0xff pattern:$0x73625140] }
  0x20   : > { %2965 = vmatpush.bf16.msra.mxu1 %v11800_v17  ;;  %v540_v39 = vpack.c.bf16 %v327_v36, %v326_v35  ;;  %v11850_v59 = vld [vmem:[%s12633_s21 + $0x1e8] sm:$0xff]  ;;  %v11849_v63 = vld [vmem:[%s12633_s21 + $0x1e0] sm:$0xff]  ;;  %v11824_v0 = vld [vmem:[%s12633_s21 + $0x118] sm:$0xff] }
  0x21   : > { %2978 = vmatpush.bf16.msra.mxu2 %v11808_v18  ;;  %v2134_v42 = vunpack.c.l.b16 %v541_v34  ;;  %v2135_v43 = vunpack.c.h.b16 %v541_v34  ;;  %v11832_v1 = vld [vmem:[%s12633_s21 + $0x158] sm:$0xff]  ;;  %v11823_v4 = vld [vmem:[%s12633_s21 + $0x110] sm:$0xff]  ;;  %v330_v9 = vld.sshfl [vmem:[#allocation1 + $0x20] sm:$0xff pattern:$0x73625140] }
  0x22   : > { %2991 = vmatpush.bf16.msra.mxu3 %v11816_v19  ;;  %v2132_v46 = vunpack.c.l.b16 %v540_v39  ;;  %v2133_v47 = vunpack.c.h.b16 %v540_v39  ;;  %v11840_v2 = vld [vmem:[%s12633_s21 + $0x198] sm:$0xff]  ;;  %v11831_v5 = vld [vmem:[%s12633_s21 + $0x150] sm:$0xff]  ;;  %v331_v12 = vld.sshfl [vmem:[#allocation1 + $0x28] sm:$0xff pattern:$0x73625140] }
  0x23   : > { %2953 = vmatpush.bf16.msra.mxu0 %v11791_v21  ;;  %v2150_v48 = vpack.c.b16 %v2134_v42, %v2134_v42  ;;  %v2151_v50 = vpack.c.b16 %v2135_v43, %v2135_v43  ;;  %v11848_v3 = vld [vmem:[%s12633_s21 + $0x1d8] sm:$0xff]  ;;  %v332_v6 = vld.sshfl [vmem:[#allocation1 + $0x30] sm:$0xff pattern:$0x73625140]  ;;  %v11822_v13 = vld [vmem:[%s12633_s21 + $0x108] sm:$0xff]  ;;  %v542_v16 = vpack.c.bf16 %v331_v12, %v330_v9 }
  0x24   : > { %2966 = vmatpush.bf16.msra.mxu1 %v11799_v22  ;;  %v2148_v49 = vpack.c.b16 %v2132_v46, %v2132_v46  ;;  %v2149_v51 = vpack.c.b16 %v2133_v47, %v2133_v47  ;;  %v333_v7 = vld.sshfl [vmem:[#allocation1 + $0x38] sm:$0xff pattern:$0x73625140]  ;;  %v11839_v8 = vld [vmem:[%s12633_s21 + $0x190] sm:$0xff]  ;;  %v11830_v14 = vld [vmem:[%s12633_s21 + $0x148] sm:$0xff] }
  0x25   : > { %2979 = vmatpush.bf16.msra.mxu2 %v11807_v23  ;;  %v277_v10 = vld [vmem:[%s12657_s25 + $0x10] sm:$0xff]  ;;  %v543_v15 = vpack.c.bf16 %v333_v7, %v332_v6  ;;  %v11838_v17 = vld [vmem:[%s12633_s21 + $0x188] sm:$0xff]  ;;  %v11821_v19 = vld [vmem:[%s12633_s21 + $0x100] sm:$0xff]  ;;  %v2136_v22 = vunpack.c.l.b16 %v542_v16 }
  0x26   : > { %2992 = vmatpush.bf16.msra.mxu3 %v11815_v24  ;;  %v11847_v11 = vld [vmem:[%s12633_s21 + $0x1d0] sm:$0xff]  ;;  %334 = vst [vmem:[#allocation1] ss:$4 sm:$0xff] %v277_v10  ;;  %v11846_v18 = vld [vmem:[%s12633_s21 + $0x1c8] sm:$0xff]  ;;  %v11829_v20 = vld [vmem:[%s12633_s21 + $0x140] sm:$0xff] }
  0x27   : > { %2954 = vmatpush.bf16.msra.mxu0 %v11790_v25  ;;  %v2138_v21 = vunpack.c.l.b16 %v543_v15  ;;  %v11837_v23 = vld [vmem:[%s12633_s21 + $0x180] sm:$0xff]  ;;  %v2139_v25 = vunpack.c.h.b16 %v543_v15  ;;  %v11860_v27 = vld [vmem:[%s12633_s21 + $0x238] sm:$0xff]  ;;  %v2152_v32 = vpack.c.b16 %v2136_v22, %v2136_v22  ;;  %v11859_v35 = vld [vmem:[%s12633_s21 + $0x230] sm:$0xff] }
  0x28   : > { %2967 = vmatpush.bf16.msra.mxu1 %v11798_v26  ;;  %v11845_v24 = vld [vmem:[%s12633_s21 + $0x1c0] sm:$0xff]  ;;  %v2137_v26 = vunpack.c.h.b16 %v542_v16  ;;  %v11867_v36 = vld [vmem:[%s12633_s21 + $0x270] sm:$0xff]  ;;  %v11858_v39 = vld [vmem:[%s12633_s21 + $0x228] sm:$0xff] }
  0x29   : > { %2980 = vmatpush.bf16.msra.mxu2 %v11806_v28  ;;  %v11868_v28 = vld [vmem:[%s12633_s21 + $0x278] sm:$0xff]  ;;  %v2155_v33 = vpack.c.b16 %v2139_v25, %v2139_v25  ;;  %v11882_v42 = vld [vmem:[%s12633_s21 + $0x2e8] sm:$0xff]  ;;  %v11857_v43 = vld [vmem:[%s12633_s21 + $0x220] sm:$0xff] }
  0x2a   : > { %2993 = vmatpush.bf16.msra.mxu3 %v11814_v29  ;;  %v11876_v29 = vld [vmem:[%s12633_s21 + $0x2b8] sm:$0xff]  ;;  %v2153_v34 = vpack.c.b16 %v2137_v26, %v2137_v26  ;;  %v11881_v46 = vld [vmem:[%s12633_s21 + $0x2e0] sm:$0xff]  ;;  %v11890_v22 = vld [vmem:[%s12633_s21 + $0x328] sm:$0xff] }
  0x2b   : > { %2955 = vmatpush.bf16.msra.mxu0 %v11789_v30  ;;  %v11884_v30 = vld [vmem:[%s12633_s21 + $0x2f8] sm:$0xff]  ;;  %v11869_v6 = vld [vmem:[%s12633_s21 + $0x280] sm:$0xff]  ;;  %v11914_v25 = vld [vmem:[%s12633_s21 + $0x3e8] sm:$0xff] }
  0x2c   : > { %2968 = vmatpush.bf16.msra.mxu1 %v11797_v31  ;;  %v2154_v31 = vpack.c.b16 %v2138_v21, %v2138_v21  ;;  %v11856_v47 = vld [vmem:[%s12633_s21 + $0x218] sm:$0xff]  ;;  %v11877_v7 = vld [vmem:[%s12633_s21 + $0x2c0] sm:$0xff]  ;;  %v11915_v21 = vld [vmem:[%s12633_s21 + $0x3f0] sm:$0xff] }
  0x2d   : > { %2981 = vmatpush.bf16.msra.mxu2 %v11805_v37  ;;  %v11875_v37 = vld [vmem:[%s12633_s21 + $0x2b0] sm:$0xff]  ;;  %v11892_v10 = vld [vmem:[%s12633_s21 + $0x338] sm:$0xff]  ;;  %v11889_v26 = vld [vmem:[%s12633_s21 + $0x320] sm:$0xff] }
  0x2e   : > { %2994 = vmatpush.bf16.msra.mxu3 %v11813_v38  ;;  %2956 = vmatmul.bf16.vlgmr.msra.gmra.mxu0 %v2148_v49  ;;  %v11883_v38 = vld [vmem:[%s12633_s21 + $0x2f0] sm:$0xff]  ;;  %v11872_v49 = vld [vmem:[%s12633_s21 + $0x298] sm:$0xff] }
  0x2f   : > { %3000 = vmatpush.bf16.msrb.mxu0 %v11828_v40  ;;  %2969 = vmatmul.bf16.vlgmr.msra.gmra.mxu1 %v2149_v51  ;;  %v11866_v40 = vld [vmem:[%s12633_s21 + $0x268] sm:$0xff]  ;;  %v11855_v51 = vld [vmem:[%s12633_s21 + $0x210] sm:$0xff]  ;;  %v11908_v12 = vld [vmem:[%s12633_s21 + $0x3b8] sm:$0xff] }
  0x30   : > { %3013 = vmatpush.bf16.msrb.mxu1 %v11836_v41  ;;  %2982 = vmatmul.bf16.vlgmr.msra.gmra.mxu2 %v2150_v48  ;;  %v11874_v41 = vld [vmem:[%s12633_s21 + $0x2a8] sm:$0xff]  ;;  %v11864_v48 = vld [vmem:[%s12633_s21 + $0x258] sm:$0xff] }
  0x31   : > { %3026 = vmatpush.bf16.msrb.mxu2 %v11844_v44  ;;  %2995 = vmatmul.bf16.vlgmr.msra.gmra.mxu3 %v2151_v50  ;;  %v11865_v44 = vld [vmem:[%s12633_s21 + $0x260] sm:$0xff]  ;;  %v11880_v50 = vld [vmem:[%s12633_s21 + $0x2d8] sm:$0xff] }
  0x32   : > { %3039 = vmatpush.bf16.msrb.mxu3 %v11852_v45  ;;  %v11873_v45 = vld [vmem:[%s12633_s21 + $0x2a0] sm:$0xff] }
  0x33   : > { %3001 = vmatpush.bf16.msrb.mxu0 %v11827_v52  ;;  %v11863_v52 = vld [vmem:[%s12633_s21 + $0x250] sm:$0xff] }
  0x34   : > { %3014 = vmatpush.bf16.msrb.mxu1 %v11835_v53  ;;  %v336_v53 = vld.sshfl [vmem:[#allocation1] sm:$0xff pattern:$0x73625140] }
  0x35   : > { %3027 = vmatpush.bf16.msrb.mxu2 %v11843_v54  ;;  %v337_v54 = vld.sshfl [vmem:[#allocation1 + $0x8] sm:$0xff pattern:$0x73625140] }
  0x36   : > { %3040 = vmatpush.bf16.msrb.mxu3 %v11851_v55  ;;  %v11871_v55 = vld [vmem:[%s12633_s21 + $0x290] sm:$0xff] }
  0x37   : > { %3002 = vmatpush.bf16.msrb.mxu0 %v11826_v56  ;;  %v338_v56 = vld.sshfl [vmem:[#allocation1 + $0x10] sm:$0xff pattern:$0x73625140] }
  0x38   : > { %3015 = vmatpush.bf16.msrb.mxu1 %v11834_v57  ;;  %v278_v57 = vld [vmem:[%s12657_s25 + $0x18] sm:$0xff] }
  0x39   : > { %3028 = vmatpush.bf16.msrb.mxu2 %v11842_v58  ;;  %v11879_v58 = vld [vmem:[%s12633_s21 + $0x2d0] sm:$0xff]  ;;  %335 = vst [vmem:[#allocation1 + $0x20] ss:$4 sm:$0xff] %v278_v57  ;;  %v11932_v57 = vld [vmem:[%s12633_s21 + $0x478] sm:$0xff] }
  0x3a   : > { %3041 = vmatpush.bf16.msrb.mxu3 %v11850_v59  ;;  %v339_v59 = vld.sshfl [vmem:[#allocation1 + $0x18] sm:$0xff pattern:$0x73625140] }
  0x3b   : > { %3003 = vmatpush.bf16.msrb.mxu0 %v11825_v60  ;;  %v11854_v60 = vld [vmem:[%s12633_s21 + $0x208] sm:$0xff] }
  0x3c   : > { %3016 = vmatpush.bf16.msrb.mxu1 %v11833_v61  ;;  %v11862_v61 = vld [vmem:[%s12633_s21 + $0x248] sm:$0xff] }
  0x3d   : > { %3029 = vmatpush.bf16.msrb.mxu2 %v11841_v62  ;;  %v544_v62 = vpack.c.bf16 %v337_v54, %v336_v53  ;;  %v11909_v53 = vld [vmem:[%s12633_s21 + $0x3c0] sm:$0xff] }
  0x3e   : > { %3042 = vmatpush.bf16.msrb.mxu3 %v11849_v63  ;;  %v545_v63 = vpack.c.bf16 %v339_v59, %v338_v56  ;;  %v11924_v56 = vld [vmem:[%s12633_s21 + $0x438] sm:$0xff] }
  0x3f   : > { %3004 = vmatpush.bf16.msrb.mxu0 %v11824_v0  ;;  %v11870_v0 = vld [vmem:[%s12633_s21 + $0x288] sm:$0xff]  ;;  %v11948_v59 = vld [vmem:[%s12633_s21 + $0x4f8] sm:$0xff] }
  0x40   : > { %3017 = vmatpush.bf16.msrb.mxu1 %v11832_v1  ;;  %v11878_v1 = vld [vmem:[%s12633_s21 + $0x2c8] sm:$0xff]  ;;  %v2143_v9 = vunpack.c.h.b16 %v545_v63 }
  0x41   : > { %3030 = vmatpush.bf16.msrb.mxu2 %v11840_v2  ;;  %v11853_v2 = vld [vmem:[%s12633_s21 + $0x200] sm:$0xff] }
  0x42   : > { %3043 = vmatpush.bf16.msrb.mxu3 %v11848_v3  ;;  %v11861_v3 = vld [vmem:[%s12633_s21 + $0x240] sm:$0xff] }
  0x43   : > { %3005 = vmatpush.bf16.msrb.mxu0 %v11823_v4  ;;  %v2140_v4 = vunpack.c.l.b16 %v544_v62 }
  0x44   : > { %3018 = vmatpush.bf16.msrb.mxu1 %v11831_v5  ;;  %v2142_v5 = vunpack.c.l.b16 %v545_v63 }
  0x45   : > { %3031 = vmatpush.bf16.msrb.mxu2 %v11839_v8  ;;  %v2141_v8 = vunpack.c.h.b16 %v544_v62 }
  0x46   : > { %3044 = vmatpush.bf16.msrb.mxu3 %v11847_v11  ;;  %v11900_v11 = vld [vmem:[%s12633_s21 + $0x378] sm:$0xff]  ;;  %v2158_v15 = vpack.c.b16 %v2142_v5, %v2142_v5  ;;  %v11922_v5 = vld [vmem:[%s12633_s21 + $0x428] sm:$0xff] }
  0x47   : > { %3006 = vmatpush.bf16.msrb.mxu0 %v11822_v13  ;;  %v11916_v13 = vld [vmem:[%s12633_s21 + $0x3f8] sm:$0xff]  ;;  %v2157_v16 = vpack.c.b16 %v2141_v8, %v2141_v8  ;;  %v11946_v8 = vld [vmem:[%s12633_s21 + $0x4e8] sm:$0xff] }
  0x48   : > { %3019 = vmatpush.bf16.msrb.mxu1 %v11830_v14  ;;  %v2156_v14 = vpack.c.b16 %v2140_v4, %v2140_v4  ;;  %v279_v4 = vld [vmem:[%s12657_s25 + $0x20] sm:$0xff] }
  0x49   : > { %3032 = vmatpush.bf16.msrb.mxu2 %v11838_v17  ;;  %v2159_v17 = vpack.c.b16 %v2143_v9, %v2143_v9  ;;  %344 = vst [vmem:[#allocation1] ss:$4 sm:$0xff] %v279_v4  ;;  %v11921_v9 = vld [vmem:[%s12633_s21 + $0x420] sm:$0xff]  ;;  %v11951_v4 = vld [vmem:[%s12633_s21 + $0x510] sm:$0xff] }
  0x4a   : > { %3045 = vmatpush.bf16.msrb.mxu3 %v11846_v18  ;;  %v11891_v18 = vld [vmem:[%s12633_s21 + $0x330] sm:$0xff] }
  0x4b   : > { %3007 = vmatpush.bf16.msrb.mxu0 %v11821_v19  ;;  %v11899_v19 = vld [vmem:[%s12633_s21 + $0x370] sm:$0xff] }
  0x4c   : > { %3020 = vmatpush.bf16.msrb.mxu1 %v11829_v20  ;;  %v11907_v20 = vld [vmem:[%s12633_s21 + $0x3b0] sm:$0xff] }
  0x4d   : > { %3033 = vmatpush.bf16.msrb.mxu2 %v11837_v23  ;;  %v11898_v23 = vld [vmem:[%s12633_s21 + $0x368] sm:$0xff] }
  0x4e   : > { %3046 = vmatpush.bf16.msrb.mxu3 %v11845_v24  ;;  %3008 = vmatmul.bf16.vlgmr.msrb.gmra.mxu0 %v2152_v32  ;;  %v11906_v24 = vld [vmem:[%s12633_s21 + $0x3a8] sm:$0xff]  ;;  %v11904_v32 = vld [vmem:[%s12633_s21 + $0x398] sm:$0xff] }
  0x4f   : > { %3052 = vmatpush.bf16.msra.mxu0 %v11860_v27  ;;  %3021 = vmatmul.bf16.vlgmr.msrb.gmra.mxu1 %v2153_v34  ;;  %v11897_v27 = vld [vmem:[%s12633_s21 + $0x360] sm:$0xff]  ;;  %v11887_v34 = vld [vmem:[%s12633_s21 + $0x310] sm:$0xff] }
  0x50   : > { %3065 = vmatpush.bf16.msra.mxu1 %v11868_v28  ;;  %3034 = vmatmul.bf16.vlgmr.msrb.gmra.mxu2 %v2154_v31  ;;  %v11905_v28 = vld [vmem:[%s12633_s21 + $0x3a0] sm:$0xff]  ;;  %v11896_v31 = vld [vmem:[%s12633_s21 + $0x358] sm:$0xff] }
  0x51   : > { %3078 = vmatpush.bf16.msra.mxu2 %v11876_v29  ;;  %3047 = vmatmul.bf16.vlgmr.msrb.gmra.mxu3 %v2155_v33  ;;  %v11913_v29 = vld [vmem:[%s12633_s21 + $0x3e0] sm:$0xff]  ;;  %v11912_v33 = vld [vmem:[%s12633_s21 + $0x3d8] sm:$0xff] }
  0x52   : > { %3091 = vmatpush.bf16.msra.mxu3 %v11884_v30  ;;  %v11888_v30 = vld [vmem:[%s12633_s21 + $0x318] sm:$0xff] }
  0x53   : > { %3053 = vmatpush.bf16.msra.mxu0 %v11859_v35  ;;  %v11895_v35 = vld [vmem:[%s12633_s21 + $0x350] sm:$0xff] }
  0x54   : > { %3066 = vmatpush.bf16.msra.mxu1 %v11867_v36  ;;  %v11903_v36 = vld [vmem:[%s12633_s21 + $0x390] sm:$0xff] }
  0x55   : > { %3079 = vmatpush.bf16.msra.mxu2 %v11875_v37  ;;  %v11911_v37 = vld [vmem:[%s12633_s21 + $0x3d0] sm:$0xff] }
  0x56   : > { %3092 = vmatpush.bf16.msra.mxu3 %v11883_v38  ;;  %v340_v38 = vld.sshfl [vmem:[#allocation1 + $0x20] sm:$0xff pattern:$0x73625140] }
  0x57   : > { %3054 = vmatpush.bf16.msra.mxu0 %v11858_v39  ;;  %v341_v39 = vld.sshfl [vmem:[#allocation1 + $0x28] sm:$0xff pattern:$0x73625140] }
  0x58   : > { %3067 = vmatpush.bf16.msra.mxu1 %v11866_v40  ;;  %v342_v40 = vld.sshfl [vmem:[#allocation1 + $0x30] sm:$0xff pattern:$0x73625140] }
  0x59   : > { %3080 = vmatpush.bf16.msra.mxu2 %v11874_v41  ;;  %v343_v41 = vld.sshfl [vmem:[#allocation1 + $0x38] sm:$0xff pattern:$0x73625140] }
  0x5a   : > { %3093 = vmatpush.bf16.msra.mxu3 %v11882_v42  ;;  %v11886_v42 = vld [vmem:[%s12633_s21 + $0x308] sm:$0xff] }
  0x5b   : > { %3055 = vmatpush.bf16.msra.mxu0 %v11857_v43  ;;  %v11894_v43 = vld [vmem:[%s12633_s21 + $0x348] sm:$0xff] }
  0x5c   : > { %3068 = vmatpush.bf16.msra.mxu1 %v11865_v44  ;;  %v546_v44 = vpack.c.bf16 %v341_v39, %v340_v38 }
  0x5d   : > { %3081 = vmatpush.bf16.msra.mxu2 %v11873_v45  ;;  %v547_v45 = vpack.c.bf16 %v343_v41, %v342_v40  ;;  %v11956_v40 = vld [vmem:[%s12633_s21 + $0x538] sm:$0xff] }
  0x5e   : > { %3094 = vmatpush.bf16.msra.mxu3 %v11881_v46  ;;  %v11902_v46 = vld [vmem:[%s12633_s21 + $0x388] sm:$0xff]  ;;  %v2145_v54 = vunpack.c.h.b16 %v546_v44  ;;  %v11964_v41 = vld [vmem:[%s12633_s21 + $0x578] sm:$0xff] }
  0x5f   : > { %3056 = vmatpush.bf16.msra.mxu0 %v11856_v47  ;;  %v11910_v47 = vld [vmem:[%s12633_s21 + $0x3c8] sm:$0xff] }
  0x60   : > { %3069 = vmatpush.bf16.msra.mxu1 %v11864_v48  ;;  %v11885_v48 = vld [vmem:[%s12633_s21 + $0x300] sm:$0xff]  ;;  %v2161_v62 = vpack.c.b16 %v2145_v54, %v2145_v54  ;;  %v11970_v54 = vld [vmem:[%s12633_s21 + $0x5a8] sm:$0xff] }
  0x61   : > { %3082 = vmatpush.bf16.msra.mxu2 %v11872_v49  ;;  %v11893_v49 = vld [vmem:[%s12633_s21 + $0x340] sm:$0xff] }
  0x62   : > { %3095 = vmatpush.bf16.msra.mxu3 %v11880_v50  ;;  %v2144_v50 = vunpack.c.l.b16 %v546_v44 }
  0x63   : > { %3057 = vmatpush.bf16.msra.mxu0 %v11855_v51  ;;  %v2146_v51 = vunpack.c.l.b16 %v547_v45 }
  0x64   : > { %3070 = vmatpush.bf16.msra.mxu1 %v11863_v52  ;;  %v11901_v52 = vld [vmem:[%s12633_s21 + $0x380] sm:$0xff] }
  0x65   : > { %3083 = vmatpush.bf16.msra.mxu2 %v11871_v55  ;;  %v2147_v55 = vunpack.c.h.b16 %v547_v45 }
  0x66   : > { %3096 = vmatpush.bf16.msra.mxu3 %v11879_v58  ;;  %v11940_v58 = vld [vmem:[%s12633_s21 + $0x4b8] sm:$0xff] }
  0x67   : > { %3058 = vmatpush.bf16.msra.mxu0 %v11854_v60  ;;  %v2160_v60 = vpack.c.b16 %v2144_v50, %v2144_v50  ;;  %v2163_v63 = vpack.c.b16 %v2147_v55, %v2147_v55  ;;  %v11971_v50 = vld [vmem:[%s12633_s21 + $0x5b0] sm:$0xff]  ;;  %v11978_v55 = vld [vmem:[%s12633_s21 + $0x5e8] sm:$0xff] }
  0x68   : > { %3071 = vmatpush.bf16.msra.mxu1 %v11862_v61  ;;  %v2162_v61 = vpack.c.b16 %v2146_v51, %v2146_v51  ;;  %v11979_v51 = vld [vmem:[%s12633_s21 + $0x5f0] sm:$0xff] }
  0x69   : > { %3084 = vmatpush.bf16.msra.mxu2 %v11870_v0  ;;  %v11923_v0 = vld [vmem:[%s12633_s21 + $0x430] sm:$0xff] }
  0x6a   : > { %3097 = vmatpush.bf16.msra.mxu3 %v11878_v1  ;;  %v11931_v1 = vld [vmem:[%s12633_s21 + $0x470] sm:$0xff] }
  0x6b   : > { %3059 = vmatpush.bf16.msra.mxu0 %v11853_v2  ;;  %v11939_v2 = vld [vmem:[%s12633_s21 + $0x4b0] sm:$0xff] }
  0x6c   : > { %3072 = vmatpush.bf16.msra.mxu1 %v11861_v3  ;;  %v11947_v3 = vld [vmem:[%s12633_s21 + $0x4f0] sm:$0xff] }
  0x6d   : > { %3085 = vmatpush.bf16.msra.mxu2 %v11869_v6  ;;  %v11930_v6 = vld [vmem:[%s12633_s21 + $0x468] sm:$0xff] }
  0x6e   : > { %3098 = vmatpush.bf16.msra.mxu3 %v11877_v7  ;;  %3060 = vmatmul.bf16.vlgmr.msra.gmra.mxu0 %v2156_v14  ;;  %v11938_v7 = vld [vmem:[%s12633_s21 + $0x4a8] sm:$0xff]  ;;  %v11928_v14 = vld [vmem:[%s12633_s21 + $0x458] sm:$0xff] }
  0x6f   : > { %3104 = vmatpush.bf16.msrb.mxu0 %v11892_v10  ;;  %3073 = vmatmul.bf16.vlgmr.msra.gmra.mxu1 %v2157_v16  ;;  %v11929_v10 = vld [vmem:[%s12633_s21 + $0x460] sm:$0xff]  ;;  %v11944_v16 = vld [vmem:[%s12633_s21 + $0x4d8] sm:$0xff] }
  0x70   : > { %3117 = vmatpush.bf16.msrb.mxu1 %v11900_v11  ;;  %3086 = vmatmul.bf16.vlgmr.msra.gmra.mxu2 %v2158_v15  ;;  %v11937_v11 = vld [vmem:[%s12633_s21 + $0x4a0] sm:$0xff]  ;;  %v11936_v15 = vld [vmem:[%s12633_s21 + $0x498] sm:$0xff] }
  0x71   : > { %3130 = vmatpush.bf16.msrb.mxu2 %v11908_v12  ;;  %3099 = vmatmul.bf16.vlgmr.msra.gmra.mxu3 %v2159_v17  ;;  %v11945_v12 = vld [vmem:[%s12633_s21 + $0x4e0] sm:$0xff]  ;;  %v11919_v17 = vld [vmem:[%s12633_s21 + $0x410] sm:$0xff] }
  0x72   : > { %3143 = vmatpush.bf16.msrb.mxu3 %v11916_v13  ;;  %v11920_v13 = vld [vmem:[%s12633_s21 + $0x418] sm:$0xff] }
  0x73   : > { %3105 = vmatpush.bf16.msrb.mxu0 %v11891_v18  ;;  %v11927_v18 = vld [vmem:[%s12633_s21 + $0x450] sm:$0xff] }
  0x74   : > { %3118 = vmatpush.bf16.msrb.mxu1 %v11899_v19  ;;  %v11935_v19 = vld [vmem:[%s12633_s21 + $0x490] sm:$0xff] }
  0x75   : > { %3131 = vmatpush.bf16.msrb.mxu2 %v11907_v20  ;;  %v11943_v20 = vld [vmem:[%s12633_s21 + $0x4d0] sm:$0xff] }
  0x76   : > { %3144 = vmatpush.bf16.msrb.mxu3 %v11915_v21  ;;  %v348_v21 = vld.sshfl [vmem:[#allocation1 + $0x10] sm:$0xff pattern:$0x73625140] }
  0x77   : > { %3106 = vmatpush.bf16.msrb.mxu0 %v11890_v22  ;;  %v349_v22 = vld.sshfl [vmem:[#allocation1 + $0x18] sm:$0xff pattern:$0x73625140] }
  0x78   : > { %3119 = vmatpush.bf16.msrb.mxu1 %v11898_v23  ;;  %v346_v23 = vld.sshfl [vmem:[#allocation1] sm:$0xff pattern:$0x73625140] }
  0x79   : > { %3132 = vmatpush.bf16.msrb.mxu2 %v11906_v24  ;;  %v347_v24 = vld.sshfl [vmem:[#allocation1 + $0x8] sm:$0xff pattern:$0x73625140] }
  0x7a   : > { %3145 = vmatpush.bf16.msrb.mxu3 %v11914_v25  ;;  %v11918_v25 = vld [vmem:[%s12633_s21 + $0x408] sm:$0xff] }
  0x7b   : > { %3107 = vmatpush.bf16.msrb.mxu0 %v11889_v26  ;;  %v11926_v26 = vld [vmem:[%s12633_s21 + $0x448] sm:$0xff] }
  0x7c   : > { %3120 = vmatpush.bf16.msrb.mxu1 %v11897_v27  ;;  %v549_v27 = vpack.c.bf16 %v349_v22, %v348_v21  ;;  %v11966_v22 = vld [vmem:[%s12633_s21 + $0x588] sm:$0xff] }
  0x7d   : > { %3133 = vmatpush.bf16.msrb.mxu2 %v11905_v28  ;;  %v548_v28 = vpack.c.bf16 %v347_v24, %v346_v23  ;;  %v11974_v23 = vld [vmem:[%s12633_s21 + $0x5c8] sm:$0xff] }
  0x7e   : > { %3146 = vmatpush.bf16.msrb.mxu3 %v11913_v29  ;;  %v280_v29 = vld [vmem:[%s12657_s25 + $0x28] sm:$0xff]  ;;  %v3167_v38 = vunpack.c.h.b16 %v549_v27 }
  0x7f   : > { %3108 = vmatpush.bf16.msrb.mxu0 %v11888_v30  ;;  %v11934_v30 = vld [vmem:[%s12633_s21 + $0x488] sm:$0xff]  ;;  %345 = vst [vmem:[#allocation1 + $0x20] ss:$4 sm:$0xff] %v280_v29  ;;  %v3165_v39 = vunpack.c.h.b16 %v548_v28 }
  0x80   : > { %3121 = vmatpush.bf16.msrb.mxu1 %v11896_v31  ;;  %v11942_v31 = vld [vmem:[%s12633_s21 + $0x4c8] sm:$0xff] }
  0x81   : > { %3134 = vmatpush.bf16.msrb.mxu2 %v11904_v32  ;;  %v11917_v32 = vld [vmem:[%s12633_s21 + $0x400] sm:$0xff] }
  0x82   : > { %3147 = vmatpush.bf16.msrb.mxu3 %v11912_v33  ;;  %v11925_v33 = vld [vmem:[%s12633_s21 + $0x440] sm:$0xff] }
  0x83   : > { %3109 = vmatpush.bf16.msrb.mxu0 %v11887_v34  ;;  %v3166_v34 = vunpack.c.l.b16 %v549_v27  ;;  %v11957_v27 = vld [vmem:[%s12633_s21 + $0x540] sm:$0xff] }
  0x84   : > { %3122 = vmatpush.bf16.msrb.mxu1 %v11895_v35  ;;  %v3164_v35 = vunpack.c.l.b16 %v548_v28 }
  0x85   : > { %3135 = vmatpush.bf16.msrb.mxu2 %v11903_v36  ;;  %v11933_v36 = vld [vmem:[%s12633_s21 + $0x480] sm:$0xff]  ;;  %v3182_v44 = vpack.c.b16 %v3166_v34, %v3166_v34  ;;  %v11988_v34 = vld [vmem:[%s12633_s21 + $0x638] sm:$0xff] }
  0x86   : > { %3148 = vmatpush.bf16.msrb.mxu3 %v11911_v37  ;;  %v11941_v37 = vld [vmem:[%s12633_s21 + $0x4c0] sm:$0xff]  ;;  %v3180_v45 = vpack.c.b16 %v3164_v35, %v3164_v35  ;;  %v11996_v35 = vld [vmem:[%s12633_s21 + $0x678] sm:$0xff] }
  0x87   : > { %3110 = vmatpush.bf16.msrb.mxu0 %v11886_v42  ;;  %v11972_v42 = vld [vmem:[%s12633_s21 + $0x5b8] sm:$0xff] }
  0x88   : > { %3123 = vmatpush.bf16.msrb.mxu1 %v11894_v43  ;;  %v11980_v43 = vld [vmem:[%s12633_s21 + $0x5f8] sm:$0xff] }
  0x89   : > { %3136 = vmatpush.bf16.msrb.mxu2 %v11902_v46  ;;  %v3183_v46 = vpack.c.b16 %v3167_v38, %v3167_v38 }
  0x8a   : > { %3149 = vmatpush.bf16.msrb.mxu3 %v11910_v47  ;;  %v3181_v47 = vpack.c.b16 %v3165_v39, %v3165_v39 }
  0x8b   : > { %3111 = vmatpush.bf16.msrb.mxu0 %v11885_v48  ;;  %v11955_v48 = vld [vmem:[%s12633_s21 + $0x530] sm:$0xff] }
  0x8c   : > { %3124 = vmatpush.bf16.msrb.mxu1 %v11893_v49  ;;  %v11963_v49 = vld [vmem:[%s12633_s21 + $0x570] sm:$0xff] }
  0x8d   : > { %3137 = vmatpush.bf16.msrb.mxu2 %v11901_v52  ;;  %v11954_v52 = vld [vmem:[%s12633_s21 + $0x528] sm:$0xff] }
  0x8e   : > { %3150 = vmatpush.bf16.msrb.mxu3 %v11909_v53  ;;  %3112 = vmatmul.bf16.vlgmr.msrb.gmra.mxu0 %v2160_v60  ;;  %v11962_v53 = vld [vmem:[%s12633_s21 + $0x568] sm:$0xff]  ;;  %v11969_v60 = vld [vmem:[%s12633_s21 + $0x5a0] sm:$0xff] }
  0x8f   : > { %3980 = vmatpush.bf16.msra.mxu0 %v11924_v56  ;;  %3125 = vmatmul.bf16.vlgmr.msrb.gmra.mxu1 %v2161_v62 }
  0x90   : > { %3993 = vmatpush.bf16.msra.mxu1 %v11932_v57  ;;  %3138 = vmatmul.bf16.vlgmr.msrb.gmra.mxu2 %v2162_v61  ;;  %v11953_v57 = vld [vmem:[%s12633_s21 + $0x520] sm:$0xff] }
  0x91   : > { %4006 = vmatpush.bf16.msra.mxu2 %v11940_v58  ;;  %3151 = vmatmul.bf16.vlgmr.msrb.gmra.mxu3 %v2163_v63  ;;  %v11961_v58 = vld [vmem:[%s12633_s21 + $0x560] sm:$0xff]  ;;  %v11952_v63 = vld [vmem:[%s12633_s21 + $0x518] sm:$0xff] }
  0x92   : > { %4019 = vmatpush.bf16.msra.mxu3 %v11948_v59  ;;  %v11977_v61 = vld [vmem:[%s12633_s21 + $0x5e0] sm:$0xff] }
  0x93   : > { %3981 = vmatpush.bf16.msra.mxu0 %v11923_v0  ;;  %v11960_v0 = vld [vmem:[%s12633_s21 + $0x558] sm:$0xff] }
  0x94   : > { %3994 = vmatpush.bf16.msra.mxu1 %v11931_v1  ;;  %v11968_v1 = vld [vmem:[%s12633_s21 + $0x598] sm:$0xff] }
  0x95   : > { %4007 = vmatpush.bf16.msra.mxu2 %v11939_v2  ;;  %v11976_v2 = vld [vmem:[%s12633_s21 + $0x5d8] sm:$0xff] }
  0x96   : > { %4020 = vmatpush.bf16.msra.mxu3 %v11947_v3 }
  0x97   : > { %3982 = vmatpush.bf16.msra.mxu0 %v11922_v5  ;;  %v11959_v5 = vld [vmem:[%s12633_s21 + $0x550] sm:$0xff] }
  0x98   : > { %3995 = vmatpush.bf16.msra.mxu1 %v11930_v6 }
  0x99   : > { %4008 = vmatpush.bf16.msra.mxu2 %v11938_v7 }
  0x9a   : > { %4021 = vmatpush.bf16.msra.mxu3 %v11946_v8  ;;  %v352_v8 = vld.sshfl [vmem:[#allocation1 + $0x30] sm:$0xff pattern:$0x73625140] }
  0x9b   : > { %3983 = vmatpush.bf16.msra.mxu0 %v11921_v9  ;;  %v353_v9 = vld.sshfl [vmem:[#allocation1 + $0x38] sm:$0xff pattern:$0x73625140] }
  0x9c   : > { %3996 = vmatpush.bf16.msra.mxu1 %v11929_v10 }
  0x9d   : > { %4009 = vmatpush.bf16.msra.mxu2 %v11937_v11  ;;  %v11967_v11 = vld [vmem:[%s12633_s21 + $0x590] sm:$0xff] }
  0x9e   : > { %4022 = vmatpush.bf16.msra.mxu3 %v11945_v12 }
  0x9f   : > { %3984 = vmatpush.bf16.msra.mxu0 %v11920_v13  ;;  %v350_v13 = vld.sshfl [vmem:[#allocation1 + $0x20] sm:$0xff pattern:$0x73625140] }
  0xa0   : > { %3997 = vmatpush.bf16.msra.mxu1 %v11928_v14 }
  0xa1   : > { %4010 = vmatpush.bf16.msra.mxu2 %v11936_v15  ;;  %v281_v15 = vld [vmem:[%s12657_s25 + $0x30] sm:$0xff] }
  0xa2   : > { %4023 = vmatpush.bf16.msra.mxu3 %v11944_v16  ;;  %v11975_v16 = vld [vmem:[%s12633_s21 + $0x5d0] sm:$0xff]  ;;  %354 = vst [vmem:[#allocation1] ss:$4 sm:$0xff] %v281_v15 }
  0xa3   : > { %3985 = vmatpush.bf16.msra.mxu0 %v11919_v17  ;;  %v351_v17 = vld.sshfl [vmem:[#allocation1 + $0x28] sm:$0xff pattern:$0x73625140] }
  0xa4   : > { %3998 = vmatpush.bf16.msra.mxu1 %v11927_v18  ;;  %v11950_v18 = vld [vmem:[%s12633_s21 + $0x508] sm:$0xff]  ;;  %v550_v21 = vpack.c.bf16 %v351_v17, %v350_v13 }
  0xa5   : > { %4011 = vmatpush.bf16.msra.mxu2 %v11935_v19  ;;  %v11958_v19 = vld [vmem:[%s12633_s21 + $0x548] sm:$0xff] }
  0xa6   : > { %4024 = vmatpush.bf16.msra.mxu3 %v11943_v20  ;;  %v551_v20 = vpack.c.bf16 %v353_v9, %v352_v8  ;;  %v3168_v29 = vunpack.c.l.b16 %v550_v21  ;;  %v11982_v13 = vld [vmem:[%s12633_s21 + $0x608] sm:$0xff] }
  0xa7   : > { %3986 = vmatpush.bf16.msra.mxu0 %v11918_v25  ;;  %v11998_v17 = vld [vmem:[%s12633_s21 + $0x688] sm:$0xff] }
  0xa8   : > { %3999 = vmatpush.bf16.msra.mxu1 %v11926_v26  ;;  %v11949_v26 = vld [vmem:[%s12633_s21 + $0x500] sm:$0xff]  ;;  %v3170_v28 = vunpack.c.l.b16 %v551_v20  ;;  %v3184_v39 = vpack.c.b16 %v3168_v29, %v3168_v29  ;;  %v12020_v29 = vld [vmem:[%s12633_s21 + $0x738] sm:$0xff] }
  0xa9   : > { %4012 = vmatpush.bf16.msra.mxu2 %v11934_v30  ;;  %v11965_v30 = vld [vmem:[%s12633_s21 + $0x580] sm:$0xff]  ;;  %v358_v8 = vld.sshfl [vmem:[#allocation1 + $0x10] sm:$0xff pattern:$0x73625140] }
  0xaa   : > { %4025 = vmatpush.bf16.msra.mxu3 %v11942_v31  ;;  %v11973_v31 = vld [vmem:[%s12633_s21 + $0x5c0] sm:$0xff]  ;;  %v3186_v38 = vpack.c.b16 %v3170_v28, %v3170_v28 }
  0xab   : > { %3987 = vmatpush.bf16.msra.mxu0 %v11917_v32  ;;  %v2957_v56 = vpop.f32.mrf.mxu0  ;;  %v3171_v32 = vunpack.c.h.b16 %v551_v20 }
  0xac   : > { %4000 = vmatpush.bf16.msra.mxu1 %v11925_v33  ;;  %v2970_v59 = vpop.f32.mrf.mxu1  ;;  %v3169_v33 = vunpack.c.h.b16 %v550_v21  ;;  %v11981_v21 = vld [vmem:[%s12633_s21 + $0x600] sm:$0xff] }
  0xad   : > { %4013 = vmatpush.bf16.msra.mxu2 %v11933_v36  ;;  %v2971_v62 = vadd.f32 %v2970_v59, %v2957_v56  ;;  %v12004_v36 = vld [vmem:[%s12633_s21 + $0x6b8] sm:$0xff]  ;;  %v12009_v56 = vld [vmem:[%s12633_s21 + $0x6e0] sm:$0xff] }
  0xae   : > { %4026 = vmatpush.bf16.msra.mxu3 %v11941_v37  ;;  %3988 = vmatmul.bf16.vlgmr.msra.gmra.mxu0 %v3180_v45  ;;  %v12012_v37 = vld [vmem:[%s12633_s21 + $0x6f8] sm:$0xff]  ;;  %v12011_v45 = vld [vmem:[%s12633_s21 + $0x6f0] sm:$0xff] }
  0xaf   : > { %4032 = vmatpush.bf16.msrb.mxu0 %v11956_v40  ;;  %4001 = vmatmul.bf16.vlgmr.msra.gmra.mxu1 %v3181_v47  ;;  %v3187_v40 = vpack.c.b16 %v3171_v32, %v3171_v32  ;;  %v11994_v47 = vld [vmem:[%s12633_s21 + $0x668] sm:$0xff]  ;;  %v11992_v59 = vld [vmem:[%s12633_s21 + $0x658] sm:$0xff] }
  0xb0   : > { %4045 = vmatpush.bf16.msrb.mxu1 %v11964_v41  ;;  %4014 = vmatmul.bf16.vlgmr.msra.gmra.mxu2 %v3182_v44  ;;  %v3185_v41 = vpack.c.b16 %v3169_v33, %v3169_v33  ;;  %v12003_v44 = vld [vmem:[%s12633_s21 + $0x6b0] sm:$0xff]  ;;  %v12044_v32 = vld [vmem:[%s12633_s21 + $0x7f8] sm:$0xff] }
  0xb1   : > { %4058 = vmatpush.bf16.msrb.mxu2 %v11972_v42  ;;  %4027 = vmatmul.bf16.vlgmr.msra.gmra.mxu3 %v3183_v46  ;;  %v11987_v42 = vld [vmem:[%s12633_s21 + $0x630] sm:$0xff]  ;;  %v11986_v46 = vld [vmem:[%s12633_s21 + $0x628] sm:$0xff] }
  0xb2   : > { %4071 = vmatpush.bf16.msrb.mxu3 %v11980_v43  ;;  %v11995_v43 = vld [vmem:[%s12633_s21 + $0x670] sm:$0xff] }
  0xb3   : > { %4033 = vmatpush.bf16.msrb.mxu0 %v11955_v48  ;;  %v2983_v3 = vpop.f32.mrf.mxu2  ;;  %v2959_v10 = vpop.f32.mrf.mxu0  ;;  %v12002_v48 = vld [vmem:[%s12633_s21 + $0x6a8] sm:$0xff] }
  0xb4   : > { %4046 = vmatpush.bf16.msrb.mxu1 %v11963_v49  ;;  %v2984_v6 = vadd.f32 %v2983_v3, %v2971_v62  ;;  %v2996_v7 = vpop.f32.mrf.mxu3  ;;  %v2972_v14 = vpop.f32.mrf.mxu1  ;;  %v12010_v49 = vld [vmem:[%s12633_s21 + $0x6e8] sm:$0xff]  ;;  %v356_v3 = vld.sshfl [vmem:[#allocation1] sm:$0xff pattern:$0x73625140]  ;;  %v282_v10 = vld [vmem:[%s12657_s25 + $0x38] sm:$0xff] }
  0xb5   : > { %4059 = vmatpush.bf16.msrb.mxu2 %v11971_v50  ;;  %355 = vst [vmem:[#allocation1 + $0x20] ss:$4 sm:$0xff] %v282_v10  ;;  %v11990_v14 = vld [vmem:[%s12633_s21 + $0x648] sm:$0xff] }
  0xb6   : > { %4072 = vmatpush.bf16.msrb.mxu3 %v11979_v51  ;;  %v12836_v12 = vadd.f32 %v2996_v7, %v2984_v6  ;;  %v11985_v51 = vld [vmem:[%s12633_s21 + $0x620] sm:$0xff]  ;;  %v11999_v6 = vld [vmem:[%s12633_s21 + $0x690] sm:$0xff] }
  0xb7   : > { %4034 = vmatpush.bf16.msrb.mxu0 %v11954_v52  ;;  %v11993_v52 = vld [vmem:[%s12633_s21 + $0x660] sm:$0xff] }
  0xb8   : > { %4047 = vmatpush.bf16.msrb.mxu1 %v11962_v53 }
  0xb9   : > { %4060 = vmatpush.bf16.msrb.mxu2 %v11970_v54 }
  0xba   : > { %4073 = vmatpush.bf16.msrb.mxu3 %v11978_v55  ;;  %v12001_v55 = vld [vmem:[%s12633_s21 + $0x6a0] sm:$0xff] }
  0xbb   : > { %4035 = vmatpush.bf16.msrb.mxu0 %v11953_v57  ;;  %v2985_v24 = vpop.f32.mrf.mxu2 }
  0xbc   : > { %4048 = vmatpush.bf16.msrb.mxu1 %v11961_v58  ;;  %v2998_v25 = vpop.f32.mrf.mxu3  ;;  %v11984_v58 = vld [vmem:[%s12633_s21 + $0x618] sm:$0xff] }
  0xbd   : > { %4061 = vmatpush.bf16.msrb.mxu2 %v11969_v60  ;;  %v12000_v60 = vld [vmem:[%s12633_s21 + $0x698] sm:$0xff]  ;;  %v11997_v25 = vld [vmem:[%s12633_s21 + $0x680] sm:$0xff] }
  0xbe   : > { %4074 = vmatpush.bf16.msrb.mxu3 %v11977_v61  ;;  %v12008_v61 = vld [vmem:[%s12633_s21 + $0x6d8] sm:$0xff] }
  0xbf   : > { %4036 = vmatpush.bf16.msrb.mxu0 %v11952_v63  ;;  %v11983_v63 = vld [vmem:[%s12633_s21 + $0x610] sm:$0xff] }
  0xc0   : > { %4049 = vmatpush.bf16.msrb.mxu1 %v11960_v0  ;;  %v11991_v0 = vld [vmem:[%s12633_s21 + $0x650] sm:$0xff] }
  0xc1   : > { %4062 = vmatpush.bf16.msrb.mxu2 %v11968_v1 }
  0xc2   : > { %4075 = vmatpush.bf16.msrb.mxu3 %v11976_v2 }
  0xc3   : > { %4037 = vmatpush.bf16.msrb.mxu0 %v11951_v4  ;;  %v357_v4 = vld.sshfl [vmem:[#allocation1 + $0x8] sm:$0xff pattern:$0x73625140] }
  0xc4   : > { %4050 = vmatpush.bf16.msrb.mxu1 %v11959_v5  ;;  %v552_v15 = vpack.c.bf16 %v357_v4, %v356_v3  ;;  %v361_v3 = vld.sshfl [vmem:[#allocation1 + $0x28] sm:$0xff pattern:$0x73625140] }
  0xc5   : > { %4063 = vmatpush.bf16.msrb.mxu2 %v11967_v11  ;;  %v12007_v11 = vld [vmem:[%s12633_s21 + $0x6d0] sm:$0xff] }
  0xc6   : > { %4076 = vmatpush.bf16.msrb.mxu3 %v11975_v16 }
  0xc7   : > { %4038 = vmatpush.bf16.msrb.mxu0 %v11950_v18  ;;  %v12006_v18 = vld [vmem:[%s12633_s21 + $0x6c8] sm:$0xff] }
  0xc8   : > { %4051 = vmatpush.bf16.msrb.mxu1 %v11958_v19 }
  0xc9   : > { %4064 = vmatpush.bf16.msrb.mxu2 %v11966_v22  ;;  %v11989_v22 = vld [vmem:[%s12633_s21 + $0x640] sm:$0xff] }
  0xca   : > { %4077 = vmatpush.bf16.msrb.mxu3 %v11974_v23  ;;  %v3172_v23 = vunpack.c.l.b16 %v552_v15 }
  0xcb   : > { %4039 = vmatpush.bf16.msrb.mxu0 %v11949_v26  ;;  %v3009_v50 = vpop.f32.mrf.mxu0  ;;  %v12005_v26 = vld [vmem:[%s12633_s21 + $0x6c0] sm:$0xff] }
  0xcc   : > { %4052 = vmatpush.bf16.msrb.mxu1 %v11957_v27  ;;  %v3010_v53 = vadd.f32 %v3009_v50, %v12836_v12  ;;  %v3022_v54 = vpop.f32.mrf.mxu1  ;;  %v359_v12 = vld.sshfl [vmem:[#allocation1 + $0x18] sm:$0xff pattern:$0x73625140]  ;;  %v3173_v27 = vunpack.c.h.b16 %v552_v15  ;;  %v3188_v33 = vpack.c.b16 %v3172_v23, %v3172_v23  ;;  %v12033_v50 = vld [vmem:[%s12633_s21 + $0x7a0] sm:$0xff] }
  0xcd   : > { %4065 = vmatpush.bf16.msrb.mxu2 %v11965_v30  ;;  %v553_v16 = vpack.c.bf16 %v359_v12, %v358_v8  ;;  %v12028_v30 = vld [vmem:[%s12633_s21 + $0x778] sm:$0xff]  ;;  %v12022_v8 = vld [vmem:[%s12633_s21 + $0x748] sm:$0xff]  ;;  %v12013_v15 = vld [vmem:[%s12633_s21 + $0x700] sm:$0xff] }
  0xce   : > { %4078 = vmatpush.bf16.msrb.mxu3 %v11973_v31  ;;  %4040 = vmatmul.bf16.vlgmr.msrb.gmra.mxu0 %v3184_v39  ;;  %v3023_v57 = vadd.f32 %v3022_v54, %v3010_v53  ;;  %v12036_v31 = vld [vmem:[%s12633_s21 + $0x7b8] sm:$0xff]  ;;  %v12035_v39 = vld [vmem:[%s12633_s21 + $0x7b0] sm:$0xff]  ;;  %v12038_v12 = vld [vmem:[%s12633_s21 + $0x7c8] sm:$0xff] }
  0xcf   : > { %4084 = vmatpush.bf16.msra.mxu0 %v11988_v34  ;;  %4053 = vmatmul.bf16.vlgmr.msrb.gmra.mxu1 %v3185_v41  ;;  %v3174_v24 = vunpack.c.l.b16 %v553_v16  ;;  %v3175_v28 = vunpack.c.h.b16 %v553_v16  ;;  %v12018_v41 = vld [vmem:[%s12633_s21 + $0x728] sm:$0xff]  ;;  %v12016_v53 = vld [vmem:[%s12633_s21 + $0x718] sm:$0xff]  ;;  %v12021_v16 = vld [vmem:[%s12633_s21 + $0x740] sm:$0xff] }
  0xd0   : > { %4097 = vmatpush.bf16.msra.mxu1 %v11996_v35  ;;  %4066 = vmatmul.bf16.vlgmr.msrb.gmra.mxu2 %v3186_v38  ;;  %v3189_v35 = vpack.c.b16 %v3173_v27, %v3173_v27  ;;  %v12027_v38 = vld [vmem:[%s12633_s21 + $0x770] sm:$0xff]  ;;  %v12024_v54 = vld [vmem:[%s12633_s21 + $0x758] sm:$0xff] }
  0xd1   : > { %4110 = vmatpush.bf16.msra.mxu2 %v12004_v36  ;;  %4079 = vmatmul.bf16.vlgmr.msrb.gmra.mxu3 %v3187_v40  ;;  %v3190_v34 = vpack.c.b16 %v3174_v24, %v3174_v24  ;;  %v3191_v36 = vpack.c.b16 %v3175_v28, %v3175_v28  ;;  %v12043_v40 = vld [vmem:[%s12633_s21 + $0x7f0] sm:$0xff]  ;;  %v12052_v23 = vld [vmem:[%s12633_s21 + $0x838] sm:$0xff] }
  0xd2   : > { %4123 = vmatpush.bf16.msra.mxu3 %v12012_v37  ;;  %v12019_v37 = vld [vmem:[%s12633_s21 + $0x730] sm:$0xff]  ;;  %v12060_v24 = vld [vmem:[%s12633_s21 + $0x878] sm:$0xff] }
  0xd3   : > { %4085 = vmatpush.bf16.msra.mxu0 %v11987_v42  ;;  %v3035_v62 = vpop.f32.mrf.mxu2  ;;  %v3011_v5 = vpop.f32.mrf.mxu0  ;;  %v12026_v42 = vld [vmem:[%s12633_s21 + $0x768] sm:$0xff] }
  0xd4   : > { %4098 = vmatpush.bf16.msra.mxu1 %v11995_v43  ;;  %v3036_v1 = vadd.f32 %v3035_v62, %v3023_v57  ;;  %v3048_v2 = vpop.f32.mrf.mxu3  ;;  %v3024_v9 = vpop.f32.mrf.mxu1  ;;  %v12034_v43 = vld [vmem:[%s12633_s21 + $0x7a8] sm:$0xff]  ;;  %v12031_v62 = vld [vmem:[%s12633_s21 + $0x790] sm:$0xff] }
  0xd5   : > { %4111 = vmatpush.bf16.msra.mxu2 %v12003_v44  ;;  %v12042_v44 = vld [vmem:[%s12633_s21 + $0x7e8] sm:$0xff]  ;;  %v362_v5 = vld.sshfl [vmem:[#allocation1 + $0x30] sm:$0xff pattern:$0x73625140] }
  0xd6   : > { %4124 = vmatpush.bf16.msra.mxu3 %v12011_v45  ;;  %v12872_v7 = vadd.f32 %v3048_v2, %v3036_v1  ;;  %v360_v2 = vld.sshfl [vmem:[#allocation1 + $0x20] sm:$0xff pattern:$0x73625140] }
  0xd7   : > { %4086 = vmatpush.bf16.msra.mxu0 %v11986_v46  ;;  %v554_v9 = vpack.c.bf16 %v361_v3, %v360_v2  ;;  %v12046_v2 = vld [vmem:[%s12633_s21 + $0x808] sm:$0xff] }
  0xd8   : > { %4099 = vmatpush.bf16.msra.mxu1 %v11994_v47  ;;  %v12017_v47 = vld [vmem:[%s12633_s21 + $0x720] sm:$0xff]  ;;  %v12054_v3 = vld [vmem:[%s12633_s21 + $0x848] sm:$0xff] }
  0xd9   : > { %4112 = vmatpush.bf16.msra.mxu2 %v12002_v48  ;;  %v12025_v48 = vld [vmem:[%s12633_s21 + $0x760] sm:$0xff] }
  0xda   : > { %4125 = vmatpush.bf16.msra.mxu3 %v12010_v49 }
  0xdb   : > { %4087 = vmatpush.bf16.msra.mxu0 %v11985_v51  ;;  %v3037_v19 = vpop.f32.mrf.mxu2  ;;  %v12041_v51 = vld [vmem:[%s12633_s21 + $0x7e0] sm:$0xff] }
  0xdc   : > { %4100 = vmatpush.bf16.msra.mxu1 %v11993_v52  ;;  %v3050_v20 = vpop.f32.mrf.mxu3  ;;  %v12029_v19 = vld [vmem:[%s12633_s21 + $0x780] sm:$0xff] }
  0xdd   : > { %4113 = vmatpush.bf16.msra.mxu2 %v12001_v55  ;;  %v12032_v55 = vld [vmem:[%s12633_s21 + $0x798] sm:$0xff]  ;;  %v12037_v20 = vld [vmem:[%s12633_s21 + $0x7c0] sm:$0xff] }
  0xde   : > { %4126 = vmatpush.bf16.msra.mxu3 %v12009_v56  ;;  %v12040_v56 = vld [vmem:[%s12633_s21 + $0x7d8] sm:$0xff] }
  0xdf   : > { %4088 = vmatpush.bf16.msra.mxu0 %v11984_v58 }
  0xe0   : > { %4101 = vmatpush.bf16.msra.mxu1 %v11992_v59 }
  0xe1   : > { %4114 = vmatpush.bf16.msra.mxu2 %v12000_v60  ;;  %v12015_v60 = vld [vmem:[%s12633_s21 + $0x710] sm:$0xff] }
  0xe2   : > { %4127 = vmatpush.bf16.msra.mxu3 %v12008_v61  ;;  %v12023_v61 = vld [vmem:[%s12633_s21 + $0x750] sm:$0xff] }
  0xe3   : > { %4089 = vmatpush.bf16.msra.mxu0 %v11983_v63  ;;  %v12039_v63 = vld [vmem:[%s12633_s21 + $0x7d0] sm:$0xff] }
  0xe4   : > { %4102 = vmatpush.bf16.msra.mxu1 %v11991_v0 }
  0xe5   : > { %4115 = vmatpush.bf16.msra.mxu2 %v11999_v6  ;;  %v363_v6 = vld.sshfl [vmem:[#allocation1 + $0x38] sm:$0xff pattern:$0x73625140] }
  0xe6   : > { %4128 = vmatpush.bf16.msra.mxu3 %v12007_v11  ;;  %v555_v10 = vpack.c.bf16 %v363_v6, %v362_v5  ;;  %v12030_v11 = vld [vmem:[%s12633_s21 + $0x788] sm:$0xff] }
  0xe7   : > { %4090 = vmatpush.bf16.msra.mxu0 %v11982_v13  ;;  %v284_v6 = vld [vmem:[%s12657_s25 + $0x48] sm:$0xff] }
  0xe8   : > { %4103 = vmatpush.bf16.msra.mxu1 %v11990_v14  ;;  %365 = vst [vmem:[#allocation1 + $0x20] ss:$4 sm:$0xff] %v284_v6  ;;  %v12077_v6 = vld [vmem:[%s12633_s21 + $0x900] sm:$0xff] }
  0xe9   : > { %4116 = vmatpush.bf16.msra.mxu2 %v11998_v17  ;;  %v3176_v17 = vunpack.c.l.b16 %v554_v9 }
  0xea   : > { %4129 = vmatpush.bf16.msra.mxu3 %v12006_v18  ;;  %v3178_v18 = vunpack.c.l.b16 %v555_v10 }
  0xeb   : > { %4091 = vmatpush.bf16.msra.mxu0 %v11981_v21  ;;  %v3061_v45 = vpop.f32.mrf.mxu0  ;;  %v3177_v21 = vunpack.c.h.b16 %v554_v9  ;;  %v3192_v27 = vpack.c.b16 %v3176_v17, %v3176_v17 }
  0xec   : > { %4104 = vmatpush.bf16.msra.mxu1 %v11989_v22  ;;  %v3062_v46 = vadd.f32 %v3061_v45, %v12872_v7  ;;  %v3074_v49 = vpop.f32.mrf.mxu1  ;;  %v12014_v7 = vld [vmem:[%s12633_s21 + $0x708] sm:$0xff]  ;;  %v3179_v22 = vunpack.c.h.b16 %v555_v10  ;;  %v3194_v28 = vpack.c.b16 %v3178_v18, %v3178_v18  ;;  %v12065_v45 = vld [vmem:[%s12633_s21 + $0x8a0] sm:$0xff] }
  0xed   : > { %4117 = vmatpush.bf16.msra.mxu2 %v11997_v25  ;;  %v12068_v25 = vld [vmem:[%s12633_s21 + $0x8b8] sm:$0xff] }
  0xee   : > { %4130 = vmatpush.bf16.msra.mxu3 %v12005_v26  ;;  %4092 = vmatmul.bf16.vlgmr.msra.gmra.mxu0 %v3188_v33  ;;  %v3075_v52 = vadd.f32 %v3074_v49, %v3062_v46  ;;  %v12076_v26 = vld [vmem:[%s12633_s21 + $0x8f8] sm:$0xff]  ;;  %v12067_v33 = vld [vmem:[%s12633_s21 + $0x8b0] sm:$0xff]  ;;  %v12073_v46 = vld [vmem:[%s12633_s21 + $0x8e0] sm:$0xff] }
  0xef   : > { %4136 = vmatpush.bf16.msrb.mxu0 %v12020_v29  ;;  %4105 = vmatmul.bf16.vlgmr.msra.gmra.mxu1 %v3189_v35  ;;  %v3193_v29 = vpack.c.b16 %v3177_v21, %v3177_v21  ;;  %v283_v35 = vld [vmem:[%s12657_s25 + $0x40] sm:$0xff]  ;;  %v12056_v49 = vld [vmem:[%s12633_s21 + $0x858] sm:$0xff] }
  0xf0   : > { %4149 = vmatpush.bf16.msrb.mxu1 %v12028_v30  ;;  %4118 = vmatmul.bf16.vlgmr.msra.gmra.mxu2 %v3190_v34  ;;  %v3195_v30 = vpack.c.b16 %v3179_v22, %v3179_v22  ;;  %v12075_v34 = vld [vmem:[%s12633_s21 + $0x8f0] sm:$0xff]  ;;  %364 = vst [vmem:[#allocation1] ss:$4 sm:$0xff] %v283_v35  ;;  %v12100_v21 = vld [vmem:[%s12633_s21 + $0x9b8] sm:$0xff] }
  0xf1   : > { %4162 = vmatpush.bf16.msrb.mxu2 %v12036_v31  ;;  %4131 = vmatmul.bf16.vlgmr.msra.gmra.mxu3 %v3191_v36  ;;  %v12051_v31 = vld [vmem:[%s12633_s21 + $0x830] sm:$0xff]  ;;  %v12050_v36 = vld [vmem:[%s12633_s21 + $0x828] sm:$0xff]  ;;  %v12108_v22 = vld [vmem:[%s12633_s21 + $0x9f8] sm:$0xff] }
  0xf2   : > { %4175 = vmatpush.bf16.msrb.mxu3 %v12044_v32  ;;  %v12059_v32 = vld [vmem:[%s12633_s21 + $0x870] sm:$0xff] }
  0xf3   : > { %4137 = vmatpush.bf16.msrb.mxu0 %v12019_v37  ;;  %v3087_v57 = vpop.f32.mrf.mxu2  ;;  %v3063_v0 = vpop.f32.mrf.mxu0  ;;  %v12058_v37 = vld [vmem:[%s12633_s21 + $0x868] sm:$0xff] }
  0xf4   : > { %4150 = vmatpush.bf16.msrb.mxu1 %v12027_v38  ;;  %v3088_v58 = vadd.f32 %v3087_v57, %v3075_v52  ;;  %v3100_v59 = vpop.f32.mrf.mxu3  ;;  %v3076_v4 = vpop.f32.mrf.mxu1  ;;  %v12066_v38 = vld [vmem:[%s12633_s21 + $0x8a8] sm:$0xff]  ;;  %v12063_v57 = vld [vmem:[%s12633_s21 + $0x890] sm:$0xff] }
  0xf5   : > { %4163 = vmatpush.bf16.msrb.mxu2 %v12035_v39  ;;  %v12074_v39 = vld [vmem:[%s12633_s21 + $0x8e8] sm:$0xff] }
  0xf6   : > { %4176 = vmatpush.bf16.msrb.mxu3 %v12043_v40  ;;  %v12909_v1 = vadd.f32 %v3100_v59, %v3088_v58  ;;  %v12071_v58 = vld [vmem:[%s12633_s21 + $0x8d0] sm:$0xff] }
  0xf7   : > { %4138 = vmatpush.bf16.msrb.mxu0 %v12018_v41  ;;  %v366_v0 = vld.sshfl [vmem:[#allocation1] sm:$0xff pattern:$0x73625140] }
  0xf8   : > { %4151 = vmatpush.bf16.msrb.mxu1 %v12026_v42  ;;  %v12049_v42 = vld [vmem:[%s12633_s21 + $0x820] sm:$0xff] }
  0xf9   : > { %4164 = vmatpush.bf16.msrb.mxu2 %v12034_v43  ;;  %v12057_v43 = vld [vmem:[%s12633_s21 + $0x860] sm:$0xff] }
  0xfa   : > { %4177 = vmatpush.bf16.msrb.mxu3 %v12042_v44 }
  0xfb   : > { %4139 = vmatpush.bf16.msrb.mxu0 %v12017_v47  ;;  %v3089_v13 = vpop.f32.mrf.mxu2 }
  0xfc   : > { %4152 = vmatpush.bf16.msrb.mxu1 %v12025_v48  ;;  %v3102_v14 = vpop.f32.mrf.mxu3  ;;  %v12048_v48 = vld [vmem:[%s12633_s21 + $0x818] sm:$0xff] }
  0xfd   : > { %4165 = vmatpush.bf16.msrb.mxu2 %v12033_v50  ;;  %v12064_v50 = vld [vmem:[%s12633_s21 + $0x898] sm:$0xff] }
  0xfe   : > { %4178 = vmatpush.bf16.msrb.mxu3 %v12041_v51  ;;  %v12072_v51 = vld [vmem:[%s12633_s21 + $0x8d8] sm:$0xff] }
  0xff   : > { %4140 = vmatpush.bf16.msrb.mxu0 %v12016_v53 }
 0x100   : > { %4153 = vmatpush.bf16.msrb.mxu1 %v12024_v54 }
 0x101   : > { %4166 = vmatpush.bf16.msrb.mxu2 %v12032_v55  ;;  %v12047_v55 = vld [vmem:[%s12633_s21 + $0x810] sm:$0xff] }
 0x102   : > { %4179 = vmatpush.bf16.msrb.mxu3 %v12040_v56  ;;  %v12055_v56 = vld [vmem:[%s12633_s21 + $0x850] sm:$0xff] }
 0x103   : > { %4141 = vmatpush.bf16.msrb.mxu0 %v12015_v60 }
 0x104   : > { %4154 = vmatpush.bf16.msrb.mxu1 %v12023_v61 }
 0x105   : > { %4167 = vmatpush.bf16.msrb.mxu2 %v12031_v62  ;;  %v368_v62 = vld.sshfl [vmem:[#allocation1 + $0x10] sm:$0xff pattern:$0x73625140] }
 0x106   : > { %4180 = vmatpush.bf16.msrb.mxu3 %v12039_v63  ;;  %v369_v63 = vld.sshfl [vmem:[#allocation1 + $0x18] sm:$0xff pattern:$0x73625140] }
 0x107   : > { %4142 = vmatpush.bf16.msrb.mxu0 %v12014_v7  ;;  %v557_v4 = vpack.c.bf16 %v369_v63, %v368_v62  ;;  %v12062_v7 = vld [vmem:[%s12633_s21 + $0x888] sm:$0xff] }
 0x108   : > { %4155 = vmatpush.bf16.msrb.mxu1 %v12022_v8  ;;  %v12070_v8 = vld [vmem:[%s12633_s21 + $0x8c8] sm:$0xff] }
 0x109   : > { %4168 = vmatpush.bf16.msrb.mxu2 %v12030_v11  ;;  %v12045_v11 = vld [vmem:[%s12633_s21 + $0x800] sm:$0xff]  ;;  %v4198_v13 = vunpack.c.l.b16 %v557_v4  ;;  %v4199_v17 = vunpack.c.h.b16 %v557_v4  ;;  %v12078_v62 = vld [vmem:[%s12633_s21 + $0x908] sm:$0xff] }
 0x10a   : > { %4181 = vmatpush.bf16.msrb.mxu3 %v12038_v12  ;;  %v12053_v12 = vld [vmem:[%s12633_s21 + $0x840] sm:$0xff]  ;;  %v12086_v63 = vld [vmem:[%s12633_s21 + $0x948] sm:$0xff] }
 0x10b   : > { %4143 = vmatpush.bf16.msrb.mxu0 %v12013_v15  ;;  %v3113_v40 = vpop.f32.mrf.mxu0  ;;  %v12061_v15 = vld [vmem:[%s12633_s21 + $0x880] sm:$0xff] }
 0x10c   : > { %4156 = vmatpush.bf16.msrb.mxu1 %v12021_v16  ;;  %v3114_v41 = vadd.f32 %v3113_v40, %v12909_v1  ;;  %v3126_v44 = vpop.f32.mrf.mxu1  ;;  %v367_v1 = vld.sshfl [vmem:[#allocation1 + $0x8] sm:$0xff pattern:$0x73625140]  ;;  %v12069_v16 = vld [vmem:[%s12633_s21 + $0x8c0] sm:$0xff] }
 0x10d   : > { %4169 = vmatpush.bf16.msrb.mxu2 %v12029_v19  ;;  %v556_v5 = vpack.c.bf16 %v367_v1, %v366_v0  ;;  %v12084_v19 = vld [vmem:[%s12633_s21 + $0x938] sm:$0xff]  ;;  %v12105_v40 = vld [vmem:[%s12633_s21 + $0x9e0] sm:$0xff] }
 0x10e   : > { %4182 = vmatpush.bf16.msrb.mxu3 %v12037_v20  ;;  %4144 = vmatmul.bf16.vlgmr.msrb.gmra.mxu0 %v3192_v27  ;;  %v3127_v47 = vadd.f32 %v3126_v44, %v3114_v41  ;;  %v12092_v20 = vld [vmem:[%s12633_s21 + $0x978] sm:$0xff]  ;;  %v12083_v27 = vld [vmem:[%s12633_s21 + $0x930] sm:$0xff] }
 0x10f   : > { %5012 = vmatpush.bf16.msra.mxu0 %v12052_v23  ;;  %4157 = vmatmul.bf16.vlgmr.msrb.gmra.mxu1 %v3193_v29  ;;  %v4196_v14 = vunpack.c.l.b16 %v556_v5  ;;  %v4197_v18 = vunpack.c.h.b16 %v556_v5  ;;  %v4214_v23 = vpack.c.b16 %v4198_v13, %v4198_v13  ;;  %v12099_v29 = vld [vmem:[%s12633_s21 + $0x9b0] sm:$0xff]  ;;  %v12096_v44 = vld [vmem:[%s12633_s21 + $0x998] sm:$0xff] }
 0x110   : > { %5025 = vmatpush.bf16.msra.mxu1 %v12060_v24  ;;  %4170 = vmatmul.bf16.vlgmr.msrb.gmra.mxu2 %v3194_v28  ;;  %v12091_v28 = vld [vmem:[%s12633_s21 + $0x970] sm:$0xff] }
 0x111   : > { %5038 = vmatpush.bf16.msra.mxu2 %v12068_v25  ;;  %4183 = vmatmul.bf16.vlgmr.msrb.gmra.mxu3 %v3195_v30  ;;  %v4212_v24 = vpack.c.b16 %v4196_v14, %v4196_v14  ;;  %v4215_v25 = vpack.c.b16 %v4199_v17, %v4199_v17  ;;  %v12107_v30 = vld [vmem:[%s12633_s21 + $0x9f0] sm:$0xff]  ;;  %v12116_v14 = vld [vmem:[%s12633_s21 + $0xa38] sm:$0xff] }
 0x112   : > { %5051 = vmatpush.bf16.msra.mxu3 %v12076_v26  ;;  %v4213_v26 = vpack.c.b16 %v4197_v18, %v4197_v18  ;;  %v12140_v17 = vld [vmem:[%s12633_s21 + $0xaf8] sm:$0xff] }
 0x113   : > { %5013 = vmatpush.bf16.msra.mxu0 %v12051_v31  ;;  %v3139_v52 = vpop.f32.mrf.mxu2  ;;  %v3115_v59 = vpop.f32.mrf.mxu0  ;;  %v12082_v31 = vld [vmem:[%s12633_s21 + $0x928] sm:$0xff] }
 0x114   : > { %5026 = vmatpush.bf16.msra.mxu1 %v12059_v32  ;;  %v3140_v53 = vadd.f32 %v3139_v52, %v3127_v47  ;;  %v3152_v54 = vpop.f32.mrf.mxu3  ;;  %v3128_v61 = vpop.f32.mrf.mxu1  ;;  %v12090_v32 = vld [vmem:[%s12633_s21 + $0x968] sm:$0xff]  ;;  %v12079_v47 = vld [vmem:[%s12633_s21 + $0x910] sm:$0xff]  ;;  %v373_v52 = vld.sshfl [vmem:[#allocation1 + $0x38] sm:$0xff pattern:$0x73625140] }
 0x115   : > { %5039 = vmatpush.bf16.msra.mxu2 %v12067_v33  ;;  %v12098_v33 = vld [vmem:[%s12633_s21 + $0x9a8] sm:$0xff]  ;;  %v12103_v59 = vld [vmem:[%s12633_s21 + $0x9d0] sm:$0xff] }
 0x116   : > { %5052 = vmatpush.bf16.msra.mxu3 %v12075_v34  ;;  %v12945_v60 = vadd.f32 %v3152_v54, %v3140_v53  ;;  %v12106_v34 = vld [vmem:[%s12633_s21 + $0x9e8] sm:$0xff]  ;;  %v12095_v54 = vld [vmem:[%s12633_s21 + $0x990] sm:$0xff] }
 0x117   : > { %5014 = vmatpush.bf16.msra.mxu0 %v12050_v36  ;;  %v12081_v36 = vld [vmem:[%s12633_s21 + $0x920] sm:$0xff]  ;;  %v371_v61 = vld.sshfl [vmem:[#allocation1 + $0x28] sm:$0xff pattern:$0x73625140] }
 0x118   : > { %5027 = vmatpush.bf16.msra.mxu1 %v12058_v37  ;;  %v12089_v37 = vld [vmem:[%s12633_s21 + $0x960] sm:$0xff] }
 0x119   : > { %5040 = vmatpush.bf16.msra.mxu2 %v12066_v38 }
 0x11a   : > { %5053 = vmatpush.bf16.msra.mxu3 %v12074_v39  ;;  %v12097_v39 = vld [vmem:[%s12633_s21 + $0x9a0] sm:$0xff] }
 0x11b   : > { %5015 = vmatpush.bf16.msra.mxu0 %v12049_v42  ;;  %v3141_v9 = vpop.f32.mrf.mxu2  ;;  %v12080_v42 = vld [vmem:[%s12633_s21 + $0x918] sm:$0xff] }
 0x11c   : > { %5028 = vmatpush.bf16.msra.mxu1 %v12057_v43  ;;  %v3154_v10 = vpop.f32.mrf.mxu3  ;;  %v12088_v43 = vld [vmem:[%s12633_s21 + $0x958] sm:$0xff] }
 0x11d   : > { %5041 = vmatpush.bf16.msra.mxu2 %v12065_v45  ;;  %v12104_v45 = vld [vmem:[%s12633_s21 + $0x9d8] sm:$0xff]  ;;  %v12093_v10 = vld [vmem:[%s12633_s21 + $0x980] sm:$0xff] }
 0x11e   : > { %5054 = vmatpush.bf16.msra.mxu3 %v12073_v46 }
 0x11f   : > { %5016 = vmatpush.bf16.msra.mxu0 %v12048_v48  ;;  %v12087_v48 = vld [vmem:[%s12633_s21 + $0x950] sm:$0xff] }
 0x120   : > { %5029 = vmatpush.bf16.msra.mxu1 %v12056_v49 }
 0x121   : > { %5042 = vmatpush.bf16.msra.mxu2 %v12064_v50 }
 0x122   : > { %5055 = vmatpush.bf16.msra.mxu3 %v12072_v51  ;;  %v372_v51 = vld.sshfl [vmem:[#allocation1 + $0x30] sm:$0xff pattern:$0x73625140] }
 0x123   : > { %5017 = vmatpush.bf16.msra.mxu0 %v12047_v55  ;;  %v559_v0 = vpack.c.bf16 %v373_v52, %v372_v51 }
 0x124   : > { %5030 = vmatpush.bf16.msra.mxu1 %v12055_v56  ;;  %v370_v56 = vld.sshfl [vmem:[#allocation1 + $0x20] sm:$0xff pattern:$0x73625140] }
 0x125   : > { %5043 = vmatpush.bf16.msra.mxu2 %v12063_v57  ;;  %v558_v1 = vpack.c.bf16 %v371_v61, %v370_v56 }
 0x126   : > { %5056 = vmatpush.bf16.msra.mxu3 %v12071_v58  ;;  %v285_v58 = vld [vmem:[%s12657_s25 + $0x50] sm:$0xff] }
 0x127   : > { %5018 = vmatpush.bf16.msra.mxu0 %v12046_v2  ;;  %374 = vst [vmem:[#allocation1] ss:$4 sm:$0xff] %v285_v58  ;;  %v12094_v2 = vld [vmem:[%s12633_s21 + $0x988] sm:$0xff]  ;;  %v4200_v9 = vunpack.c.l.b16 %v558_v1  ;;  %v4201_v13 = vunpack.c.h.b16 %v558_v1 }
 0x128   : > { %5031 = vmatpush.bf16.msra.mxu1 %v12054_v3  ;;  %v12102_v3 = vld [vmem:[%s12633_s21 + $0x9c8] sm:$0xff] }
 0x129   : > { %5044 = vmatpush.bf16.msra.mxu2 %v12062_v7  ;;  %v12085_v7 = vld [vmem:[%s12633_s21 + $0x940] sm:$0xff]  ;;  %v12118_v58 = vld [vmem:[%s12633_s21 + $0xa48] sm:$0xff] }
 0x12a   : > { %5057 = vmatpush.bf16.msra.mxu3 %v12070_v8  ;;  %v4202_v8 = vunpack.c.l.b16 %v559_v0 }
 0x12b   : > { %5019 = vmatpush.bf16.msra.mxu0 %v12045_v11  ;;  %v3989_v35 = vpop.f32.mrf.mxu0  ;;  %v12101_v11 = vld [vmem:[%s12633_s21 + $0x9c0] sm:$0xff] }
 0x12c   : > { %5032 = vmatpush.bf16.msra.mxu1 %v12053_v12  ;;  %v4002_v38 = vpop.f32.mrf.mxu1  ;;  %v4203_v12 = vunpack.c.h.b16 %v559_v0  ;;  %v4218_v18 = vpack.c.b16 %v4202_v8, %v4202_v8 }
 0x12d   : > { %5045 = vmatpush.bf16.msra.mxu2 %v12061_v15  ;;  %v4003_v41 = vadd.f32 %v4002_v38, %v3989_v35  ;;  %v12124_v15 = vld [vmem:[%s12633_s21 + $0xa78] sm:$0xff]  ;;  %v12129_v35 = vld [vmem:[%s12633_s21 + $0xaa0] sm:$0xff] }
 0x12e   : > { %5058 = vmatpush.bf16.msra.mxu3 %v12069_v16  ;;  %5020 = vmatmul.bf16.vlgmr.msra.gmra.mxu0 %v4212_v24  ;;  %v12132_v16 = vld [vmem:[%s12633_s21 + $0xab8] sm:$0xff]  ;;  %v12131_v24 = vld [vmem:[%s12633_s21 + $0xab0] sm:$0xff] }
 0x12f   : > { %5064 = vmatpush.bf16.msrb.mxu0 %v12084_v19  ;;  %5033 = vmatmul.bf16.vlgmr.msra.gmra.mxu1 %v4213_v26  ;;  %v4216_v19 = vpack.c.b16 %v4200_v9, %v4200_v9  ;;  %v12114_v26 = vld [vmem:[%s12633_s21 + $0xa28] sm:$0xff]  ;;  %v12112_v38 = vld [vmem:[%s12633_s21 + $0xa18] sm:$0xff]  ;;  %v378_v52 = vld.sshfl [vmem:[#allocation1 + $0x10] sm:$0xff pattern:$0x73625140] }
 0x130   : > { %5077 = vmatpush.bf16.msrb.mxu1 %v12092_v20  ;;  %5046 = vmatmul.bf16.vlgmr.msra.gmra.mxu2 %v4214_v23  ;;  %v4219_v20 = vpack.c.b16 %v4203_v12, %v4203_v12  ;;  %v12123_v23 = vld [vmem:[%s12633_s21 + $0xa70] sm:$0xff]  ;;  %v379_v56 = vld.sshfl [vmem:[#allocation1 + $0x18] sm:$0xff pattern:$0x73625140] }
 0x131   : > { %5090 = vmatpush.bf16.msrb.mxu2 %v12100_v21  ;;  %5059 = vmatmul.bf16.vlgmr.msra.gmra.mxu3 %v4215_v25  ;;  %v4217_v21 = vpack.c.b16 %v4201_v13, %v4201_v13  ;;  %v12139_v25 = vld [vmem:[%s12633_s21 + $0xaf0] sm:$0xff]  ;;  %v561_v61 = vpack.c.bf16 %v379_v56, %v378_v52  ;;  %v12164_v12 = vld [vmem:[%s12633_s21 + $0xbb8] sm:$0xff]  ;;  %v12142_v52 = vld [vmem:[%s12633_s21 + $0xb08] sm:$0xff] }
 0x132   : > { %5103 = vmatpush.bf16.msrb.mxu3 %v12108_v22  ;;  %v12115_v22 = vld [vmem:[%s12633_s21 + $0xa30] sm:$0xff]  ;;  %v12172_v13 = vld [vmem:[%s12633_s21 + $0xbf8] sm:$0xff]  ;;  %v12158_v56 = vld [vmem:[%s12633_s21 + $0xb88] sm:$0xff] }
 0x133   : > { %5065 = vmatpush.bf16.msrb.mxu0 %v12083_v27  ;;  %v4015_v46 = vpop.f32.mrf.mxu2  ;;  %v3991_v53 = vpop.f32.mrf.mxu0  ;;  %v12122_v27 = vld [vmem:[%s12633_s21 + $0xa68] sm:$0xff]  ;;  %v4207_v9 = vunpack.c.h.b16 %v561_v61 }
 0x134   : > { %5078 = vmatpush.bf16.msrb.mxu1 %v12091_v28  ;;  %v4016_v49 = vadd.f32 %v4015_v46, %v4003_v41  ;;  %v4028_v50 = vpop.f32.mrf.mxu3  ;;  %v4004_v57 = vpop.f32.mrf.mxu1  ;;  %v12130_v28 = vld [vmem:[%s12633_s21 + $0xaa8] sm:$0xff]  ;;  %v12136_v41 = vld [vmem:[%s12633_s21 + $0xad8] sm:$0xff] }
 0x135   : > { %5091 = vmatpush.bf16.msrb.mxu2 %v12099_v29  ;;  %v12138_v29 = vld [vmem:[%s12633_s21 + $0xae8] sm:$0xff] }
 0x136   : > { %5104 = vmatpush.bf16.msrb.mxu3 %v12107_v30  ;;  %v12979_v55 = vadd.f32 %v4028_v50, %v4016_v49  ;;  %v12127_v50 = vld [vmem:[%s12633_s21 + $0xa90] sm:$0xff]  ;;  %v12110_v57 = vld [vmem:[%s12633_s21 + $0xa08] sm:$0xff] }
 0x137   : > { %5066 = vmatpush.bf16.msrb.mxu0 %v12082_v31  ;;  %v12113_v31 = vld [vmem:[%s12633_s21 + $0xa20] sm:$0xff] }
 0x138   : > { %5079 = vmatpush.bf16.msrb.mxu1 %v12090_v32  ;;  %v12121_v32 = vld [vmem:[%s12633_s21 + $0xa60] sm:$0xff] }
 0x139   : > { %5092 = vmatpush.bf16.msrb.mxu2 %v12098_v33 }
 0x13a   : > { %5105 = vmatpush.bf16.msrb.mxu3 %v12106_v34 }
 0x13b   : > { %5067 = vmatpush.bf16.msrb.mxu0 %v12081_v36  ;;  %v4017_v4 = vpop.f32.mrf.mxu2  ;;  %v12137_v36 = vld [vmem:[%s12633_s21 + $0xae0] sm:$0xff] }
 0x13c   : > { %5080 = vmatpush.bf16.msrb.mxu1 %v12089_v37  ;;  %v4030_v5 = vpop.f32.mrf.mxu3 }
 0x13d   : > { %5093 = vmatpush.bf16.msrb.mxu2 %v12097_v39  ;;  %v12120_v39 = vld [vmem:[%s12633_s21 + $0xa58] sm:$0xff]  ;;  %v4206_v5 = vunpack.c.l.b16 %v561_v61  ;;  %v12141_v61 = vld [vmem:[%s12633_s21 + $0xb00] sm:$0xff] }
 0x13e   : > { %5106 = vmatpush.bf16.msrb.mxu3 %v12105_v40  ;;  %v12128_v40 = vld [vmem:[%s12633_s21 + $0xa98] sm:$0xff] }
 0x13f   : > { %5068 = vmatpush.bf16.msrb.mxu0 %v12080_v42 }
 0x140   : > { %5081 = vmatpush.bf16.msrb.mxu1 %v12088_v43  ;;  %v12111_v43 = vld [vmem:[%s12633_s21 + $0xa10] sm:$0xff] }
 0x141   : > { %5094 = vmatpush.bf16.msrb.mxu2 %v12096_v44  ;;  %v12119_v44 = vld [vmem:[%s12633_s21 + $0xa50] sm:$0xff] }
 0x142   : > { %5107 = vmatpush.bf16.msrb.mxu3 %v12104_v45 }
 0x143   : > { %5069 = vmatpush.bf16.msrb.mxu0 %v12079_v47  ;;  %v376_v47 = vld.sshfl [vmem:[#allocation1] sm:$0xff pattern:$0x73625140] }
 0x144   : > { %5082 = vmatpush.bf16.msrb.mxu1 %v12087_v48  ;;  %v377_v48 = vld.sshfl [vmem:[#allocation1 + $0x8] sm:$0xff pattern:$0x73625140] }
 0x145   : > { %5095 = vmatpush.bf16.msrb.mxu2 %v12095_v54  ;;  %v286_v54 = vld [vmem:[%s12657_s25 + $0x58] sm:$0xff] }
 0x146   : > { %5108 = vmatpush.bf16.msrb.mxu3 %v12103_v59  ;;  %375 = vst [vmem:[#allocation1 + $0x20] ss:$4 sm:$0xff] %v286_v54  ;;  %v560_v59 = vpack.c.bf16 %v377_v48, %v376_v47 }
 0x147   : > { %5070 = vmatpush.bf16.msrb.mxu0 %v12078_v62  ;;  %v12126_v62 = vld [vmem:[%s12633_s21 + $0xa88] sm:$0xff] }
 0x148   : > { %5083 = vmatpush.bf16.msrb.mxu1 %v12086_v63  ;;  %v12134_v63 = vld [vmem:[%s12633_s21 + $0xac8] sm:$0xff]  ;;  %v4204_v4 = vunpack.c.l.b16 %v560_v59  ;;  %v4205_v8 = vunpack.c.h.b16 %v560_v59 }
 0x149   : > { %5096 = vmatpush.bf16.msrb.mxu2 %v12094_v2  ;;  %v12109_v2 = vld [vmem:[%s12633_s21 + $0xa00] sm:$0xff] }
 0x14a   : > { %5109 = vmatpush.bf16.msrb.mxu3 %v12102_v3  ;;  %v12117_v3 = vld [vmem:[%s12633_s21 + $0xa40] sm:$0xff] }
 0x14b   : > { %5071 = vmatpush.bf16.msrb.mxu0 %v12077_v6  ;;  %v4041_v30 = vpop.f32.mrf.mxu0  ;;  %v12125_v6 = vld [vmem:[%s12633_s21 + $0xa80] sm:$0xff] }
 0x14c   : > { %5084 = vmatpush.bf16.msrb.mxu1 %v12085_v7  ;;  %v4042_v33 = vadd.f32 %v4041_v30, %v12979_v55  ;;  %v4054_v34 = vpop.f32.mrf.mxu1  ;;  %v12135_v55 = vld [vmem:[%s12633_s21 + $0xad0] sm:$0xff]  ;;  %v12133_v7 = vld [vmem:[%s12633_s21 + $0xac0] sm:$0xff] }
 0x14d   : > { %5097 = vmatpush.bf16.msrb.mxu2 %v12093_v10  ;;  %v12148_v10 = vld [vmem:[%s12633_s21 + $0xb38] sm:$0xff]  ;;  %v380_v47 = vld.sshfl [vmem:[#allocation1 + $0x20] sm:$0xff pattern:$0x73625140] }
 0x14e   : > { %5110 = vmatpush.bf16.msrb.mxu3 %v12101_v11  ;;  %5072 = vmatmul.bf16.vlgmr.msrb.gmra.mxu0 %v4216_v19  ;;  %v4055_v37 = vadd.f32 %v4054_v34, %v4042_v33  ;;  %v12156_v11 = vld [vmem:[%s12633_s21 + $0xb78] sm:$0xff]  ;;  %v12155_v19 = vld [vmem:[%s12633_s21 + $0xb70] sm:$0xff]  ;;  %v381_v48 = vld.sshfl [vmem:[#allocation1 + $0x28] sm:$0xff pattern:$0x73625140] }
 0x14f   : > { %5116 = vmatpush.bf16.msra.mxu0 %v12116_v14  ;;  %5085 = vmatmul.bf16.vlgmr.msrb.gmra.mxu1 %v4217_v21  ;;  %v4220_v14 = vpack.c.b16 %v4204_v4, %v4204_v4  ;;  %v12171_v21 = vld [vmem:[%s12633_s21 + $0xbf0] sm:$0xff]  ;;  %v12144_v34 = vld [vmem:[%s12633_s21 + $0xb18] sm:$0xff]  ;;  %v562_v54 = vpack.c.bf16 %v381_v48, %v380_v47  ;;  %v12174_v48 = vld [vmem:[%s12633_s21 + $0xc08] sm:$0xff] }
 0x150   : > { %5129 = vmatpush.bf16.msra.mxu1 %v12124_v15  ;;  %5098 = vmatmul.bf16.vlgmr.msrb.gmra.mxu2 %v4218_v18  ;;  %v4222_v15 = vpack.c.b16 %v4206_v5, %v4206_v5  ;;  %v12147_v18 = vld [vmem:[%s12633_s21 + $0xb30] sm:$0xff]  ;;  %v12180_v5 = vld [vmem:[%s12633_s21 + $0xc38] sm:$0xff] }
 0x151   : > { %5142 = vmatpush.bf16.msra.mxu2 %v12132_v16  ;;  %5111 = vmatmul.bf16.vlgmr.msrb.gmra.mxu3 %v4219_v20  ;;  %v4221_v16 = vpack.c.b16 %v4205_v8, %v4205_v8  ;;  %v12163_v20 = vld [vmem:[%s12633_s21 + $0xbb0] sm:$0xff]  ;;  %v12204_v8 = vld [vmem:[%s12633_s21 + $0xcf8] sm:$0xff] }
 0x152   : > { %5155 = vmatpush.bf16.msra.mxu3 %v12140_v17  ;;  %v4223_v17 = vpack.c.b16 %v4207_v9, %v4207_v9 }
 0x153   : > { %5117 = vmatpush.bf16.msra.mxu0 %v12115_v22  ;;  %v4067_v42 = vpop.f32.mrf.mxu2  ;;  %v4043_v49 = vpop.f32.mrf.mxu0  ;;  %v12146_v22 = vld [vmem:[%s12633_s21 + $0xb28] sm:$0xff] }
 0x154   : > { %5130 = vmatpush.bf16.msra.mxu1 %v12123_v23  ;;  %v4068_v45 = vadd.f32 %v4067_v42, %v4055_v37  ;;  %v4080_v46 = vpop.f32.mrf.mxu3  ;;  %v4056_v53 = vpop.f32.mrf.mxu1  ;;  %v12154_v23 = vld [vmem:[%s12633_s21 + $0xb68] sm:$0xff]  ;;  %v12168_v37 = vld [vmem:[%s12633_s21 + $0xbd8] sm:$0xff]  ;;  %v12151_v42 = vld [vmem:[%s12633_s21 + $0xb50] sm:$0xff] }
 0x155   : > { %5143 = vmatpush.bf16.msra.mxu2 %v12131_v24  ;;  %v12162_v24 = vld [vmem:[%s12633_s21 + $0xba8] sm:$0xff] }
 0x156   : > { %5156 = vmatpush.bf16.msra.mxu3 %v12139_v25  ;;  %v13015_v51 = vadd.f32 %v4080_v46, %v4068_v45  ;;  %v12170_v25 = vld [vmem:[%s12633_s21 + $0xbe8] sm:$0xff] }
 0x157   : > { %5118 = vmatpush.bf16.msra.mxu0 %v12114_v26  ;;  %v12150_v53 = vld [vmem:[%s12633_s21 + $0xb48] sm:$0xff] }
 0x158   : > { %5131 = vmatpush.bf16.msra.mxu1 %v12122_v27 }
 0x159   : > { %5144 = vmatpush.bf16.msra.mxu2 %v12130_v28  ;;  %v12145_v28 = vld [vmem:[%s12633_s21 + $0xb20] sm:$0xff] }
 0x15a   : > { %5157 = vmatpush.bf16.msra.mxu3 %v12138_v29  ;;  %v12153_v29 = vld [vmem:[%s12633_s21 + $0xb60] sm:$0xff] }
 0x15b   : > { %5119 = vmatpush.bf16.msra.mxu0 %v12113_v31  ;;  %v4069_v0 = vpop.f32.mrf.mxu2  ;;  %v12161_v31 = vld [vmem:[%s12633_s21 + $0xba0] sm:$0xff] }
 0x15c   : > { %5132 = vmatpush.bf16.msra.mxu1 %v12121_v32  ;;  %v4082_v1 = vpop.f32.mrf.mxu3  ;;  %v12169_v32 = vld [vmem:[%s12633_s21 + $0xbe0] sm:$0xff] }
 0x15d   : > { %5145 = vmatpush.bf16.msra.mxu2 %v12129_v35  ;;  %v12152_v35 = vld [vmem:[%s12633_s21 + $0xb58] sm:$0xff]  ;;  %v12157_v1 = vld [vmem:[%s12633_s21 + $0xb80] sm:$0xff] }
 0x15e   : > { %5158 = vmatpush.bf16.msra.mxu3 %v12137_v36  ;;  %v12160_v36 = vld [vmem:[%s12633_s21 + $0xb98] sm:$0xff] }
 0x15f   : > { %5120 = vmatpush.bf16.msra.mxu0 %v12112_v38 }
 0x160   : > { %5133 = vmatpush.bf16.msra.mxu1 %v12120_v39 }
 0x161   : > { %5146 = vmatpush.bf16.msra.mxu2 %v12128_v40 }
 0x162   : > { %5159 = vmatpush.bf16.msra.mxu3 %v12136_v41  ;;  %v12143_v41 = vld [vmem:[%s12633_s21 + $0xb10] sm:$0xff] }
 0x163   : > { %5121 = vmatpush.bf16.msra.mxu0 %v12111_v43  ;;  %v12159_v43 = vld [vmem:[%s12633_s21 + $0xb90] sm:$0xff] }
 0x164   : > { %5134 = vmatpush.bf16.msra.mxu1 %v12119_v44  ;;  %v12167_v44 = vld [vmem:[%s12633_s21 + $0xbd0] sm:$0xff] }
 0x165   : > { %5147 = vmatpush.bf16.msra.mxu2 %v12127_v50  ;;  %v382_v50 = vld.sshfl [vmem:[#allocation1 + $0x30] sm:$0xff pattern:$0x73625140] }
 0x166   : > { %5160 = vmatpush.bf16.msra.mxu3 %v12135_v55 }
 0x167   : > { %5122 = vmatpush.bf16.msra.mxu0 %v12110_v57  ;;  %v12166_v57 = vld [vmem:[%s12633_s21 + $0xbc8] sm:$0xff] }
 0x168   : > { %5135 = vmatpush.bf16.msra.mxu1 %v12118_v58 }
 0x169   : > { %5148 = vmatpush.bf16.msra.mxu2 %v12126_v62  ;;  %v12149_v62 = vld [vmem:[%s12633_s21 + $0xb40] sm:$0xff] }
 0x16a   : > { %5161 = vmatpush.bf16.msra.mxu3 %v12134_v63  ;;  %v4208_v63 = vunpack.c.l.b16 %v562_v54 }
 0x16b   : > { %5123 = vmatpush.bf16.msra.mxu0 %v12109_v2  ;;  %v4093_v26 = vpop.f32.mrf.mxu0  ;;  %v12165_v2 = vld [vmem:[%s12633_s21 + $0xbc0] sm:$0xff] }
 0x16c   : > { %5136 = vmatpush.bf16.msra.mxu1 %v12117_v3  ;;  %v4094_v27 = vadd.f32 %v4093_v26, %v13015_v51  ;;  %v4106_v30 = vpop.f32.mrf.mxu1  ;;  %v383_v51 = vld.sshfl [vmem:[#allocation1 + $0x38] sm:$0xff pattern:$0x73625140]  ;;  %v4209_v3 = vunpack.c.h.b16 %v562_v54  ;;  %v4224_v9 = vpack.c.b16 %v4208_v63, %v4208_v63  ;;  %v12198_v54 = vld [vmem:[%s12633_s21 + $0xcc8] sm:$0xff]  ;;  %v12197_v63 = vld [vmem:[%s12633_s21 + $0xcc0] sm:$0xff] }
 0x16d   : > { %5149 = vmatpush.bf16.msra.mxu2 %v12125_v6  ;;  %v563_v55 = vpack.c.bf16 %v383_v51, %v382_v50  ;;  %v12188_v6 = vld [vmem:[%s12633_s21 + $0xc78] sm:$0xff] }
 0x16e   : > { %5162 = vmatpush.bf16.msra.mxu3 %v12133_v7  ;;  %5124 = vmatmul.bf16.vlgmr.msra.gmra.mxu0 %v4220_v14  ;;  %v4107_v33 = vadd.f32 %v4106_v30, %v4094_v27  ;;  %v12196_v7 = vld [vmem:[%s12633_s21 + $0xcb8] sm:$0xff]  ;;  %v12187_v14 = vld [vmem:[%s12633_s21 + $0xc70] sm:$0xff]  ;;  %v12193_v27 = vld [vmem:[%s12633_s21 + $0xca0] sm:$0xff] }
 0x16f   : > { %5168 = vmatpush.bf16.msrb.mxu0 %v12148_v10  ;;  %5137 = vmatmul.bf16.vlgmr.msra.gmra.mxu1 %v4221_v16  ;;  %v4210_v0 = vunpack.c.l.b16 %v563_v55  ;;  %v4211_v4 = vunpack.c.h.b16 %v563_v55  ;;  %v12203_v16 = vld [vmem:[%s12633_s21 + $0xcf0] sm:$0xff]  ;;  %v12176_v30 = vld [vmem:[%s12633_s21 + $0xc18] sm:$0xff] }
 0x170   : > { %5181 = vmatpush.bf16.msrb.mxu1 %v12156_v11  ;;  %5150 = vmatmul.bf16.vlgmr.msra.gmra.mxu2 %v4222_v15  ;;  %v4225_v11 = vpack.c.b16 %v4209_v3, %v4209_v3  ;;  %v12195_v15 = vld [vmem:[%s12633_s21 + $0xcb0] sm:$0xff]  ;;  %v12220_v3 = vld [vmem:[%s12633_s21 + $0xd78] sm:$0xff] }
 0x171   : > { %5194 = vmatpush.bf16.msrb.mxu2 %v12164_v12  ;;  %5163 = vmatmul.bf16.vlgmr.msra.gmra.mxu3 %v4223_v17  ;;  %v4226_v10 = vpack.c.b16 %v4210_v0, %v4210_v0  ;;  %v4227_v12 = vpack.c.b16 %v4211_v4, %v4211_v4  ;;  %v287_v17 = vld [vmem:[%s12657_s25 + $0x60] sm:$0xff]  ;;  %v12228_v4 = vld [vmem:[%s12633_s21 + $0xdb8] sm:$0xff] }
 0x172   : > { %5207 = vmatpush.bf16.msrb.mxu3 %v12172_v13  ;;  %v12179_v13 = vld [vmem:[%s12633_s21 + $0xc30] sm:$0xff]  ;;  %384 = vst [vmem:[#allocation1] ss:$4 sm:$0xff] %v287_v17  ;;  %v12234_v17 = vld [vmem:[%s12633_s21 + $0xde8] sm:$0xff] }
 0x173   : > { %5169 = vmatpush.bf16.msrb.mxu0 %v12147_v18  ;;  %v4119_v38 = vpop.f32.mrf.mxu2  ;;  %v4095_v45 = vpop.f32.mrf.mxu0  ;;  %v12178_v18 = vld [vmem:[%s12633_s21 + $0xc28] sm:$0xff] }
 0x174   : > { %5182 = vmatpush.bf16.msrb.mxu1 %v12155_v19  ;;  %v4120_v39 = vadd.f32 %v4119_v38, %v4107_v33  ;;  %v4132_v40 = vpop.f32.mrf.mxu3  ;;  %v4108_v49 = vpop.f32.mrf.mxu1  ;;  %v12186_v19 = vld [vmem:[%s12633_s21 + $0xc68] sm:$0xff]  ;;  %v12200_v33 = vld [vmem:[%s12633_s21 + $0xcd8] sm:$0xff]  ;;  %v12183_v38 = vld [vmem:[%s12633_s21 + $0xc50] sm:$0xff] }
 0x175   : > { %5195 = vmatpush.bf16.msrb.mxu2 %v12163_v20  ;;  %v12194_v20 = vld [vmem:[%s12633_s21 + $0xca8] sm:$0xff] }
 0x176   : > { %5208 = vmatpush.bf16.msrb.mxu3 %v12171_v21  ;;  %v13052_v46 = vadd.f32 %v4132_v40, %v4120_v39  ;;  %v12202_v21 = vld [vmem:[%s12633_s21 + $0xce8] sm:$0xff]  ;;  %v12191_v39 = vld [vmem:[%s12633_s21 + $0xc90] sm:$0xff] }
 0x177   : > { %5170 = vmatpush.bf16.msrb.mxu0 %v12146_v22  ;;  %v12199_v40 = vld [vmem:[%s12633_s21 + $0xcd0] sm:$0xff]  ;;  %v12182_v49 = vld [vmem:[%s12633_s21 + $0xc48] sm:$0xff] }
 0x178   : > { %5183 = vmatpush.bf16.msrb.mxu1 %v12154_v23 }
 0x179   : > { %5196 = vmatpush.bf16.msrb.mxu2 %v12162_v24  ;;  %v12177_v24 = vld [vmem:[%s12633_s21 + $0xc20] sm:$0xff]  ;;  %v389_v45 = vld.sshfl [vmem:[#allocation1 + $0x18] sm:$0xff pattern:$0x73625140] }
 0x17a   : > { %5209 = vmatpush.bf16.msrb.mxu3 %v12170_v25  ;;  %v12185_v25 = vld [vmem:[%s12633_s21 + $0xc60] sm:$0xff]  ;;  %v387_v47 = vld.sshfl [vmem:[#allocation1 + $0x8] sm:$0xff pattern:$0x73625140] }
 0x17b   : > { %5171 = vmatpush.bf16.msrb.mxu0 %v12145_v28  ;;  %v4121_v58 = vpop.f32.mrf.mxu2  ;;  %v12201_v28 = vld [vmem:[%s12633_s21 + $0xce0] sm:$0xff] }
 0x17c   : > { %5184 = vmatpush.bf16.msrb.mxu1 %v12153_v29  ;;  %v4134_v59 = vpop.f32.mrf.mxu3  ;;  %v12181_v58 = vld [vmem:[%s12633_s21 + $0xc40] sm:$0xff] }
 0x17d   : > { %5197 = vmatpush.bf16.msrb.mxu2 %v12161_v31  ;;  %v12184_v31 = vld [vmem:[%s12633_s21 + $0xc58] sm:$0xff] }
 0x17e   : > { %5210 = vmatpush.bf16.msrb.mxu3 %v12169_v32  ;;  %v12192_v32 = vld [vmem:[%s12633_s21 + $0xc98] sm:$0xff] }
 0x17f   : > { %5172 = vmatpush.bf16.msrb.mxu0 %v12144_v34 }
 0x180   : > { %5185 = vmatpush.bf16.msrb.mxu1 %v12152_v35 }
 0x181   : > { %5198 = vmatpush.bf16.msrb.mxu2 %v12160_v36 }
 0x182   : > { %5211 = vmatpush.bf16.msrb.mxu3 %v12168_v37  ;;  %v12175_v37 = vld [vmem:[%s12633_s21 + $0xc10] sm:$0xff] }
 0x183   : > { %5173 = vmatpush.bf16.msrb.mxu0 %v12143_v41 }
 0x184   : > { %5186 = vmatpush.bf16.msrb.mxu1 %v12151_v42 }
 0x185   : > { %5199 = vmatpush.bf16.msrb.mxu2 %v12159_v43 }
 0x186   : > { %5212 = vmatpush.bf16.msrb.mxu3 %v12167_v44  ;;  %v388_v44 = vld.sshfl [vmem:[#allocation1 + $0x10] sm:$0xff pattern:$0x73625140] }
 0x187   : > { %5174 = vmatpush.bf16.msrb.mxu0 %v12142_v52  ;;  %v565_v50 = vpack.c.bf16 %v389_v45, %v388_v44  ;;  %v288_v52 = vld [vmem:[%s12657_s25 + $0x68] sm:$0xff] }
 0x188   : > { %5187 = vmatpush.bf16.msrb.mxu1 %v12150_v53  ;;  %v12190_v53 = vld [vmem:[%s12633_s21 + $0xc88] sm:$0xff]  ;;  %385 = vst [vmem:[#allocation1 + $0x20] ss:$4 sm:$0xff] %v288_v52 }
 0x189   : > { %5200 = vmatpush.bf16.msrb.mxu2 %v12158_v56  ;;  %v5230_v59 = vunpack.c.l.b16 %v565_v50  ;;  %v5231_v0 = vunpack.c.h.b16 %v565_v50  ;;  %v12206_v45 = vld [vmem:[%s12633_s21 + $0xd08] sm:$0xff] }
 0x18a   : > { %5213 = vmatpush.bf16.msrb.mxu3 %v12166_v57  ;;  %v12173_v57 = vld [vmem:[%s12633_s21 + $0xc00] sm:$0xff]  ;;  %v12230_v50 = vld [vmem:[%s12633_s21 + $0xdc8] sm:$0xff] }
 0x18b   : > { %5175 = vmatpush.bf16.msrb.mxu0 %v12141_v61  ;;  %v4145_v22 = vpop.f32.mrf.mxu0 }
 0x18c   : > { %5188 = vmatpush.bf16.msrb.mxu1 %v12149_v62  ;;  %v4146_v23 = vadd.f32 %v4145_v22, %v13052_v46  ;;  %v4158_v26 = vpop.f32.mrf.mxu1  ;;  %v386_v46 = vld.sshfl [vmem:[#allocation1] sm:$0xff pattern:$0x73625140] }
 0x18d   : > { %5201 = vmatpush.bf16.msrb.mxu2 %v12157_v1  ;;  %v564_v51 = vpack.c.bf16 %v387_v47, %v386_v46  ;;  %v12189_v62 = vld [vmem:[%s12633_s21 + $0xc80] sm:$0xff]  ;;  %v12214_v46 = vld [vmem:[%s12633_s21 + $0xd48] sm:$0xff] }
 0x18e   : > { %5214 = vmatpush.bf16.msrb.mxu3 %v12165_v2  ;;  %5176 = vmatmul.bf16.vlgmr.msrb.gmra.mxu0 %v4224_v9  ;;  %v4159_v29 = vadd.f32 %v4158_v26, %v4146_v23  ;;  %v12212_v2 = vld [vmem:[%s12633_s21 + $0xd38] sm:$0xff]  ;;  %v12225_v22 = vld [vmem:[%s12633_s21 + $0xda0] sm:$0xff] }
 0x18f   : > { %6044 = vmatpush.bf16.msra.mxu0 %v12180_v5  ;;  %5189 = vmatmul.bf16.vlgmr.msrb.gmra.mxu1 %v4225_v11  ;;  %v5228_v61 = vunpack.c.l.b16 %v564_v51  ;;  %v5229_v1 = vunpack.c.h.b16 %v564_v51  ;;  %v12236_v5 = vld [vmem:[%s12633_s21 + $0xdf8] sm:$0xff]  ;;  %v12219_v11 = vld [vmem:[%s12633_s21 + $0xd70] sm:$0xff]  ;;  %v12233_v23 = vld [vmem:[%s12633_s21 + $0xde0] sm:$0xff] }
 0x190   : > { %6057 = vmatpush.bf16.msra.mxu1 %v12188_v6  ;;  %5202 = vmatmul.bf16.vlgmr.msrb.gmra.mxu2 %v4226_v10  ;;  %v5246_v6 = vpack.c.b16 %v5230_v59, %v5230_v59  ;;  %v12211_v10 = vld [vmem:[%s12633_s21 + $0xd30] sm:$0xff]  ;;  %v12216_v26 = vld [vmem:[%s12633_s21 + $0xd58] sm:$0xff]  ;;  %v391_v44 = vld.sshfl [vmem:[#allocation1 + $0x28] sm:$0xff pattern:$0x73625140] }
 0x191   : > { %6070 = vmatpush.bf16.msra.mxu2 %v12196_v7  ;;  %5215 = vmatmul.bf16.vlgmr.msrb.gmra.mxu3 %v4227_v12  ;;  %v5244_v7 = vpack.c.b16 %v5228_v61, %v5228_v61  ;;  %v5245_v9 = vpack.c.b16 %v5229_v1, %v5229_v1  ;;  %v12227_v12 = vld [vmem:[%s12633_s21 + $0xdb0] sm:$0xff]  ;;  %v12268_v1 = vld [vmem:[%s12633_s21 + $0xef8] sm:$0xff] }
 0x192   : > { %6083 = vmatpush.bf16.msra.mxu3 %v12204_v8  ;;  %v5247_v8 = vpack.c.b16 %v5231_v0, %v5231_v0  ;;  %v12260_v0 = vld [vmem:[%s12633_s21 + $0xeb8] sm:$0xff] }
 0x193   : > { %6045 = vmatpush.bf16.msra.mxu0 %v12179_v13  ;;  %v4171_v34 = vpop.f32.mrf.mxu2  ;;  %v4147_v41 = vpop.f32.mrf.mxu0  ;;  %v12235_v13 = vld [vmem:[%s12633_s21 + $0xdf0] sm:$0xff] }
 0x194   : > { %6058 = vmatpush.bf16.msra.mxu1 %v12187_v14  ;;  %v4172_v35 = vadd.f32 %v4171_v34, %v4159_v29  ;;  %v4184_v36 = vpop.f32.mrf.mxu3  ;;  %v4160_v43 = vpop.f32.mrf.mxu1  ;;  %v12210_v14 = vld [vmem:[%s12633_s21 + $0xd28] sm:$0xff]  ;;  %v392_v34 = vld.sshfl [vmem:[#allocation1 + $0x30] sm:$0xff pattern:$0x73625140] }
 0x195   : > { %6071 = vmatpush.bf16.msra.mxu2 %v12195_v15  ;;  %v12218_v15 = vld [vmem:[%s12633_s21 + $0xd68] sm:$0xff]  ;;  %v289_v41 = vld [vmem:[%s12657_s25 + $0x70] sm:$0xff] }
 0x196   : > { %6084 = vmatpush.bf16.msra.mxu3 %v12203_v16  ;;  %v13088_v42 = vadd.f32 %v4184_v36, %v4172_v35  ;;  %v12226_v16 = vld [vmem:[%s12633_s21 + $0xda8] sm:$0xff]  ;;  %v393_v35 = vld.sshfl [vmem:[#allocation1 + $0x38] sm:$0xff pattern:$0x73625140]  ;;  %v12231_v43 = vld [vmem:[%s12633_s21 + $0xdd0] sm:$0xff] }
 0x197   : > { %6046 = vmatpush.bf16.msra.mxu0 %v12178_v18  ;;  %394 = vst [vmem:[#allocation1] ss:$4 sm:$0xff] %v289_v41  ;;  %v567_v47 = vpack.c.bf16 %v393_v35, %v392_v34  ;;  %v12255_v34 = vld [vmem:[%s12633_s21 + $0xe90] sm:$0xff]  ;;  %v12238_v41 = vld [vmem:[%s12633_s21 + $0xe08] sm:$0xff] }
 0x198   : > { %6059 = vmatpush.bf16.msra.mxu1 %v12186_v19  ;;  %v12209_v19 = vld [vmem:[%s12633_s21 + $0xd20] sm:$0xff] }
 0x199   : > { %6072 = vmatpush.bf16.msra.mxu2 %v12194_v20  ;;  %v12217_v20 = vld [vmem:[%s12633_s21 + $0xd60] sm:$0xff]  ;;  %v5235_v59 = vunpack.c.h.b16 %v567_v47 }
 0x19a   : > { %6085 = vmatpush.bf16.msra.mxu3 %v12202_v21 }
 0x19b   : > { %6047 = vmatpush.bf16.msra.mxu0 %v12177_v24  ;;  %v4173_v55 = vpop.f32.mrf.mxu2 }
 0x19c   : > { %6060 = vmatpush.bf16.msra.mxu1 %v12185_v25  ;;  %v4186_v56 = vpop.f32.mrf.mxu3  ;;  %v12208_v25 = vld [vmem:[%s12633_s21 + $0xd18] sm:$0xff]  ;;  %v5234_v55 = vunpack.c.l.b16 %v567_v47  ;;  %v12262_v47 = vld [vmem:[%s12633_s21 + $0xec8] sm:$0xff] }
 0x19d   : > { %6073 = vmatpush.bf16.msra.mxu2 %v12193_v27  ;;  %v12224_v27 = vld [vmem:[%s12633_s21 + $0xd98] sm:$0xff] }
 0x19e   : > { %6086 = vmatpush.bf16.msra.mxu3 %v12201_v28  ;;  %v12232_v28 = vld [vmem:[%s12633_s21 + $0xdd8] sm:$0xff] }
 0x19f   : > { %6048 = vmatpush.bf16.msra.mxu0 %v12176_v30  ;;  %v12207_v30 = vld [vmem:[%s12633_s21 + $0xd10] sm:$0xff] }
 0x1a0   : > { %6061 = vmatpush.bf16.msra.mxu1 %v12184_v31  ;;  %v12215_v31 = vld [vmem:[%s12633_s21 + $0xd50] sm:$0xff] }
 0x1a1   : > { %6074 = vmatpush.bf16.msra.mxu2 %v12192_v32 }
 0x1a2   : > { %6087 = vmatpush.bf16.msra.mxu3 %v12200_v33 }
 0x1a3   : > { %6049 = vmatpush.bf16.msra.mxu0 %v12175_v37  ;;  %v12223_v37 = vld [vmem:[%s12633_s21 + $0xd90] sm:$0xff] }
 0x1a4   : > { %6062 = vmatpush.bf16.msra.mxu1 %v12183_v38 }
 0x1a5   : > { %6075 = vmatpush.bf16.msra.mxu2 %v12191_v39  ;;  %v390_v39 = vld.sshfl [vmem:[#allocation1 + $0x20] sm:$0xff pattern:$0x73625140] }
 0x1a6   : > { %6088 = vmatpush.bf16.msra.mxu3 %v12199_v40 }
 0x1a7   : > { %6050 = vmatpush.bf16.msra.mxu0 %v12174_v48  ;;  %v566_v48 = vpack.c.bf16 %v391_v44, %v390_v39  ;;  %v12263_v39 = vld [vmem:[%s12633_s21 + $0xed0] sm:$0xff] }
 0x1a8   : > { %6063 = vmatpush.bf16.msra.mxu1 %v12182_v49  ;;  %v12222_v49 = vld [vmem:[%s12633_s21 + $0xd88] sm:$0xff] }
 0x1a9   : > { %6076 = vmatpush.bf16.msra.mxu2 %v12190_v53  ;;  %v12205_v53 = vld [vmem:[%s12633_s21 + $0xd00] sm:$0xff]  ;;  %v5232_v56 = vunpack.c.l.b16 %v566_v48  ;;  %v5233_v61 = vunpack.c.h.b16 %v566_v48 }
 0x1aa   : > { %6089 = vmatpush.bf16.msra.mxu3 %v12198_v54  ;;  %v12213_v54 = vld [vmem:[%s12633_s21 + $0xd40] sm:$0xff] }
 0x1ab   : > { %6051 = vmatpush.bf16.msra.mxu0 %v12173_v57  ;;  %v5021_v18 = vpop.f32.mrf.mxu0  ;;  %v12221_v57 = vld [vmem:[%s12633_s21 + $0xd80] sm:$0xff] }
 0x1ac   : > { %6064 = vmatpush.bf16.msra.mxu1 %v12181_v58  ;;  %v5034_v21 = vpop.f32.mrf.mxu1  ;;  %v12229_v58 = vld [vmem:[%s12633_s21 + $0xdc0] sm:$0xff] }
 0x1ad   : > { %6077 = vmatpush.bf16.msra.mxu2 %v12189_v62  ;;  %v5035_v24 = vadd.f32 %v5034_v21, %v5021_v18  ;;  %v12244_v62 = vld [vmem:[%s12633_s21 + $0xe38] sm:$0xff] }
 0x1ae   : > { %6090 = vmatpush.bf16.msra.mxu3 %v12197_v63  ;;  %6052 = vmatmul.bf16.vlgmr.msra.gmra.mxu0 %v5244_v7  ;;  %v12252_v63 = vld [vmem:[%s12633_s21 + $0xe78] sm:$0xff]  ;;  %v12251_v7 = vld [vmem:[%s12633_s21 + $0xe70] sm:$0xff] }
 0x1af   : > { %6096 = vmatpush.bf16.msrb.mxu0 %v12212_v2  ;;  %6065 = vmatmul.bf16.vlgmr.msra.gmra.mxu1 %v5245_v9  ;;  %v5250_v2 = vpack.c.b16 %v5234_v55, %v5234_v55  ;;  %v12267_v9 = vld [vmem:[%s12633_s21 + $0xef0] sm:$0xff]  ;;  %v12261_v55 = vld [vmem:[%s12633_s21 + $0xec0] sm:$0xff] }
 0x1b0   : > { %6109 = vmatpush.bf16.msrb.mxu1 %v12220_v3  ;;  %6078 = vmatmul.bf16.vlgmr.msra.gmra.mxu2 %v5246_v6  ;;  %v5248_v3 = vpack.c.b16 %v5232_v56, %v5232_v56  ;;  %v12243_v6 = vld [vmem:[%s12633_s21 + $0xe30] sm:$0xff] }
 0x1b1   : > { %6122 = vmatpush.bf16.msrb.mxu2 %v12228_v4  ;;  %6091 = vmatmul.bf16.vlgmr.msra.gmra.mxu3 %v5247_v8  ;;  %v5251_v4 = vpack.c.b16 %v5235_v59, %v5235_v59  ;;  %v12259_v8 = vld [vmem:[%s12633_s21 + $0xeb0] sm:$0xff]  ;;  %v12284_v59 = vld [vmem:[%s12633_s21 + $0xf78] sm:$0xff] }
 0x1b2   : > { %6135 = vmatpush.bf16.msrb.mxu3 %v12236_v5  ;;  %v5249_v5 = vpack.c.b16 %v5233_v61, %v5233_v61  ;;  %v12292_v61 = vld [vmem:[%s12633_s21 + $0xfb8] sm:$0xff] }
 0x1b3   : > { %6097 = vmatpush.bf16.msrb.mxu0 %v12211_v10  ;;  %v5047_v29 = vpop.f32.mrf.mxu2  ;;  %v5023_v36 = vpop.f32.mrf.mxu0  ;;  %v12242_v10 = vld [vmem:[%s12633_s21 + $0xe28] sm:$0xff] }
 0x1b4   : > { %6110 = vmatpush.bf16.msrb.mxu1 %v12219_v11  ;;  %v5048_v32 = vadd.f32 %v5047_v29, %v5035_v24  ;;  %v5060_v33 = vpop.f32.mrf.mxu3  ;;  %v5036_v40 = vpop.f32.mrf.mxu1  ;;  %v12250_v11 = vld [vmem:[%s12633_s21 + $0xe68] sm:$0xff]  ;;  %v12256_v24 = vld [vmem:[%s12633_s21 + $0xe98] sm:$0xff]  ;;  %v398_v36 = vld.sshfl [vmem:[#allocation1 + $0x10] sm:$0xff pattern:$0x73625140] }
 0x1b5   : > { %6123 = vmatpush.bf16.msrb.mxu2 %v12227_v12  ;;  %v12258_v12 = vld [vmem:[%s12633_s21 + $0xea8] sm:$0xff]  ;;  %v399_v40 = vld.sshfl [vmem:[#allocation1 + $0x18] sm:$0xff pattern:$0x73625140] }
 0x1b6   : > { %6136 = vmatpush.bf16.msrb.mxu3 %v12235_v13  ;;  %v13122_v38 = vadd.f32 %v5060_v33, %v5048_v32  ;;  %v12266_v13 = vld [vmem:[%s12633_s21 + $0xee8] sm:$0xff] }
 0x1b7   : > { %6098 = vmatpush.bf16.msrb.mxu0 %v12210_v14  ;;  %v397_v32 = vld.sshfl [vmem:[#allocation1 + $0x8] sm:$0xff pattern:$0x73625140] }
 0x1b8   : > { %6111 = vmatpush.bf16.msrb.mxu1 %v12218_v15  ;;  %v12241_v15 = vld [vmem:[%s12633_s21 + $0xe20] sm:$0xff] }
 0x1b9   : > { %6124 = vmatpush.bf16.msrb.mxu2 %v12226_v16  ;;  %v12249_v16 = vld [vmem:[%s12633_s21 + $0xe60] sm:$0xff] }
 0x1ba   : > { %6137 = vmatpush.bf16.msrb.mxu3 %v12234_v17 }
 0x1bb   : > { %6099 = vmatpush.bf16.msrb.mxu0 %v12209_v19  ;;  %v5049_v51 = vpop.f32.mrf.mxu2  ;;  %v12257_v19 = vld [vmem:[%s12633_s21 + $0xea0] sm:$0xff] }
 0x1bc   : > { %6112 = vmatpush.bf16.msrb.mxu1 %v12217_v20  ;;  %v5062_v52 = vpop.f32.mrf.mxu3  ;;  %v12265_v20 = vld [vmem:[%s12633_s21 + $0xee0] sm:$0xff] }
 0x1bd   : > { %6125 = vmatpush.bf16.msrb.mxu2 %v12225_v22  ;;  %v12240_v22 = vld [vmem:[%s12633_s21 + $0xe18] sm:$0xff]  ;;  %v12245_v51 = vld [vmem:[%s12633_s21 + $0xe40] sm:$0xff] }
 0x1be   : > { %6138 = vmatpush.bf16.msrb.mxu3 %v12233_v23  ;;  %v12248_v23 = vld [vmem:[%s12633_s21 + $0xe58] sm:$0xff] }
 0x1bf   : > { %6100 = vmatpush.bf16.msrb.mxu0 %v12208_v25  ;;  %v12264_v25 = vld [vmem:[%s12633_s21 + $0xed8] sm:$0xff] }
 0x1c0   : > { %6113 = vmatpush.bf16.msrb.mxu1 %v12216_v26 }
 0x1c1   : > { %6126 = vmatpush.bf16.msrb.mxu2 %v12224_v27  ;;  %v12239_v27 = vld [vmem:[%s12633_s21 + $0xe10] sm:$0xff] }
 0x1c2   : > { %6139 = vmatpush.bf16.msrb.mxu3 %v12232_v28  ;;  %v12247_v28 = vld [vmem:[%s12633_s21 + $0xe50] sm:$0xff] }
 0x1c3   : > { %6101 = vmatpush.bf16.msrb.mxu0 %v12207_v30 }
 0x1c4   : > { %6114 = vmatpush.bf16.msrb.mxu1 %v12215_v31  ;;  %v396_v31 = vld.sshfl [vmem:[#allocation1] sm:$0xff pattern:$0x73625140] }
 0x1c5   : > { %6127 = vmatpush.bf16.msrb.mxu2 %v12223_v37  ;;  %v568_v44 = vpack.c.bf16 %v397_v32, %v396_v31 }
 0x1c6   : > { %6140 = vmatpush.bf16.msrb.mxu3 %v12231_v43  ;;  %v12246_v43 = vld [vmem:[%s12633_s21 + $0xe48] sm:$0xff] }
 0x1c7   : > { %6102 = vmatpush.bf16.msrb.mxu0 %v12206_v45  ;;  %v569_v45 = vpack.c.bf16 %v399_v40, %v398_v36  ;;  %v5236_v52 = vunpack.c.l.b16 %v568_v44  ;;  %v5237_v56 = vunpack.c.h.b16 %v568_v44 }
 0x1c8   : > { %6115 = vmatpush.bf16.msrb.mxu1 %v12214_v46  ;;  %v12254_v46 = vld [vmem:[%s12633_s21 + $0xe88] sm:$0xff] }
 0x1c9   : > { %6128 = vmatpush.bf16.msrb.mxu2 %v12222_v49 }
 0x1ca   : > { %6141 = vmatpush.bf16.msrb.mxu3 %v12230_v50  ;;  %v12237_v50 = vld [vmem:[%s12633_s21 + $0xe00] sm:$0xff] }
 0x1cb   : > { %6103 = vmatpush.bf16.msrb.mxu0 %v12205_v53  ;;  %v5073_v14 = vpop.f32.mrf.mxu0  ;;  %v5238_v53 = vunpack.c.l.b16 %v569_v45 }
 0x1cc   : > { %6116 = vmatpush.bf16.msrb.mxu1 %v12213_v54  ;;  %v5074_v17 = vadd.f32 %v5073_v14, %v13122_v38  ;;  %v5086_v18 = vpop.f32.mrf.mxu1  ;;  %v290_v38 = vld [vmem:[%s12657_s25 + $0x78] sm:$0xff]  ;;  %v12253_v54 = vld [vmem:[%s12633_s21 + $0xe80] sm:$0xff] }
 0x1cd   : > { %6129 = vmatpush.bf16.msrb.mxu2 %v12221_v57  ;;  %395 = vst [vmem:[#allocation1 + $0x20] ss:$4 sm:$0xff] %v290_v38  ;;  %v5239_v57 = vunpack.c.h.b16 %v569_v45  ;;  %v12281_v14 = vld [vmem:[%s12633_s21 + $0xf60] sm:$0xff]  ;;  %v12278_v38 = vld [vmem:[%s12633_s21 + $0xf48] sm:$0xff] }
 0x1ce   : > { %6142 = vmatpush.bf16.msrb.mxu3 %v12229_v58  ;;  %6104 = vmatmul.bf16.vlgmr.msrb.gmra.mxu0 %v5248_v3  ;;  %v5087_v21 = vadd.f32 %v5086_v18, %v5074_v17  ;;  %v12276_v58 = vld [vmem:[%s12633_s21 + $0xf38] sm:$0xff]  ;;  %v12275_v3 = vld [vmem:[%s12633_s21 + $0xf30] sm:$0xff]  ;;  %v12297_v17 = vld [vmem:[%s12633_s21 + $0xfe0] sm:$0xff] }
 0x1cf   : > { %6148 = vmatpush.bf16.msra.mxu0 %v12244_v62  ;;  %6117 = vmatmul.bf16.vlgmr.msrb.gmra.mxu1 %v5249_v5  ;;  %v12300_v62 = vld [vmem:[%s12633_s21 + $0xff8] sm:$0xff]  ;;  %v12291_v5 = vld [vmem:[%s12633_s21 + $0xfb0] sm:$0xff] }
 0x1d0   : > { %6161 = vmatpush.bf16.msra.mxu1 %v12252_v63  ;;  %6130 = vmatmul.bf16.vlgmr.msrb.gmra.mxu2 %v5250_v2  ;;  %v5252_v63 = vpack.c.b16 %v5236_v52, %v5236_v52  ;;  %v5255_v2 = vpack.c.b16 %v5239_v57, %v5239_v57  ;;  %v12332_v57 = vld [vmem:[%s12633_s21 + $0x10f8] sm:$0xff] }
 0x1d1   : > { %6174 = vmatpush.bf16.msra.mxu2 %v12260_v0  ;;  %6143 = vmatmul.bf16.vlgmr.msrb.gmra.mxu3 %v5251_v4  ;;  %v5254_v0 = vpack.c.b16 %v5238_v53, %v5238_v53  ;;  %v12283_v4 = vld [vmem:[%s12633_s21 + $0xf70] sm:$0xff] }
 0x1d2   : > { %6187 = vmatpush.bf16.msra.mxu3 %v12268_v1  ;;  %v5253_v1 = vpack.c.b16 %v5237_v56, %v5237_v56  ;;  %v12324_v56 = vld [vmem:[%s12633_s21 + $0x10b8] sm:$0xff] }
 0x1d3   : > { %6149 = vmatpush.bf16.msra.mxu0 %v12243_v6  ;;  %v5099_v26 = vpop.f32.mrf.mxu2  ;;  %v5075_v33 = vpop.f32.mrf.mxu0  ;;  %v12299_v6 = vld [vmem:[%s12633_s21 + $0xff0] sm:$0xff] }
 0x1d4   : > { %6162 = vmatpush.bf16.msra.mxu1 %v12251_v7  ;;  %v5100_v29 = vadd.f32 %v5099_v26, %v5087_v21  ;;  %v5112_v30 = vpop.f32.mrf.mxu3  ;;  %v5088_v37 = vpop.f32.mrf.mxu1  ;;  %v12274_v7 = vld [vmem:[%s12633_s21 + $0xf28] sm:$0xff]  ;;  %v12288_v21 = vld [vmem:[%s12633_s21 + $0xf98] sm:$0xff]  ;;  %v12271_v26 = vld [vmem:[%s12633_s21 + $0xf10] sm:$0xff] }
 0x1d5   : > { %6175 = vmatpush.bf16.msra.mxu2 %v12259_v8  ;;  %v12282_v8 = vld [vmem:[%s12633_s21 + $0xf68] sm:$0xff]  ;;  %v400_v32 = vld.sshfl [vmem:[#allocation1 + $0x20] sm:$0xff pattern:$0x73625140] }
 0x1d6   : > { %6188 = vmatpush.bf16.msra.mxu3 %v12267_v9  ;;  %v13158_v35 = vadd.f32 %v5112_v30, %v5100_v29  ;;  %v12290_v9 = vld [vmem:[%s12633_s21 + $0xfa8] sm:$0xff]  ;;  %v12295_v29 = vld [vmem:[%s12633_s21 + $0xfd0] sm:$0xff]  ;;  %v403_v36 = vld.sshfl [vmem:[#allocation1 + $0x38] sm:$0xff pattern:$0x73625140] }
 0x1d7   : > { %6150 = vmatpush.bf16.msra.mxu0 %v12242_v10  ;;  %v12298_v10 = vld [vmem:[%s12633_s21 + $0xfe8] sm:$0xff] }
 0x1d8   : > { %6163 = vmatpush.bf16.msra.mxu1 %v12250_v11  ;;  %v401_v33 = vld.sshfl [vmem:[#allocation1 + $0x28] sm:$0xff pattern:$0x73625140] }
 0x1d9   : > { %6176 = vmatpush.bf16.msra.mxu2 %v12258_v12  ;;  %v12270_v37 = vld [vmem:[%s12633_s21 + $0xf08] sm:$0xff] }
 0x1da   : > { %6189 = vmatpush.bf16.msra.mxu3 %v12266_v13  ;;  %v12273_v13 = vld [vmem:[%s12633_s21 + $0xf20] sm:$0xff] }
 0x1db   : > { %6151 = vmatpush.bf16.msra.mxu0 %v12241_v15  ;;  %v5101_v48 = vpop.f32.mrf.mxu2 }
 0x1dc   : > { %6164 = vmatpush.bf16.msra.mxu1 %v12249_v16  ;;  %v5114_v49 = vpop.f32.mrf.mxu3  ;;  %v12289_v16 = vld [vmem:[%s12633_s21 + $0xfa0] sm:$0xff] }
 0x1dd   : > { %6177 = vmatpush.bf16.msra.mxu2 %v12257_v19  ;;  %v12272_v19 = vld [vmem:[%s12633_s21 + $0xf18] sm:$0xff] }
 0x1de   : > { %6190 = vmatpush.bf16.msra.mxu3 %v12265_v20  ;;  %v12280_v20 = vld [vmem:[%s12633_s21 + $0xf58] sm:$0xff] }
 0x1df   : > { %6152 = vmatpush.bf16.msra.mxu0 %v12240_v22  ;;  %v12296_v22 = vld [vmem:[%s12633_s21 + $0xfd8] sm:$0xff] }
 0x1e0   : > { %6165 = vmatpush.bf16.msra.mxu1 %v12248_v23 }
 0x1e1   : > { %6178 = vmatpush.bf16.msra.mxu2 %v12256_v24 }
 0x1e2   : > { %6191 = vmatpush.bf16.msra.mxu3 %v12264_v25 }
 0x1e3   : > { %6153 = vmatpush.bf16.msra.mxu0 %v12239_v27  ;;  %v12279_v27 = vld [vmem:[%s12633_s21 + $0xf50] sm:$0xff] }
 0x1e4   : > { %6166 = vmatpush.bf16.msra.mxu1 %v12247_v28  ;;  %v12287_v28 = vld [vmem:[%s12633_s21 + $0xf90] sm:$0xff] }
 0x1e5   : > { %6179 = vmatpush.bf16.msra.mxu2 %v12255_v34 }
 0x1e6   : > { %6192 = vmatpush.bf16.msra.mxu3 %v12263_v39  ;;  %v570_v39 = vpack.c.bf16 %v401_v33, %v400_v32  ;;  %v12319_v33 = vld [vmem:[%s12633_s21 + $0x1090] sm:$0xff] }
 0x1e7   : > { %6154 = vmatpush.bf16.msra.mxu0 %v12238_v41  ;;  %v12286_v41 = vld [vmem:[%s12633_s21 + $0xf88] sm:$0xff] }
 0x1e8   : > { %6167 = vmatpush.bf16.msra.mxu1 %v12246_v43  ;;  %v12294_v43 = vld [vmem:[%s12633_s21 + $0xfc8] sm:$0xff]  ;;  %v5240_v48 = vunpack.c.l.b16 %v570_v39  ;;  %v5241_v52 = vunpack.c.h.b16 %v570_v39 }
 0x1e9   : > { %6180 = vmatpush.bf16.msra.mxu2 %v12254_v46  ;;  %v12269_v46 = vld [vmem:[%s12633_s21 + $0xf00] sm:$0xff]  ;;  %v292_v39 = vld [vmem:[%s12657_s25 + $0x88] sm:$0xff] }
 0x1ea   : > { %6193 = vmatpush.bf16.msra.mxu3 %v12262_v47  ;;  %v12277_v47 = vld [vmem:[%s12633_s21 + $0xf40] sm:$0xff] }
 0x1eb   : > { %6155 = vmatpush.bf16.msra.mxu0 %v12237_v50  ;;  %v5125_v11 = vpop.f32.mrf.mxu0  ;;  %v12285_v50 = vld [vmem:[%s12633_s21 + $0xf80] sm:$0xff] }
 0x1ec   : > { %6168 = vmatpush.bf16.msra.mxu1 %v12245_v51  ;;  %v5126_v12 = vadd.f32 %v5125_v11, %v13158_v35  ;;  %v5138_v15 = vpop.f32.mrf.mxu1  ;;  %v402_v35 = vld.sshfl [vmem:[#allocation1 + $0x30] sm:$0xff pattern:$0x73625140]  ;;  %v12293_v51 = vld [vmem:[%s12633_s21 + $0xfc0] sm:$0xff] }
 0x1ed   : > { %6181 = vmatpush.bf16.msra.mxu2 %v12253_v54  ;;  %v571_v40 = vpack.c.bf16 %v403_v36, %v402_v35  ;;  %v12308_v54 = vld [vmem:[%s12633_s21 + $0x1038] sm:$0xff]  ;;  %v12313_v11 = vld [vmem:[%s12633_s21 + $0x1060] sm:$0xff]  ;;  %v12302_v35 = vld [vmem:[%s12633_s21 + $0x1008] sm:$0xff]  ;;  %405 = vst [vmem:[#allocation1 + $0x20] ss:$4 sm:$0xff] %v292_v39 }
 0x1ee   : > { %6194 = vmatpush.bf16.msra.mxu3 %v12261_v55  ;;  %6156 = vmatmul.bf16.vlgmr.msra.gmra.mxu0 %v5252_v63  ;;  %v5139_v18 = vadd.f32 %v5138_v15, %v5126_v12  ;;  %v12316_v55 = vld [vmem:[%s12633_s21 + $0x1078] sm:$0xff]  ;;  %v12307_v63 = vld [vmem:[%s12633_s21 + $0x1030] sm:$0xff]  ;;  %v12310_v36 = vld [vmem:[%s12633_s21 + $0x1048] sm:$0xff] }
 0x1ef   : > { %6200 = vmatpush.bf16.msrb.mxu0 %v12276_v58  ;;  %6169 = vmatmul.bf16.vlgmr.msra.gmra.mxu1 %v5253_v1  ;;  %v5242_v49 = vunpack.c.l.b16 %v571_v40  ;;  %v5243_v53 = vunpack.c.h.b16 %v571_v40  ;;  %v5256_v58 = vpack.c.b16 %v5240_v48, %v5240_v48  ;;  %v12323_v1 = vld [vmem:[%s12633_s21 + $0x10b0] sm:$0xff]  ;;  %v12318_v40 = vld [vmem:[%s12633_s21 + $0x1088] sm:$0xff]  ;;  %v12333_v39 = vld [vmem:[%s12633_s21 + $0x1100] sm:$0xff] }
 0x1f0   : > { %6213 = vmatpush.bf16.msrb.mxu1 %v12284_v59  ;;  %6182 = vmatmul.bf16.vlgmr.msra.gmra.mxu2 %v5254_v0  ;;  %v12315_v0 = vld [vmem:[%s12633_s21 + $0x1070] sm:$0xff] }
 0x1f1   : > { %6226 = vmatpush.bf16.msrb.mxu2 %v12292_v61  ;;  %6195 = vmatmul.bf16.vlgmr.msra.gmra.mxu3 %v5255_v2  ;;  %v5258_v59 = vpack.c.b16 %v5242_v49, %v5242_v49  ;;  %v5257_v61 = vpack.c.b16 %v5241_v52, %v5241_v52  ;;  %v12331_v2 = vld [vmem:[%s12633_s21 + $0x10f0] sm:$0xff]  ;;  %v12317_v49 = vld [vmem:[%s12633_s21 + $0x1080] sm:$0xff] }
 0x1f2   : > { %6239 = vmatpush.bf16.msrb.mxu3 %v12300_v62  ;;  %v5259_v62 = vpack.c.b16 %v5243_v53, %v5243_v53  ;;  %v12340_v53 = vld [vmem:[%s12633_s21 + $0x1138] sm:$0xff] }
 0x1f3   : > { %6201 = vmatpush.bf16.msrb.mxu0 %v12275_v3  ;;  %v5151_v23 = vpop.f32.mrf.mxu2  ;;  %v5127_v30 = vpop.f32.mrf.mxu0  ;;  %v291_v3 = vld [vmem:[%s12657_s25 + $0x80] sm:$0xff] }
 0x1f4   : > { %6214 = vmatpush.bf16.msrb.mxu1 %v12283_v4  ;;  %v5152_v24 = vadd.f32 %v5151_v23, %v5139_v18  ;;  %v5164_v25 = vpop.f32.mrf.mxu3  ;;  %v5140_v34 = vpop.f32.mrf.mxu1  ;;  %v12306_v4 = vld [vmem:[%s12633_s21 + $0x1028] sm:$0xff]  ;;  %404 = vst [vmem:[#allocation1] ss:$4 sm:$0xff] %v291_v3  ;;  %v12312_v18 = vld [vmem:[%s12633_s21 + $0x1058] sm:$0xff]  ;;  %v12303_v30 = vld [vmem:[%s12633_s21 + $0x1010] sm:$0xff] }
 0x1f5   : > { %6227 = vmatpush.bf16.msrb.mxu2 %v12291_v5  ;;  %v12314_v5 = vld [vmem:[%s12633_s21 + $0x1068] sm:$0xff]  ;;  %v12327_v34 = vld [vmem:[%s12633_s21 + $0x10d0] sm:$0xff]  ;;  %v410_v3 = vld.sshfl [vmem:[#allocation1 + $0x20] sm:$0xff pattern:$0x73625140] }
 0x1f6   : > { %6240 = vmatpush.bf16.msrb.mxu3 %v12299_v6  ;;  %v13195_v31 = vadd.f32 %v5164_v25, %v5152_v24  ;;  %v12322_v6 = vld [vmem:[%s12633_s21 + $0x10a8] sm:$0xff] }
 0x1f7   : > { %6202 = vmatpush.bf16.msrb.mxu0 %v12274_v7  ;;  %v12330_v7 = vld [vmem:[%s12633_s21 + $0x10e8] sm:$0xff] }
 0x1f8   : > { %6215 = vmatpush.bf16.msrb.mxu1 %v12282_v8 }
 0x1f9   : > { %6228 = vmatpush.bf16.msrb.mxu2 %v12290_v9 }
 0x1fa   : > { %6241 = vmatpush.bf16.msrb.mxu3 %v12298_v10  ;;  %v12305_v10 = vld [vmem:[%s12633_s21 + $0x1020] sm:$0xff] }
 0x1fb   : > { %6203 = vmatpush.bf16.msrb.mxu0 %v12273_v13  ;;  %v5153_v44 = vpop.f32.mrf.mxu2  ;;  %v12321_v13 = vld [vmem:[%s12633_s21 + $0x10a0] sm:$0xff]  ;;  %v409_v23 = vld.sshfl [vmem:[#allocation1 + $0x18] sm:$0xff pattern:$0x73625140] }
 0x1fc   : > { %6216 = vmatpush.bf16.msrb.mxu1 %v12281_v14  ;;  %v5166_v45 = vpop.f32.mrf.mxu3  ;;  %v12329_v14 = vld [vmem:[%s12633_s21 + $0x10e0] sm:$0xff] }
 0x1fd   : > { %6229 = vmatpush.bf16.msrb.mxu2 %v12289_v16  ;;  %v293_v16 = vld [vmem:[%s12657_s25 + $0x90] sm:$0xff]  ;;  %v12301_v45 = vld [vmem:[%s12633_s21 + $0x1000] sm:$0xff] }
 0x1fe   : > { %6242 = vmatpush.bf16.msrb.mxu3 %v12297_v17  ;;  %v12304_v17 = vld [vmem:[%s12633_s21 + $0x1018] sm:$0xff] }
 0x1ff   : > { %6204 = vmatpush.bf16.msrb.mxu0 %v12272_v19  ;;  %v12320_v19 = vld [vmem:[%s12633_s21 + $0x1098] sm:$0xff] }
 0x200   : > { %6217 = vmatpush.bf16.msrb.mxu1 %v12280_v20  ;;  %v12328_v20 = vld [vmem:[%s12633_s21 + $0x10d8] sm:$0xff] }
 0x201   : > { %6230 = vmatpush.bf16.msrb.mxu2 %v12288_v21 }
 0x202   : > { %6243 = vmatpush.bf16.msrb.mxu3 %v12296_v22  ;;  %v408_v22 = vld.sshfl [vmem:[#allocation1 + $0x10] sm:$0xff pattern:$0x73625140] }
 0x203   : > { %6205 = vmatpush.bf16.msrb.mxu0 %v12271_v26  ;;  %v406_v26 = vld.sshfl [vmem:[#allocation1] sm:$0xff pattern:$0x73625140] }
 0x204   : > { %6218 = vmatpush.bf16.msrb.mxu1 %v12279_v27  ;;  %v407_v27 = vld.sshfl [vmem:[#allocation1 + $0x8] sm:$0xff pattern:$0x73625140] }
 0x205   : > { %6231 = vmatpush.bf16.msrb.mxu2 %v12287_v28  ;;  %414 = vst [vmem:[#allocation1] ss:$4 sm:$0xff] %v293_v16  ;;  %v12361_v16 = vld [vmem:[%s12633_s21 + $0x11e0] sm:$0xff] }
 0x206   : > { %6244 = vmatpush.bf16.msrb.mxu3 %v12295_v29 }
 0x207   : > { %6206 = vmatpush.bf16.msrb.mxu0 %v12270_v37  ;;  %v573_v37 = vpack.c.bf16 %v409_v23, %v408_v22 }
 0x208   : > { %6219 = vmatpush.bf16.msrb.mxu1 %v12278_v38  ;;  %v572_v38 = vpack.c.bf16 %v407_v27, %v406_v26  ;;  %v12351_v27 = vld [vmem:[%s12633_s21 + $0x1190] sm:$0xff] }
 0x209   : > { %6232 = vmatpush.bf16.msrb.mxu2 %v12286_v41  ;;  %v12326_v41 = vld [vmem:[%s12633_s21 + $0x10c8] sm:$0xff] }
 0x20a   : > { %6245 = vmatpush.bf16.msrb.mxu3 %v12294_v43  ;;  %v6260_v48 = vunpack.c.l.b16 %v572_v38  ;;  %v6261_v52 = vunpack.c.h.b16 %v572_v38  ;;  %v295_v38 = vld [vmem:[%s12657_s25 + $0xa0] sm:$0xff] }
 0x20b   : > { %6207 = vmatpush.bf16.msrb.mxu0 %v12269_v46  ;;  %v5177_v8 = vpop.f32.mrf.mxu0  ;;  %v12309_v46 = vld [vmem:[%s12633_s21 + $0x1040] sm:$0xff] }
 0x20c   : > { %6220 = vmatpush.bf16.msrb.mxu1 %v12277_v47  ;;  %v5178_v9 = vadd.f32 %v5177_v8, %v13195_v31  ;;  %v5190_v12 = vpop.f32.mrf.mxu1  ;;  %v12311_v31 = vld [vmem:[%s12633_s21 + $0x1050] sm:$0xff]  ;;  %v6262_v47 = vunpack.c.l.b16 %v573_v37  ;;  %v12346_v8 = vld [vmem:[%s12633_s21 + $0x1168] sm:$0xff] }
 0x20d   : > { %6233 = vmatpush.bf16.msrb.mxu2 %v12285_v50  ;;  %v12325_v50 = vld [vmem:[%s12633_s21 + $0x10c0] sm:$0xff] }
 0x20e   : > { %6246 = vmatpush.bf16.msrb.mxu3 %v12293_v51  ;;  %6208 = vmatmul.bf16.vlgmr.msrb.gmra.mxu0 %v5256_v58  ;;  %v5191_v15 = vadd.f32 %v5190_v12, %v5178_v9  ;;  %v6263_v51 = vunpack.c.h.b16 %v573_v37  ;;  %v12339_v58 = vld [vmem:[%s12633_s21 + $0x1130] sm:$0xff]  ;;  %v12354_v9 = vld [vmem:[%s12633_s21 + $0x11a8] sm:$0xff]  ;;  %v12337_v12 = vld [vmem:[%s12633_s21 + $0x1120] sm:$0xff] }
 0x20f   : > { %7076 = vmatpush.bf16.msra.mxu0 %v12308_v54  ;;  %6221 = vmatmul.bf16.vlgmr.msrb.gmra.mxu1 %v5257_v61  ;;  %v12348_v54 = vld [vmem:[%s12633_s21 + $0x1178] sm:$0xff]  ;;  %v6278_v61 = vpack.c.b16 %v6262_v47, %v6262_v47 }
 0x210   : > { %7089 = vmatpush.bf16.msra.mxu1 %v12316_v55  ;;  %6234 = vmatmul.bf16.vlgmr.msrb.gmra.mxu2 %v5258_v59  ;;  %v12356_v55 = vld [vmem:[%s12633_s21 + $0x11b8] sm:$0xff]  ;;  %v12347_v59 = vld [vmem:[%s12633_s21 + $0x1170] sm:$0xff] }
 0x211   : > { %7102 = vmatpush.bf16.msra.mxu2 %v12324_v56  ;;  %6247 = vmatmul.bf16.vlgmr.msrb.gmra.mxu3 %v5259_v62  ;;  %v12364_v56 = vld [vmem:[%s12633_s21 + $0x11f8] sm:$0xff]  ;;  %v6276_v62 = vpack.c.b16 %v6260_v48, %v6260_v48 }
 0x212   : > { %7115 = vmatpush.bf16.msra.mxu3 %v12332_v57  ;;  %v294_v57 = vld [vmem:[%s12657_s25 + $0x98] sm:$0xff] }
 0x213   : > { %7077 = vmatpush.bf16.msra.mxu0 %v12307_v63  ;;  %v5203_v21 = vpop.f32.mrf.mxu2  ;;  %v5179_v28 = vpop.f32.mrf.mxu0  ;;  %v6279_v63 = vpack.c.b16 %v6263_v51, %v6263_v51  ;;  %v12396_v51 = vld [vmem:[%s12633_s21 + $0x12f8] sm:$0xff] }
 0x214   : > { %7090 = vmatpush.bf16.msra.mxu1 %v12315_v0  ;;  %v5204_v24 = vadd.f32 %v5203_v21, %v5191_v15  ;;  %v5216_v25 = vpop.f32.mrf.mxu3  ;;  %v5192_v32 = vpop.f32.mrf.mxu1  ;;  %v6277_v0 = vpack.c.b16 %v6261_v52, %v6261_v52  ;;  %v12353_v15 = vld [vmem:[%s12633_s21 + $0x11a0] sm:$0xff]  ;;  %v12359_v28 = vld [vmem:[%s12633_s21 + $0x11d0] sm:$0xff] }
 0x215   : > { %7103 = vmatpush.bf16.msra.mxu2 %v12323_v1  ;;  %v412_v1 = vld.sshfl [vmem:[#allocation1 + $0x30] sm:$0xff pattern:$0x73625140] }
 0x216   : > { %7116 = vmatpush.bf16.msra.mxu3 %v12331_v2  ;;  %v13228_v29 = vadd.f32 %v5216_v25, %v5204_v24  ;;  %v413_v2 = vld.sshfl [vmem:[#allocation1 + $0x38] sm:$0xff pattern:$0x73625140]  ;;  %v12335_v24 = vld [vmem:[%s12633_s21 + $0x1110] sm:$0xff] }
 0x217   : > { %7078 = vmatpush.bf16.msra.mxu0 %v12306_v4  ;;  %v411_v4 = vld.sshfl [vmem:[#allocation1 + $0x28] sm:$0xff pattern:$0x73625140]  ;;  %v12343_v25 = vld [vmem:[%s12633_s21 + $0x1150] sm:$0xff]  ;;  %v575_v32 = vpack.c.bf16 %v413_v2, %v412_v1 }
 0x218   : > { %7091 = vmatpush.bf16.msra.mxu1 %v12314_v5  ;;  %v12355_v5 = vld [vmem:[%s12633_s21 + $0x11b0] sm:$0xff]  ;;  %415 = vst [vmem:[#allocation1 + $0x20] ss:$4 sm:$0xff] %v294_v57 }
 0x219   : > { %7104 = vmatpush.bf16.msra.mxu2 %v12322_v6  ;;  %v12363_v6 = vld [vmem:[%s12633_s21 + $0x11f0] sm:$0xff]  ;;  %v6267_v47 = vunpack.c.h.b16 %v575_v32 }
 0x21a   : > { %7117 = vmatpush.bf16.msra.mxu3 %v12330_v7  ;;  %v12338_v7 = vld [vmem:[%s12633_s21 + $0x1128] sm:$0xff]  ;;  %v13287_v57 = vld.sshfl [vmem:[#allocation1 + $0x10] sm:$0xff pattern:$0x73625140] }
 0x21b   : > { %7079 = vmatpush.bf16.msra.mxu0 %v12305_v10  ;;  %v5205_v43 = vpop.f32.mrf.mxu2  ;;  %v12362_v10 = vld [vmem:[%s12633_s21 + $0x11e8] sm:$0xff]  ;;  %v12387_v1 = vld [vmem:[%s12633_s21 + $0x12b0] sm:$0xff] }
 0x21c   : > { %7092 = vmatpush.bf16.msra.mxu1 %v12313_v11  ;;  %v5218_v44 = vpop.f32.mrf.mxu3  ;;  %v12395_v2 = vld [vmem:[%s12633_s21 + $0x12f0] sm:$0xff] }
 0x21d   : > { %7105 = vmatpush.bf16.msra.mxu2 %v12321_v13  ;;  %v12345_v13 = vld [vmem:[%s12633_s21 + $0x1160] sm:$0xff] }
 0x21e   : > { %7118 = vmatpush.bf16.msra.mxu3 %v12329_v14  ;;  %v12349_v44 = vld [vmem:[%s12633_s21 + $0x1180] sm:$0xff] }
 0x21f   : > { %7080 = vmatpush.bf16.msra.mxu0 %v12304_v17  ;;  %v12336_v17 = vld [vmem:[%s12633_s21 + $0x1118] sm:$0xff] }
 0x220   : > { %7093 = vmatpush.bf16.msra.mxu1 %v12312_v18  ;;  %v12344_v18 = vld [vmem:[%s12633_s21 + $0x1158] sm:$0xff] }
 0x221   : > { %7106 = vmatpush.bf16.msra.mxu2 %v12320_v19  ;;  %v12352_v19 = vld [vmem:[%s12633_s21 + $0x1198] sm:$0xff] }
 0x222   : > { %7119 = vmatpush.bf16.msra.mxu3 %v12328_v20  ;;  %v12360_v20 = vld [vmem:[%s12633_s21 + $0x11d8] sm:$0xff] }
 0x223   : > { %7081 = vmatpush.bf16.msra.mxu0 %v12303_v30  ;;  %v12334_v30 = vld [vmem:[%s12633_s21 + $0x1108] sm:$0xff] }
 0x224   : > { %7094 = vmatpush.bf16.msra.mxu1 %v12311_v31  ;;  %v12342_v31 = vld [vmem:[%s12633_s21 + $0x1148] sm:$0xff] }
 0x225   : > { %7107 = vmatpush.bf16.msra.mxu2 %v12319_v33  ;;  %v574_v33 = vpack.c.bf16 %v411_v4, %v410_v3  ;;  %v12370_v4 = vld [vmem:[%s12633_s21 + $0x1228] sm:$0xff] }
 0x226   : > { %7120 = vmatpush.bf16.msra.mxu3 %v12327_v34  ;;  %v12350_v34 = vld [vmem:[%s12633_s21 + $0x1188] sm:$0xff] }
 0x227   : > { %7082 = vmatpush.bf16.msra.mxu0 %v12302_v35  ;;  %v12358_v35 = vld [vmem:[%s12633_s21 + $0x11c8] sm:$0xff]  ;;  %v6264_v43 = vunpack.c.l.b16 %v574_v33  ;;  %v6265_v48 = vunpack.c.h.b16 %v574_v33 }
 0x228   : > { %7095 = vmatpush.bf16.msra.mxu1 %v12310_v36 }
 0x229   : > { %7108 = vmatpush.bf16.msra.mxu2 %v12318_v40  ;;  %v12341_v40 = vld [vmem:[%s12633_s21 + $0x1140] sm:$0xff] }
 0x22a   : > { %7121 = vmatpush.bf16.msra.mxu3 %v12326_v41  ;;  %v6266_v41 = vunpack.c.l.b16 %v575_v32  ;;  %v12374_v32 = vld [vmem:[%s12633_s21 + $0x1248] sm:$0xff] }
 0x22b   : > { %7083 = vmatpush.bf16.msra.mxu0 %v12301_v45  ;;  %v6053_v11 = vpop.f32.mrf.mxu0  ;;  %v12357_v45 = vld [vmem:[%s12633_s21 + $0x11c0] sm:$0xff] }
 0x22c   : > { %7096 = vmatpush.bf16.msra.mxu1 %v12309_v46  ;;  %v6066_v14 = vpop.f32.mrf.mxu1  ;;  %v12372_v46 = vld [vmem:[%s12633_s21 + $0x1238] sm:$0xff] }
 0x22d   : > { %7109 = vmatpush.bf16.msra.mxu2 %v12317_v49  ;;  %v12380_v49 = vld [vmem:[%s12633_s21 + $0x1278] sm:$0xff]  ;;  %v6067_v52 = vadd.f32 %v6066_v14, %v6053_v11  ;;  %v12393_v14 = vld [vmem:[%s12633_s21 + $0x12e0] sm:$0xff] }
 0x22e   : > { %7122 = vmatpush.bf16.msra.mxu3 %v12325_v50  ;;  %7084 = vmatmul.bf16.vlgmr.msra.gmra.mxu0 %v6276_v62  ;;  %v12388_v50 = vld [vmem:[%s12633_s21 + $0x12b8] sm:$0xff]  ;;  %v12371_v62 = vld [vmem:[%s12633_s21 + $0x1230] sm:$0xff] }
 0x22f   : > { %7128 = vmatpush.bf16.msrb.mxu0 %v12340_v53  ;;  %7097 = vmatmul.bf16.vlgmr.msra.gmra.mxu1 %v6277_v0  ;;  %v13283_v53 = vld.sshfl [vmem:[#allocation1] sm:$0xff pattern:$0x73625140] }
 0x230   : > { %7141 = vmatpush.bf16.msrb.mxu1 %v12348_v54  ;;  %7110 = vmatmul.bf16.vlgmr.msra.gmra.mxu2 %v6278_v61  ;;  %v13285_v54 = vld.sshfl [vmem:[#allocation1 + $0x8] sm:$0xff pattern:$0x73625140]  ;;  %v6281_v61 = vpack.c.b16 %v6265_v48, %v6265_v48 }
 0x231   : > { %7154 = vmatpush.bf16.msrb.mxu2 %v12356_v55  ;;  %7123 = vmatmul.bf16.vlgmr.msra.gmra.mxu3 %v6279_v63  ;;  %v6282_v55 = vpack.c.b16 %v6266_v41, %v6266_v41  ;;  %v12379_v63 = vld [vmem:[%s12633_s21 + $0x1270] sm:$0xff]  ;;  %v576_v33 = vpack.c.bf16 %v13285_v54, %v13283_v53  ;;  %v12373_v41 = vld [vmem:[%s12633_s21 + $0x1240] sm:$0xff]  ;;  %v13333_v54 = vld.sshfl [vmem:[#allocation1 + $0x28] sm:$0xff pattern:$0x73625140] }
 0x232   : > { %7167 = vmatpush.bf16.msrb.mxu3 %v12364_v56  ;;  %v6280_v56 = vpack.c.b16 %v6264_v43, %v6264_v43  ;;  %v13331_v53 = vld.sshfl [vmem:[#allocation1 + $0x20] sm:$0xff pattern:$0x73625140] }
 0x233   : > { %7129 = vmatpush.bf16.msrb.mxu0 %v12339_v58  ;;  %v6079_v21 = vpop.f32.mrf.mxu2  ;;  %v6055_v23 = vpop.f32.mrf.mxu0  ;;  %v13289_v58 = vld.sshfl [vmem:[#allocation1 + $0x18] sm:$0xff pattern:$0x73625140]  ;;  %v6268_v43 = vunpack.c.l.b16 %v576_v33  ;;  %v6269_v48 = vunpack.c.h.b16 %v576_v33  ;;  %v12414_v33 = vld [vmem:[%s12633_s21 + $0x1388] sm:$0xff] }
 0x234   : > { %7142 = vmatpush.bf16.msrb.mxu1 %v12347_v59  ;;  %v13264_v22 = vpop.f32.mrf.mxu3  ;;  %v6068_v26 = vpop.f32.mrf.mxu1  ;;  %v6283_v59 = vpack.c.b16 %v6267_v47, %v6267_v47  ;;  %424 = vst [vmem:[#allocation1] ss:$4 sm:$0xff] %v295_v38  ;;  %v6080_v0 = vadd.f32 %v6079_v21, %v6067_v52  ;;  %v12404_v47 = vld [vmem:[%s12633_s21 + $0x1338] sm:$0xff] }
 0x235   : > { %7155 = vmatpush.bf16.msrb.mxu2 %v12355_v5  ;;  %v12378_v5 = vld [vmem:[%s12633_s21 + $0x1268] sm:$0xff]  ;;  %v12428_v52 = vld [vmem:[%s12633_s21 + $0x13f8] sm:$0xff] }
 0x236   : > { %7168 = vmatpush.bf16.msrb.mxu3 %v12363_v6  ;;  %v6093_v3 = vadd.f32 %v13264_v22, %v6080_v0  ;;  %v12386_v6 = vld [vmem:[%s12633_s21 + $0x12a8] sm:$0xff]  ;;  %v12419_v0 = vld [vmem:[%s12633_s21 + $0x13b0] sm:$0xff] }
 0x237   : > { %7130 = vmatpush.bf16.msrb.mxu0 %v12338_v7  ;;  %v12394_v7 = vld [vmem:[%s12633_s21 + $0x12e8] sm:$0xff] }
 0x238   : > { %7143 = vmatpush.bf16.msrb.mxu1 %v12346_v8 }
 0x239   : > { %7156 = vmatpush.bf16.msrb.mxu2 %v12354_v9  ;;  %v12369_v9 = vld [vmem:[%s12633_s21 + $0x1220] sm:$0xff] }
 0x23a   : > { %7169 = vmatpush.bf16.msrb.mxu3 %v12362_v10  ;;  %v12377_v10 = vld [vmem:[%s12633_s21 + $0x1260] sm:$0xff] }
 0x23b   : > { %7131 = vmatpush.bf16.msrb.mxu0 %v12337_v12  ;;  %v6081_v36 = vpop.f32.mrf.mxu2 }
 0x23c   : > { %7144 = vmatpush.bf16.msrb.mxu1 %v12345_v13  ;;  %v6094_v37 = vpop.f32.mrf.mxu3  ;;  %v12385_v13 = vld [vmem:[%s12633_s21 + $0x12a0] sm:$0xff]  ;;  %v12390_v36 = vld [vmem:[%s12633_s21 + $0x12c8] sm:$0xff] }
 0x23d   : > { %7157 = vmatpush.bf16.msrb.mxu2 %v12353_v15 }
 0x23e   : > { %7170 = vmatpush.bf16.msrb.mxu3 %v12361_v16  ;;  %v12368_v16 = vld [vmem:[%s12633_s21 + $0x1218] sm:$0xff] }
 0x23f   : > { %7132 = vmatpush.bf16.msrb.mxu0 %v12336_v17  ;;  %v12376_v17 = vld [vmem:[%s12633_s21 + $0x1258] sm:$0xff] }
 0x240   : > { %7145 = vmatpush.bf16.msrb.mxu1 %v12344_v18  ;;  %v12384_v18 = vld [vmem:[%s12633_s21 + $0x1298] sm:$0xff] }
 0x241   : > { %7158 = vmatpush.bf16.msrb.mxu2 %v12352_v19  ;;  %v12392_v19 = vld [vmem:[%s12633_s21 + $0x12d8] sm:$0xff] }
 0x242   : > { %7171 = vmatpush.bf16.msrb.mxu3 %v12360_v20 }
 0x243   : > { %7133 = vmatpush.bf16.msrb.mxu0 %v12335_v24  ;;  %v12367_v24 = vld [vmem:[%s12633_s21 + $0x1210] sm:$0xff] }
 0x244   : > { %7146 = vmatpush.bf16.msrb.mxu1 %v12343_v25  ;;  %v12375_v25 = vld [vmem:[%s12633_s21 + $0x1250] sm:$0xff] }
 0x245   : > { %7159 = vmatpush.bf16.msrb.mxu2 %v12351_v27 }
 0x246   : > { %7172 = vmatpush.bf16.msrb.mxu3 %v12359_v28  ;;  %v12383_v28 = vld [vmem:[%s12633_s21 + $0x1290] sm:$0xff] }
 0x247   : > { %7134 = vmatpush.bf16.msrb.mxu0 %v12334_v30  ;;  %v12391_v30 = vld [vmem:[%s12633_s21 + $0x12d0] sm:$0xff] }
 0x248   : > { %7147 = vmatpush.bf16.msrb.mxu1 %v12342_v31  ;;  %v12366_v31 = vld [vmem:[%s12633_s21 + $0x1208] sm:$0xff] }
 0x249   : > { %7160 = vmatpush.bf16.msrb.mxu2 %v12350_v34  ;;  %v577_v34 = vpack.c.bf16 %v13289_v58, %v13287_v57  ;;  %v13335_v57 = vld.sshfl [vmem:[#allocation1 + $0x30] sm:$0xff pattern:$0x73625140]  ;;  %v13337_v58 = vld.sshfl [vmem:[#allocation1 + $0x38] sm:$0xff pattern:$0x73625140] }
 0x24a   : > { %7173 = vmatpush.bf16.msrb.mxu3 %v12358_v35  ;;  %v12382_v35 = vld [vmem:[%s12633_s21 + $0x1288] sm:$0xff] }
 0x24b   : > { %7135 = vmatpush.bf16.msrb.mxu0 %v12333_v39  ;;  %v6105_v8 = vpop.f32.mrf.mxu0  ;;  %v296_v39 = vld [vmem:[%s12657_s25 + $0xa8] sm:$0xff] }
 0x24c   : > { %7148 = vmatpush.bf16.msrb.mxu1 %v12341_v40  ;;  %v6106_v11 = vadd.f32 %v6105_v8, %v6093_v3  ;;  %v6118_v12 = vpop.f32.mrf.mxu1  ;;  %v12365_v40 = vld [vmem:[%s12633_s21 + $0x1200] sm:$0xff]  ;;  %425 = vst [vmem:[#allocation1 + $0x20] ss:$4 sm:$0xff] %v296_v39  ;;  %v12410_v3 = vld [vmem:[%s12633_s21 + $0x1368] sm:$0xff] }
 0x24d   : > { %7161 = vmatpush.bf16.msrb.mxu2 %v12349_v44  ;;  %v6270_v44 = vunpack.c.l.b16 %v577_v34  ;;  %v12401_v8 = vld [vmem:[%s12633_s21 + $0x1320] sm:$0xff] }
 0x24e   : > { %7174 = vmatpush.bf16.msrb.mxu3 %v12357_v45  ;;  %7136 = vmatmul.bf16.vlgmr.msrb.gmra.mxu0 %v6280_v56  ;;  %v6119_v15 = vadd.f32 %v6118_v12, %v6106_v11  ;;  %v12381_v45 = vld [vmem:[%s12633_s21 + $0x1280] sm:$0xff] }
 0x24f   : > { %7180 = vmatpush.bf16.msra.mxu0 %v12372_v46  ;;  %7149 = vmatmul.bf16.vlgmr.msrb.gmra.mxu1 %v6281_v61  ;;  %v12389_v46 = vld [vmem:[%s12633_s21 + $0x12c0] sm:$0xff]  ;;  %v6286_v56 = vpack.c.b16 %v6270_v44, %v6270_v44 }
 0x250   : > { %7193 = vmatpush.bf16.msra.mxu1 %v12380_v49  ;;  %7162 = vmatmul.bf16.vlgmr.msrb.gmra.mxu2 %v6282_v55  ;;  %v6271_v49 = vunpack.c.h.b16 %v577_v34  ;;  %v6284_v55 = vpack.c.b16 %v6268_v43, %v6268_v43  ;;  %v12417_v11 = vld [vmem:[%s12633_s21 + $0x13a0] sm:$0xff]  ;;  %v12422_v34 = vld [vmem:[%s12633_s21 + $0x13c8] sm:$0xff] }
 0x251   : > { %7206 = vmatpush.bf16.msra.mxu2 %v12388_v50  ;;  %7175 = vmatmul.bf16.vlgmr.msrb.gmra.mxu3 %v6283_v59  ;;  %v12412_v50 = vld [vmem:[%s12633_s21 + $0x1378] sm:$0xff]  ;;  %v6285_v59 = vpack.c.b16 %v6269_v48, %v6269_v48  ;;  %v12425_v12 = vld [vmem:[%s12633_s21 + $0x13e0] sm:$0xff] }
 0x252   : > { %7219 = vmatpush.bf16.msra.mxu3 %v12396_v51  ;;  %v12420_v51 = vld [vmem:[%s12633_s21 + $0x13b8] sm:$0xff]  ;;  %v6287_v61 = vpack.c.b16 %v6271_v49, %v6271_v49  ;;  %v12421_v43 = vld [vmem:[%s12633_s21 + $0x13c0] sm:$0xff] }
 0x253   : > { %7181 = vmatpush.bf16.msra.mxu0 %v12371_v62  ;;  %v6131_v20 = vpop.f32.mrf.mxu2  ;;  %v6107_v23 = vpop.f32.mrf.mxu0  ;;  %v12403_v62 = vld [vmem:[%s12633_s21 + $0x1330] sm:$0xff]  ;;  %v12452_v48 = vld [vmem:[%s12633_s21 + $0x14b8] sm:$0xff] }
 0x254   : > { %7194 = vmatpush.bf16.msra.mxu1 %v12379_v63  ;;  %v6132_v21 = vadd.f32 %v6131_v20, %v6119_v15  ;;  %v6144_v22 = vpop.f32.mrf.mxu3  ;;  %v6120_v27 = vpop.f32.mrf.mxu1  ;;  %v12411_v63 = vld [vmem:[%s12633_s21 + $0x1370] sm:$0xff]  ;;  %v12408_v15 = vld [vmem:[%s12633_s21 + $0x1358] sm:$0xff] }
 0x255   : > { %7207 = vmatpush.bf16.msra.mxu2 %v12387_v1  ;;  %v12427_v1 = vld [vmem:[%s12633_s21 + $0x13f0] sm:$0xff]  ;;  %v12460_v49 = vld [vmem:[%s12633_s21 + $0x14f8] sm:$0xff] }
 0x256   : > { %7220 = vmatpush.bf16.msra.mxu3 %v12395_v2  ;;  %v13310_v26 = vadd.f32 %v6144_v22, %v6132_v21  ;;  %v12402_v2 = vld [vmem:[%s12633_s21 + $0x1328] sm:$0xff]  ;;  %v12399_v23 = vld [vmem:[%s12633_s21 + $0x1310] sm:$0xff] }
 0x257   : > { %7182 = vmatpush.bf16.msra.mxu0 %v12370_v4  ;;  %v12418_v4 = vld [vmem:[%s12633_s21 + $0x13a8] sm:$0xff]  ;;  %v12423_v27 = vld [vmem:[%s12633_s21 + $0x13d0] sm:$0xff] }
 0x258   : > { %7195 = vmatpush.bf16.msra.mxu1 %v12378_v5  ;;  %v12426_v5 = vld [vmem:[%s12633_s21 + $0x13e8] sm:$0xff] }
 0x259   : > { %7208 = vmatpush.bf16.msra.mxu2 %v12386_v6 }
 0x25a   : > { %7221 = vmatpush.bf16.msra.mxu3 %v12394_v7 }
 0x25b   : > { %7183 = vmatpush.bf16.msra.mxu0 %v12369_v9  ;;  %v6133_v37 = vpop.f32.mrf.mxu2  ;;  %v12409_v9 = vld [vmem:[%s12633_s21 + $0x1360] sm:$0xff] }
 0x25c   : > { %7196 = vmatpush.bf16.msra.mxu1 %v12377_v10  ;;  %v6146_v38 = vpop.f32.mrf.mxu3  ;;  %v12397_v37 = vld [vmem:[%s12633_s21 + $0x1300] sm:$0xff] }
 0x25d   : > { %7209 = vmatpush.bf16.msra.mxu2 %v12385_v13  ;;  %v12405_v38 = vld [vmem:[%s12633_s21 + $0x1340] sm:$0xff] }
 0x25e   : > { %7222 = vmatpush.bf16.msra.mxu3 %v12393_v14  ;;  %v12400_v14 = vld [vmem:[%s12633_s21 + $0x1318] sm:$0xff] }
 0x25f   : > { %7184 = vmatpush.bf16.msra.mxu0 %v12368_v16  ;;  %v12416_v16 = vld [vmem:[%s12633_s21 + $0x1398] sm:$0xff] }
 0x260   : > { %7197 = vmatpush.bf16.msra.mxu1 %v12376_v17  ;;  %v12424_v17 = vld [vmem:[%s12633_s21 + $0x13d8] sm:$0xff] }
 0x261   : > { %7210 = vmatpush.bf16.msra.mxu2 %v12384_v18 }
 0x262   : > { %7223 = vmatpush.bf16.msra.mxu3 %v12392_v19 }
 0x263   : > { %7185 = vmatpush.bf16.msra.mxu0 %v12367_v24  ;;  %v12407_v24 = vld [vmem:[%s12633_s21 + $0x1350] sm:$0xff] }
 0x264   : > { %7198 = vmatpush.bf16.msra.mxu1 %v12375_v25 }
 0x265   : > { %7211 = vmatpush.bf16.msra.mxu2 %v12383_v28  ;;  %v12398_v28 = vld [vmem:[%s12633_s21 + $0x1308] sm:$0xff] }
 0x266   : > { %7224 = vmatpush.bf16.msra.mxu3 %v12391_v30  ;;  %v12406_v30 = vld [vmem:[%s12633_s21 + $0x1348] sm:$0xff] }
 0x267   : > { %7186 = vmatpush.bf16.msra.mxu0 %v12366_v31  ;;  %v578_v31 = vpack.c.bf16 %v13333_v54, %v13331_v53  ;;  %v12435_v54 = vld [vmem:[%s12633_s21 + $0x1430] sm:$0xff] }
 0x268   : > { %7199 = vmatpush.bf16.msra.mxu1 %v12374_v32  ;;  %v579_v32 = vpack.c.bf16 %v13337_v58, %v13335_v57  ;;  %v12459_v57 = vld [vmem:[%s12633_s21 + $0x14f0] sm:$0xff]  ;;  %v12434_v58 = vld [vmem:[%s12633_s21 + $0x1428] sm:$0xff] }
 0x269   : > { %7212 = vmatpush.bf16.msra.mxu2 %v12382_v35  ;;  %v6272_v39 = vunpack.c.l.b16 %v578_v31  ;;  %v6273_v44 = vunpack.c.h.b16 %v578_v31  ;;  %v12446_v31 = vld [vmem:[%s12633_s21 + $0x1488] sm:$0xff] }
 0x26a   : > { %7225 = vmatpush.bf16.msra.mxu3 %v12390_v36 }
 0x26b   : > { %7187 = vmatpush.bf16.msra.mxu0 %v12365_v40  ;;  %v6157_v6 = vpop.f32.mrf.mxu0  ;;  %v6274_v40 = vunpack.c.l.b16 %v579_v32 }
 0x26c   : > { %7200 = vmatpush.bf16.msra.mxu1 %v12373_v41  ;;  %v6158_v7 = vadd.f32 %v6157_v6, %v13310_v26  ;;  %v6170_v10 = vpop.f32.mrf.mxu1  ;;  %v12415_v26 = vld [vmem:[%s12633_s21 + $0x1390] sm:$0xff]  ;;  %v12413_v41 = vld [vmem:[%s12633_s21 + $0x1380] sm:$0xff] }
 0x26d   : > { %7213 = vmatpush.bf16.msra.mxu2 %v12381_v45  ;;  %v6275_v45 = vunpack.c.h.b16 %v579_v32  ;;  %v12454_v32 = vld [vmem:[%s12633_s21 + $0x14c8] sm:$0xff] }
 0x26e   : > { %7226 = vmatpush.bf16.msra.mxu3 %v12389_v46  ;;  %7188 = vmatmul.bf16.vlgmr.msra.gmra.mxu0 %v6284_v55  ;;  %v6171_v13 = vadd.f32 %v6170_v10, %v6158_v7  ;;  %v12436_v46 = vld [vmem:[%s12633_s21 + $0x1438] sm:$0xff]  ;;  %v12443_v55 = vld [vmem:[%s12633_s21 + $0x1470] sm:$0xff] }
 0x26f   : > { %7232 = vmatpush.bf16.msrb.mxu0 %v12404_v47  ;;  %7201 = vmatmul.bf16.vlgmr.msra.gmra.mxu1 %v6285_v59  ;;  %v12444_v47 = vld [vmem:[%s12633_s21 + $0x1478] sm:$0xff]  ;;  %v6291_v53 = vpack.c.b16 %v6275_v45, %v6275_v45  ;;  %v12442_v59 = vld [vmem:[%s12633_s21 + $0x1468] sm:$0xff]  ;;  %v297_v7 = vld [vmem:[%s12657_s25 + $0xb0] sm:$0xff] }
 0x270   : > { %7245 = vmatpush.bf16.msrb.mxu1 %v12412_v50  ;;  %7214 = vmatmul.bf16.vlgmr.msra.gmra.mxu2 %v6286_v56  ;;  %v6288_v50 = vpack.c.b16 %v6272_v39, %v6272_v39  ;;  %v12451_v56 = vld [vmem:[%s12633_s21 + $0x14b0] sm:$0xff]  ;;  %v12448_v10 = vld [vmem:[%s12633_s21 + $0x1498] sm:$0xff]  ;;  %v12445_v39 = vld [vmem:[%s12633_s21 + $0x1480] sm:$0xff] }
 0x271   : > { %7258 = vmatpush.bf16.msrb.mxu2 %v12420_v51  ;;  %7227 = vmatmul.bf16.vlgmr.msra.gmra.mxu3 %v6287_v61  ;;  %v6290_v51 = vpack.c.b16 %v6274_v40, %v6274_v40  ;;  %v12450_v61 = vld [vmem:[%s12633_s21 + $0x14a8] sm:$0xff]  ;;  %v12453_v40 = vld [vmem:[%s12633_s21 + $0x14c0] sm:$0xff]  ;;  %v12476_v45 = vld [vmem:[%s12633_s21 + $0x1578] sm:$0xff] }
 0x272   : > { %7271 = vmatpush.bf16.msrb.mxu3 %v12428_v52  ;;  %v6289_v52 = vpack.c.b16 %v6273_v44, %v6273_v44  ;;  %v12468_v44 = vld [vmem:[%s12633_s21 + $0x1538] sm:$0xff] }
 0x273   : > { %7233 = vmatpush.bf16.msrb.mxu0 %v12403_v62  ;;  %v6183_v18 = vpop.f32.mrf.mxu2  ;;  %v6159_v21 = vpop.f32.mrf.mxu0  ;;  %v12458_v62 = vld [vmem:[%s12633_s21 + $0x14e8] sm:$0xff] }
 0x274   : > { %7246 = vmatpush.bf16.msrb.mxu1 %v12411_v63  ;;  %v6184_v19 = vadd.f32 %v6183_v18, %v6171_v13  ;;  %v6196_v20 = vpop.f32.mrf.mxu3  ;;  %v6172_v25 = vpop.f32.mrf.mxu1  ;;  %v428_v13 = vld.sshfl [vmem:[#allocation1 + $0x10] sm:$0xff pattern:$0x73625140]  ;;  %v427_v18 = vld.sshfl [vmem:[#allocation1 + $0x8] sm:$0xff pattern:$0x73625140] }
 0x275   : > { %7259 = vmatpush.bf16.msrb.mxu2 %v12419_v0  ;;  %v12431_v21 = vld [vmem:[%s12633_s21 + $0x1410] sm:$0xff] }
 0x276   : > { %7272 = vmatpush.bf16.msrb.mxu3 %v12427_v1  ;;  %v13356_v22 = vadd.f32 %v6196_v20, %v6184_v19  ;;  %v12433_v1 = vld [vmem:[%s12633_s21 + $0x1420] sm:$0xff]  ;;  %v12455_v25 = vld [vmem:[%s12633_s21 + $0x14d0] sm:$0xff] }
 0x277   : > { %7234 = vmatpush.bf16.msrb.mxu0 %v12402_v2  ;;  %v12441_v2 = vld [vmem:[%s12633_s21 + $0x1460] sm:$0xff] }
 0x278   : > { %7247 = vmatpush.bf16.msrb.mxu1 %v12410_v3 }
 0x279   : > { %7260 = vmatpush.bf16.msrb.mxu2 %v12418_v4  ;;  %v12449_v4 = vld [vmem:[%s12633_s21 + $0x14a0] sm:$0xff] }
 0x27a   : > { %7273 = vmatpush.bf16.msrb.mxu3 %v12426_v5  ;;  %v12457_v5 = vld [vmem:[%s12633_s21 + $0x14e0] sm:$0xff] }
 0x27b   : > { %7235 = vmatpush.bf16.msrb.mxu0 %v12401_v8  ;;  %v6185_v35 = vpop.f32.mrf.mxu2  ;;  %v12432_v8 = vld [vmem:[%s12633_s21 + $0x1418] sm:$0xff] }
 0x27c   : > { %7248 = vmatpush.bf16.msrb.mxu1 %v12409_v9  ;;  %v6198_v36 = vpop.f32.mrf.mxu3  ;;  %v12440_v9 = vld [vmem:[%s12633_s21 + $0x1458] sm:$0xff]  ;;  %v12429_v35 = vld [vmem:[%s12633_s21 + $0x1400] sm:$0xff] }
 0x27d   : > { %7261 = vmatpush.bf16.msrb.mxu2 %v12417_v11  ;;  %v12456_v11 = vld [vmem:[%s12633_s21 + $0x14d8] sm:$0xff]  ;;  %v12437_v36 = vld [vmem:[%s12633_s21 + $0x1440] sm:$0xff] }
 0x27e   : > { %7274 = vmatpush.bf16.msrb.mxu3 %v12425_v12 }
 0x27f   : > { %7236 = vmatpush.bf16.msrb.mxu0 %v12400_v14  ;;  %v429_v14 = vld.sshfl [vmem:[#allocation1 + $0x18] sm:$0xff pattern:$0x73625140] }
 0x280   : > { %7249 = vmatpush.bf16.msrb.mxu1 %v12408_v15 }
 0x281   : > { %7262 = vmatpush.bf16.msrb.mxu2 %v12416_v16 }
 0x282   : > { %7275 = vmatpush.bf16.msrb.mxu3 %v12424_v17  ;;  %v426_v17 = vld.sshfl [vmem:[#allocation1] sm:$0xff pattern:$0x73625140] }
 0x283   : > { %7237 = vmatpush.bf16.msrb.mxu0 %v12399_v23  ;;  %434 = vst [vmem:[#allocation1] ss:$4 sm:$0xff] %v297_v7  ;;  %v12489_v7 = vld [vmem:[%s12633_s21 + $0x15e0] sm:$0xff] }
 0x284   : > { %7250 = vmatpush.bf16.msrb.mxu1 %v12407_v24  ;;  %v12447_v24 = vld [vmem:[%s12633_s21 + $0x1490] sm:$0xff] }
 0x285   : > { %7263 = vmatpush.bf16.msrb.mxu2 %v12415_v26  ;;  %v12430_v26 = vld [vmem:[%s12633_s21 + $0x1408] sm:$0xff] }
 0x286   : > { %7276 = vmatpush.bf16.msrb.mxu3 %v12423_v27  ;;  %v12438_v27 = vld [vmem:[%s12633_s21 + $0x1448] sm:$0xff] }
 0x287   : > { %7238 = vmatpush.bf16.msrb.mxu0 %v12398_v28  ;;  %v581_v28 = vpack.c.bf16 %v429_v14, %v428_v13 }
 0x288   : > { %7251 = vmatpush.bf16.msrb.mxu1 %v12406_v30  ;;  %v580_v30 = vpack.c.bf16 %v427_v18, %v426_v17  ;;  %v12463_v17 = vld [vmem:[%s12633_s21 + $0x1510] sm:$0xff] }
 0x289   : > { %7264 = vmatpush.bf16.msrb.mxu2 %v12414_v33  ;;  %v12471_v18 = vld [vmem:[%s12633_s21 + $0x1550] sm:$0xff] }
 0x28a   : > { %7277 = vmatpush.bf16.msrb.mxu3 %v12422_v34 }
 0x28b   : > { %7239 = vmatpush.bf16.msrb.mxu0 %v12397_v37  ;;  %v6209_v63 = vpop.f32.mrf.mxu0  ;;  %v7294_v37 = vunpack.c.l.b16 %v581_v28 }
 0x28c   : > { %7252 = vmatpush.bf16.msrb.mxu1 %v12405_v38  ;;  %v6210_v0 = vadd.f32 %v6209_v63, %v13356_v22  ;;  %v6222_v3 = vpop.f32.mrf.mxu1  ;;  %v12439_v22 = vld [vmem:[%s12633_s21 + $0x1450] sm:$0xff]  ;;  %v7292_v38 = vunpack.c.l.b16 %v580_v30  ;;  %v12474_v63 = vld [vmem:[%s12633_s21 + $0x1568] sm:$0xff] }
 0x28d   : > { %7265 = vmatpush.bf16.msrb.mxu2 %v12413_v41  ;;  %v7295_v41 = vunpack.c.h.b16 %v581_v28  ;;  %v12478_v28 = vld [vmem:[%s12633_s21 + $0x1588] sm:$0xff] }
 0x28e   : > { %7278 = vmatpush.bf16.msrb.mxu3 %v12421_v43  ;;  %7240 = vmatmul.bf16.vlgmr.msrb.gmra.mxu0 %v6288_v50  ;;  %v6223_v6 = vadd.f32 %v6222_v3, %v6210_v0  ;;  %v7293_v43 = vunpack.c.h.b16 %v580_v30  ;;  %v12475_v50 = vld [vmem:[%s12633_s21 + $0x1570] sm:$0xff]  ;;  %v12482_v0 = vld [vmem:[%s12633_s21 + $0x15a8] sm:$0xff]  ;;  %v12465_v3 = vld [vmem:[%s12633_s21 + $0x1520] sm:$0xff] }
 0x28f   : > { %8108 = vmatpush.bf16.msra.mxu0 %v12436_v46  ;;  %7253 = vmatmul.bf16.vlgmr.msrb.gmra.mxu1 %v6289_v52  ;;  %v12484_v46 = vld [vmem:[%s12633_s21 + $0x15b8] sm:$0xff]  ;;  %v7308_v52 = vpack.c.b16 %v7292_v38, %v7292_v38  ;;  %v12486_v30 = vld [vmem:[%s12633_s21 + $0x15c8] sm:$0xff]  ;;  %v12485_v38 = vld [vmem:[%s12633_s21 + $0x15c0] sm:$0xff] }
 0x290   : > { %8121 = vmatpush.bf16.msra.mxu1 %v12444_v47  ;;  %7266 = vmatmul.bf16.vlgmr.msrb.gmra.mxu2 %v6290_v51  ;;  %v12492_v47 = vld [vmem:[%s12633_s21 + $0x15f8] sm:$0xff]  ;;  %v7310_v51 = vpack.c.b16 %v7294_v37, %v7294_v37  ;;  %v12477_v37 = vld [vmem:[%s12633_s21 + $0x1580] sm:$0xff] }
 0x291   : > { %8134 = vmatpush.bf16.msra.mxu2 %v12452_v48  ;;  %7279 = vmatmul.bf16.vlgmr.msrb.gmra.mxu3 %v6291_v53  ;;  %v298_v48 = vld [vmem:[%s12657_s25 + $0xb8] sm:$0xff]  ;;  %v7311_v53 = vpack.c.b16 %v7295_v41, %v7295_v41 }
 0x292   : > { %8147 = vmatpush.bf16.msra.mxu3 %v12460_v49  ;;  %v12467_v49 = vld [vmem:[%s12633_s21 + $0x1530] sm:$0xff]  ;;  %v12500_v41 = vld [vmem:[%s12633_s21 + $0x1638] sm:$0xff] }
 0x293   : > { %8109 = vmatpush.bf16.msra.mxu0 %v12435_v54  ;;  %v6235_v12 = vpop.f32.mrf.mxu2  ;;  %v6211_v19 = vpop.f32.mrf.mxu0  ;;  %v7309_v54 = vpack.c.b16 %v7293_v43, %v7293_v43  ;;  %v12508_v43 = vld [vmem:[%s12633_s21 + $0x1678] sm:$0xff] }
 0x294   : > { %8122 = vmatpush.bf16.msra.mxu1 %v12443_v55  ;;  %v6236_v15 = vadd.f32 %v6235_v12, %v6223_v6  ;;  %v6248_v16 = vpop.f32.mrf.mxu3  ;;  %v6224_v23 = vpop.f32.mrf.mxu1  ;;  %v432_v55 = vld.sshfl [vmem:[#allocation1 + $0x30] sm:$0xff pattern:$0x73625140]  ;;  %v12481_v6 = vld [vmem:[%s12633_s21 + $0x15a0] sm:$0xff]  ;;  %v12488_v12 = vld [vmem:[%s12633_s21 + $0x15d8] sm:$0xff] }
 0x295   : > { %8135 = vmatpush.bf16.msra.mxu2 %v12451_v56  ;;  %v433_v56 = vld.sshfl [vmem:[#allocation1 + $0x38] sm:$0xff pattern:$0x73625140]  ;;  %v12487_v23 = vld [vmem:[%s12633_s21 + $0x15d0] sm:$0xff] }
 0x296   : > { %8148 = vmatpush.bf16.msra.mxu3 %v12459_v57  ;;  %v13396_v20 = vadd.f32 %v6248_v16, %v6236_v15  ;;  %v430_v57 = vld.sshfl [vmem:[#allocation1 + $0x20] sm:$0xff pattern:$0x73625140] }
 0x297   : > { %8110 = vmatpush.bf16.msra.mxu0 %v12434_v58  ;;  %v431_v58 = vld.sshfl [vmem:[#allocation1 + $0x28] sm:$0xff pattern:$0x73625140] }
 0x298   : > { %8123 = vmatpush.bf16.msra.mxu1 %v12442_v59  ;;  %v12483_v59 = vld [vmem:[%s12633_s21 + $0x15b0] sm:$0xff]  ;;  %435 = vst [vmem:[#allocation1 + $0x20] ss:$4 sm:$0xff] %v298_v48 }
 0x299   : > { %8136 = vmatpush.bf16.msra.mxu2 %v12450_v61  ;;  %v12491_v61 = vld [vmem:[%s12633_s21 + $0x15f0] sm:$0xff] }
 0x29a   : > { %8149 = vmatpush.bf16.msra.mxu3 %v12458_v62  ;;  %v12466_v62 = vld [vmem:[%s12633_s21 + $0x1528] sm:$0xff] }
 0x29b   : > { %8111 = vmatpush.bf16.msra.mxu0 %v12433_v1  ;;  %v6237_v33 = vpop.f32.mrf.mxu2  ;;  %v12490_v1 = vld [vmem:[%s12633_s21 + $0x15e8] sm:$0xff] }
 0x29c   : > { %8124 = vmatpush.bf16.msra.mxu1 %v12441_v2  ;;  %v6250_v34 = vpop.f32.mrf.mxu3  ;;  %v12461_v33 = vld [vmem:[%s12633_s21 + $0x1500] sm:$0xff] }
 0x29d   : > { %8137 = vmatpush.bf16.msra.mxu2 %v12449_v4  ;;  %v12473_v4 = vld [vmem:[%s12633_s21 + $0x1560] sm:$0xff] }
 0x29e   : > { %8150 = vmatpush.bf16.msra.mxu3 %v12457_v5  ;;  %v12469_v34 = vld [vmem:[%s12633_s21 + $0x1540] sm:$0xff] }
 0x29f   : > { %8112 = vmatpush.bf16.msra.mxu0 %v12432_v8 }
 0x2a0   : > { %8125 = vmatpush.bf16.msra.mxu1 %v12440_v9  ;;  %v12464_v9 = vld [vmem:[%s12633_s21 + $0x1518] sm:$0xff] }
 0x2a1   : > { %8138 = vmatpush.bf16.msra.mxu2 %v12448_v10  ;;  %v12472_v10 = vld [vmem:[%s12633_s21 + $0x1558] sm:$0xff] }
 0x2a2   : > { %8151 = vmatpush.bf16.msra.mxu3 %v12456_v11  ;;  %v12480_v11 = vld [vmem:[%s12633_s21 + $0x1598] sm:$0xff] }
 0x2a3   : > { %8113 = vmatpush.bf16.msra.mxu0 %v12431_v21 }
 0x2a4   : > { %8126 = vmatpush.bf16.msra.mxu1 %v12439_v22  ;;  %v12479_v22 = vld [vmem:[%s12633_s21 + $0x1590] sm:$0xff] }
 0x2a5   : > { %8139 = vmatpush.bf16.msra.mxu2 %v12447_v24  ;;  %v12462_v24 = vld [vmem:[%s12633_s21 + $0x1508] sm:$0xff] }
 0x2a6   : > { %8152 = vmatpush.bf16.msra.mxu3 %v12455_v25  ;;  %v12470_v25 = vld [vmem:[%s12633_s21 + $0x1548] sm:$0xff] }
 0x2a7   : > { %8114 = vmatpush.bf16.msra.mxu0 %v12430_v26  ;;  %v583_v26 = vpack.c.bf16 %v433_v56, %v432_v55  ;;  %v12506_v55 = vld [vmem:[%s12633_s21 + $0x1668] sm:$0xff] }
 0x2a8   : > { %8127 = vmatpush.bf16.msra.mxu1 %v12438_v27  ;;  %v582_v27 = vpack.c.bf16 %v431_v58, %v430_v57  ;;  %v12514_v56 = vld [vmem:[%s12633_s21 + $0x16a8] sm:$0xff] }
 0x2a9   : > { %8140 = vmatpush.bf16.msra.mxu2 %v12446_v31  ;;  %v12522_v57 = vld [vmem:[%s12633_s21 + $0x16e8] sm:$0xff] }
 0x2aa   : > { %8153 = vmatpush.bf16.msra.mxu3 %v12454_v32 }
 0x2ab   : > { %8115 = vmatpush.bf16.msra.mxu0 %v12429_v35  ;;  %v7085_v2 = vpop.f32.mrf.mxu0  ;;  %v7298_v35 = vunpack.c.l.b16 %v583_v26 }
 0x2ac   : > { %8128 = vmatpush.bf16.msra.mxu1 %v12437_v36  ;;  %v7098_v5 = vpop.f32.mrf.mxu1  ;;  %v7296_v36 = vunpack.c.l.b16 %v582_v27 }
 0x2ad   : > { %8141 = vmatpush.bf16.msra.mxu2 %v12445_v39  ;;  %v7099_v8 = vadd.f32 %v7098_v5, %v7085_v2  ;;  %v7299_v39 = vunpack.c.h.b16 %v583_v26  ;;  %v12512_v5 = vld [vmem:[%s12633_s21 + $0x1698] sm:$0xff]  ;;  %v12510_v26 = vld [vmem:[%s12633_s21 + $0x1688] sm:$0xff] }
 0x2ae   : > { %8154 = vmatpush.bf16.msra.mxu3 %v12453_v40  ;;  %8116 = vmatmul.bf16.vlgmr.msra.gmra.mxu0 %v7308_v52  ;;  %v7297_v40 = vunpack.c.h.b16 %v582_v27  ;;  %v12515_v52 = vld [vmem:[%s12633_s21 + $0x16b0] sm:$0xff]  ;;  %v12518_v27 = vld [vmem:[%s12633_s21 + $0x16c8] sm:$0xff] }
 0x2af   : > { %8160 = vmatpush.bf16.msrb.mxu0 %v12468_v44  ;;  %8129 = vmatmul.bf16.vlgmr.msra.gmra.mxu1 %v7309_v54  ;;  %v12516_v44 = vld [vmem:[%s12633_s21 + $0x16b8] sm:$0xff]  ;;  %v7315_v48 = vpack.c.b16 %v7299_v39, %v7299_v39  ;;  %v12498_v54 = vld [vmem:[%s12633_s21 + $0x1628] sm:$0xff] }
 0x2b0   : > { %8173 = vmatpush.bf16.msrb.mxu1 %v12476_v45  ;;  %8142 = vmatmul.bf16.vlgmr.msra.gmra.mxu2 %v7310_v51  ;;  %v12524_v45 = vld [vmem:[%s12633_s21 + $0x16f8] sm:$0xff]  ;;  %v12507_v51 = vld [vmem:[%s12633_s21 + $0x1670] sm:$0xff] }
 0x2b1   : > { %8186 = vmatpush.bf16.msrb.mxu2 %v12484_v46  ;;  %8155 = vmatmul.bf16.vlgmr.msra.gmra.mxu3 %v7311_v53  ;;  %v7314_v46 = vpack.c.b16 %v7298_v35, %v7298_v35  ;;  %v12523_v53 = vld [vmem:[%s12633_s21 + $0x16f0] sm:$0xff]  ;;  %v12509_v35 = vld [vmem:[%s12633_s21 + $0x1680] sm:$0xff]  ;;  %v12532_v39 = vld [vmem:[%s12633_s21 + $0x1738] sm:$0xff] }
 0x2b2   : > { %8199 = vmatpush.bf16.msrb.mxu3 %v12492_v47  ;;  %v7312_v47 = vpack.c.b16 %v7296_v36, %v7296_v36  ;;  %v12517_v36 = vld [vmem:[%s12633_s21 + $0x16c0] sm:$0xff] }
 0x2b3   : > { %8161 = vmatpush.bf16.msrb.mxu0 %v12467_v49  ;;  %v7111_v13 = vpop.f32.mrf.mxu2  ;;  %v7087_v16 = vpop.f32.mrf.mxu0  ;;  %v7313_v49 = vpack.c.b16 %v7297_v40, %v7297_v40  ;;  %v12540_v40 = vld [vmem:[%s12633_s21 + $0x1778] sm:$0xff] }
 0x2b4   : > { %8174 = vmatpush.bf16.msrb.mxu1 %v12475_v50  ;;  %v7112_v14 = vadd.f32 %v7111_v13, %v7099_v8  ;;  %v7124_v15 = vpop.f32.mrf.mxu3  ;;  %v7100_v21 = vpop.f32.mrf.mxu1  ;;  %v12499_v50 = vld [vmem:[%s12633_s21 + $0x1630] sm:$0xff]  ;;  %v436_v16 = vld.sshfl [vmem:[#allocation1] sm:$0xff pattern:$0x73625140] }
 0x2b5   : > { %8187 = vmatpush.bf16.msrb.mxu2 %v12483_v59  ;;  %v12497_v59 = vld [vmem:[%s12633_s21 + $0x1620] sm:$0xff]  ;;  %v12495_v8 = vld [vmem:[%s12633_s21 + $0x1610] sm:$0xff]  ;;  %v439_v21 = vld.sshfl [vmem:[#allocation1 + $0x18] sm:$0xff pattern:$0x73625140] }
 0x2b6   : > { %8200 = vmatpush.bf16.msrb.mxu3 %v12491_v61  ;;  %v13433_v19 = vadd.f32 %v7124_v15, %v7112_v14  ;;  %v12505_v61 = vld [vmem:[%s12633_s21 + $0x1660] sm:$0xff]  ;;  %v12519_v13 = vld [vmem:[%s12633_s21 + $0x16d0] sm:$0xff] }
 0x2b7   : > { %8162 = vmatpush.bf16.msrb.mxu0 %v12466_v62 }
 0x2b8   : > { %8175 = vmatpush.bf16.msrb.mxu1 %v12474_v63 }
 0x2b9   : > { %8188 = vmatpush.bf16.msrb.mxu2 %v12482_v0  ;;  %v12513_v0 = vld [vmem:[%s12633_s21 + $0x16a0] sm:$0xff] }
 0x2ba   : > { %8201 = vmatpush.bf16.msrb.mxu3 %v12490_v1  ;;  %v12521_v1 = vld [vmem:[%s12633_s21 + $0x16e0] sm:$0xff] }
 0x2bb   : > { %8163 = vmatpush.bf16.msrb.mxu0 %v12465_v3  ;;  %v7113_v31 = vpop.f32.mrf.mxu2  ;;  %v12496_v3 = vld [vmem:[%s12633_s21 + $0x1618] sm:$0xff] }
 0x2bc   : > { %8176 = vmatpush.bf16.msrb.mxu1 %v12473_v4  ;;  %v7126_v32 = vpop.f32.mrf.mxu3  ;;  %v12504_v4 = vld [vmem:[%s12633_s21 + $0x1658] sm:$0xff]  ;;  %v12493_v31 = vld [vmem:[%s12633_s21 + $0x1600] sm:$0xff] }
 0x2bd   : > { %8189 = vmatpush.bf16.msrb.mxu2 %v12481_v6  ;;  %v12520_v6 = vld [vmem:[%s12633_s21 + $0x16d8] sm:$0xff]  ;;  %v12501_v32 = vld [vmem:[%s12633_s21 + $0x1640] sm:$0xff] }
 0x2be   : > { %8202 = vmatpush.bf16.msrb.mxu3 %v12489_v7 }
 0x2bf   : > { %8164 = vmatpush.bf16.msrb.mxu0 %v12464_v9 }
 0x2c0   : > { %8177 = vmatpush.bf16.msrb.mxu1 %v12472_v10 }
 0x2c1   : > { %8190 = vmatpush.bf16.msrb.mxu2 %v12480_v11  ;;  %v12503_v11 = vld [vmem:[%s12633_s21 + $0x1650] sm:$0xff] }
 0x2c2   : > { %8203 = vmatpush.bf16.msrb.mxu3 %v12488_v12  ;;  %v12511_v12 = vld [vmem:[%s12633_s21 + $0x1690] sm:$0xff] }
 0x2c3   : > { %8165 = vmatpush.bf16.msrb.mxu0 %v12463_v17  ;;  %v437_v17 = vld.sshfl [vmem:[#allocation1 + $0x8] sm:$0xff pattern:$0x73625140] }
 0x2c4   : > { %8178 = vmatpush.bf16.msrb.mxu1 %v12471_v18 }
 0x2c5   : > { %8191 = vmatpush.bf16.msrb.mxu2 %v12479_v22  ;;  %v12494_v22 = vld [vmem:[%s12633_s21 + $0x1608] sm:$0xff] }
 0x2c6   : > { %8204 = vmatpush.bf16.msrb.mxu3 %v12487_v23  ;;  %v12502_v23 = vld [vmem:[%s12633_s21 + $0x1648] sm:$0xff] }
 0x2c7   : > { %8166 = vmatpush.bf16.msrb.mxu0 %v12462_v24  ;;  %v584_v24 = vpack.c.bf16 %v437_v17, %v436_v16  ;;  %v441_v16 = vld.sshfl [vmem:[#allocation1 + $0x28] sm:$0xff pattern:$0x73625140]  ;;  %v442_v17 = vld.sshfl [vmem:[#allocation1 + $0x30] sm:$0xff pattern:$0x73625140] }
 0x2c8   : > { %8179 = vmatpush.bf16.msrb.mxu1 %v12470_v25 }
 0x2c9   : > { %8192 = vmatpush.bf16.msrb.mxu2 %v12478_v28 }
 0x2ca   : > { %8205 = vmatpush.bf16.msrb.mxu3 %v12486_v30 }
 0x2cb   : > { %8167 = vmatpush.bf16.msrb.mxu0 %v12461_v33  ;;  %v7137_v58 = vpop.f32.mrf.mxu0  ;;  %v7300_v33 = vunpack.c.l.b16 %v584_v24 }
 0x2cc   : > { %8180 = vmatpush.bf16.msrb.mxu1 %v12469_v34  ;;  %v7138_v62 = vadd.f32 %v7137_v58, %v13433_v19  ;;  %v7150_v63 = vpop.f32.mrf.mxu1  ;;  %v438_v19 = vld.sshfl [vmem:[#allocation1 + $0x10] sm:$0xff pattern:$0x73625140]  ;;  %v12529_v58 = vld [vmem:[%s12633_s21 + $0x1720] sm:$0xff] }
 0x2cd   : > { %8193 = vmatpush.bf16.msrb.mxu2 %v12477_v37  ;;  %v585_v25 = vpack.c.bf16 %v439_v21, %v438_v19  ;;  %v7301_v37 = vunpack.c.h.b16 %v584_v24  ;;  %v12526_v19 = vld [vmem:[%s12633_s21 + $0x1708] sm:$0xff] }
 0x2ce   : > { %8206 = vmatpush.bf16.msrb.mxu3 %v12485_v38  ;;  %8168 = vmatmul.bf16.vlgmr.msrb.gmra.mxu0 %v7312_v47  ;;  %v7151_v2 = vadd.f32 %v7150_v63, %v7138_v62  ;;  %v12545_v62 = vld [vmem:[%s12633_s21 + $0x17a0] sm:$0xff]  ;;  %v12534_v21 = vld [vmem:[%s12633_s21 + $0x1748] sm:$0xff] }
 0x2cf   : > { %8212 = vmatpush.bf16.msra.mxu0 %v12500_v41  ;;  %8181 = vmatmul.bf16.vlgmr.msrb.gmra.mxu1 %v7313_v49  ;;  %v7302_v34 = vunpack.c.l.b16 %v585_v25  ;;  %v7303_v38 = vunpack.c.h.b16 %v585_v25  ;;  %v12548_v41 = vld [vmem:[%s12633_s21 + $0x17b8] sm:$0xff]  ;;  %v12539_v49 = vld [vmem:[%s12633_s21 + $0x1770] sm:$0xff]  ;;  %v12553_v63 = vld [vmem:[%s12633_s21 + $0x17e0] sm:$0xff] }
 0x2d0   : > { %8225 = vmatpush.bf16.msra.mxu1 %v12508_v43  ;;  %8194 = vmatmul.bf16.vlgmr.msrb.gmra.mxu2 %v7314_v46  ;;  %v12556_v43 = vld [vmem:[%s12633_s21 + $0x17f8] sm:$0xff]  ;;  %v7317_v46 = vpack.c.b16 %v7301_v37, %v7301_v37  ;;  %v12550_v24 = vld [vmem:[%s12633_s21 + $0x17c8] sm:$0xff] }
 0x2d1   : > { %8238 = vmatpush.bf16.msra.mxu2 %v12516_v44  ;;  %8207 = vmatmul.bf16.vlgmr.msrb.gmra.mxu3 %v7315_v48  ;;  %v7316_v44 = vpack.c.b16 %v7300_v33, %v7300_v33  ;;  %v7319_v47 = vpack.c.b16 %v7303_v38, %v7303_v38  ;;  %v12531_v48 = vld [vmem:[%s12633_s21 + $0x1730] sm:$0xff]  ;;  %v12541_v33 = vld [vmem:[%s12633_s21 + $0x1780] sm:$0xff]  ;;  %v8373_v37 = vld [vmem:[%s13517_s7 + $0x78] sm:$0xff] }
 0x2d2   : > { %8251 = vmatpush.bf16.msra.mxu3 %v12524_v45  ;;  %v7318_v45 = vpack.c.b16 %v7302_v34, %v7302_v34  ;;  %v12549_v34 = vld [vmem:[%s12633_s21 + $0x17c0] sm:$0xff]  ;;  %v8389_v38 = vld [vmem:[%s13517_s7 + $0xf8] sm:$0xff] }
 0x2d3   : > { %8213 = vmatpush.bf16.msra.mxu0 %v12499_v50  ;;  %v7163_v7 = vpop.f32.mrf.mxu2  ;;  %v7139_v14 = vpop.f32.mrf.mxu0  ;;  %v12547_v50 = vld [vmem:[%s12633_s21 + $0x17b0] sm:$0xff] }
 0x2d4   : > { %8226 = vmatpush.bf16.msra.mxu1 %v12507_v51  ;;  %v7164_v9 = vadd.f32 %v7163_v7, %v7151_v2  ;;  %v7176_v10 = vpop.f32.mrf.mxu3  ;;  %v7152_v18 = vpop.f32.mrf.mxu1  ;;  %v12555_v51 = vld [vmem:[%s12633_s21 + $0x17f0] sm:$0xff]  ;;  %v12536_v2 = vld [vmem:[%s12633_s21 + $0x1758] sm:$0xff] }
 0x2d5   : > { %8239 = vmatpush.bf16.msra.mxu2 %v12515_v52  ;;  %v12530_v52 = vld [vmem:[%s12633_s21 + $0x1728] sm:$0xff]  ;;  %v443_v18 = vld.sshfl [vmem:[#allocation1 + $0x38] sm:$0xff pattern:$0x73625140] }
 0x2d6   : > { %8252 = vmatpush.bf16.msra.mxu3 %v12523_v53  ;;  %v13470_v15 = vadd.f32 %v7176_v10, %v7164_v9  ;;  %v12538_v53 = vld [vmem:[%s12633_s21 + $0x1768] sm:$0xff]  ;;  %v587_v25 = vpack.c.bf16 %v443_v18, %v442_v17  ;;  %v8381_v17 = vld [vmem:[%s13517_s7 + $0xb8] sm:$0xff] }
 0x2d7   : > { %8214 = vmatpush.bf16.msra.mxu0 %v12498_v54  ;;  %v12546_v54 = vld [vmem:[%s12633_s21 + $0x17a8] sm:$0xff] }
 0x2d8   : > { %8227 = vmatpush.bf16.msra.mxu1 %v12506_v55  ;;  %v12554_v55 = vld [vmem:[%s12633_s21 + $0x17e8] sm:$0xff] }
 0x2d9   : > { %8240 = vmatpush.bf16.msra.mxu2 %v12514_v56 }
 0x2da   : > { %8253 = vmatpush.bf16.msra.mxu3 %v12522_v57 }
 0x2db   : > { %8215 = vmatpush.bf16.msra.mxu0 %v12497_v59  ;;  %v7165_v28 = vpop.f32.mrf.mxu2  ;;  %v12537_v59 = vld [vmem:[%s12633_s21 + $0x1760] sm:$0xff] }
 0x2dc   : > { %8228 = vmatpush.bf16.msra.mxu1 %v12505_v61  ;;  %v7178_v30 = vpop.f32.mrf.mxu3  ;;  %v12525_v28 = vld [vmem:[%s12633_s21 + $0x1700] sm:$0xff] }
 0x2dd   : > { %8241 = vmatpush.bf16.msra.mxu2 %v12513_v0  ;;  %v12533_v30 = vld [vmem:[%s12633_s21 + $0x1740] sm:$0xff] }
 0x2de   : > { %8254 = vmatpush.bf16.msra.mxu3 %v12521_v1  ;;  %v12528_v1 = vld [vmem:[%s12633_s21 + $0x1718] sm:$0xff] }
 0x2df   : > { %8216 = vmatpush.bf16.msra.mxu0 %v12496_v3  ;;  %v12544_v3 = vld [vmem:[%s12633_s21 + $0x1798] sm:$0xff] }
 0x2e0   : > { %8229 = vmatpush.bf16.msra.mxu1 %v12504_v4  ;;  %v12552_v4 = vld [vmem:[%s12633_s21 + $0x17d8] sm:$0xff] }
 0x2e1   : > { %8242 = vmatpush.bf16.msra.mxu2 %v12512_v5 }
 0x2e2   : > { %8255 = vmatpush.bf16.msra.mxu3 %v12520_v6 }
 0x2e3   : > { %8217 = vmatpush.bf16.msra.mxu0 %v12495_v8  ;;  %v12527_v8 = vld [vmem:[%s12633_s21 + $0x1710] sm:$0xff] }
 0x2e4   : > { %8230 = vmatpush.bf16.msra.mxu1 %v12503_v11  ;;  %v12535_v11 = vld [vmem:[%s12633_s21 + $0x1750] sm:$0xff] }
 0x2e5   : > { %8243 = vmatpush.bf16.msra.mxu2 %v12511_v12  ;;  %v12543_v12 = vld [vmem:[%s12633_s21 + $0x1790] sm:$0xff] }
 0x2e6   : > { %8256 = vmatpush.bf16.msra.mxu3 %v12519_v13  ;;  %v12551_v13 = vld [vmem:[%s12633_s21 + $0x17d0] sm:$0xff] }
 0x2e7   : > { %8218 = vmatpush.bf16.msra.mxu0 %v12494_v22 }
 0x2e8   : > { %8231 = vmatpush.bf16.msra.mxu1 %v12502_v23  ;;  %v12542_v23 = vld [vmem:[%s12633_s21 + $0x1788] sm:$0xff] }
 0x2e9   : > { %8244 = vmatpush.bf16.msra.mxu2 %v12510_v26 }
 0x2ea   : > { %8257 = vmatpush.bf16.msra.mxu3 %v12518_v27 }
 0x2eb   : > { %8219 = vmatpush.bf16.msra.mxu0 %v12493_v31  ;;  %v7189_v56 = vpop.f32.mrf.mxu0 }
 0x2ec   : > { %8232 = vmatpush.bf16.msra.mxu1 %v12501_v32  ;;  %v7190_v57 = vadd.f32 %v7189_v56, %v13470_v15  ;;  %v7202_v61 = vpop.f32.mrf.mxu1  ;;  %v440_v15 = vld.sshfl [vmem:[#allocation1 + $0x20] sm:$0xff pattern:$0x73625140] }
 0x2ed   : > { %8245 = vmatpush.bf16.msra.mxu2 %v12509_v35  ;;  %v586_v22 = vpack.c.bf16 %v441_v16, %v440_v15  ;;  %v7306_v35 = vunpack.c.l.b16 %v587_v25  ;;  %v8402_v56 = vld [vmem:[%s13517_s7 + $0x160] sm:$0xff]  ;;  %v8365_v16 = vld [vmem:[%s13517_s7 + $0x38] sm:$0xff] }
 0x2ee   : > { %8258 = vmatpush.bf16.msra.mxu3 %v12517_v36  ;;  %8220 = vmatmul.bf16.vlgmr.msra.gmra.mxu0 %v7316_v44  ;;  %v7203_v0 = vadd.f32 %v7202_v61, %v7190_v57  ;;  %v7307_v36 = vunpack.c.h.b16 %v587_v25  ;;  %v8418_v57 = vld [vmem:[%s13517_s7 + $0x1e0] sm:$0xff] }
 0x2ef   : > { %8264 = vmatpush.bf16.msrb.mxu0 %v12532_v39  ;;  %8233 = vmatmul.bf16.vlgmr.msra.gmra.mxu1 %v7317_v46  ;;  %v7304_v31 = vunpack.c.l.b16 %v586_v22  ;;  %v7305_v32 = vunpack.c.h.b16 %v586_v22  ;;  %v8405_v39 = vld [vmem:[%s13517_s7 + $0x178] sm:$0xff]  ;;  %v7322_v44 = vpack.c.b16 %v7306_v35, %v7306_v35  ;;  %v8372_v46 = vld [vmem:[%s13517_s7 + $0x70] sm:$0xff]  ;;  %v12568_v25 = vld [vmem:[%s12794_s29] ss:$0 sm:$0xff] }
 0x2f0   : > { %8277 = vmatpush.bf16.msrb.mxu1 %v12540_v40  ;;  %8246 = vmatmul.bf16.vlgmr.msra.gmra.mxu2 %v7318_v45  ;;  %v8421_v40 = vld [vmem:[%s13517_s7 + $0x1f8] sm:$0xff]  ;;  %v7323_v45 = vpack.c.b16 %v7307_v36, %v7307_v36  ;;  %v12574_v35 = vld [vmem:[%s12794_s29 + $0x6] ss:$0 sm:$0xff] }
 0x2f1   : > { %8290 = vmatpush.bf16.msrb.mxu2 %v12548_v41  ;;  %8259 = vmatmul.bf16.vlgmr.msra.gmra.mxu3 %v7319_v47  ;;  %v7320_v41 = vpack.c.b16 %v7304_v31, %v7304_v31  ;;  %v8388_v47 = vld [vmem:[%s13517_s7 + $0xf0] sm:$0xff]  ;;  %v8379_v31 = vld [vmem:[%s13517_s7 + $0xa8] sm:$0xff]  ;;  %v8362_v36 = vld [vmem:[%s13517_s7 + $0x20] sm:$0xff] }
 0x2f2   : > { %8303 = vmatpush.bf16.msrb.mxu3 %v12556_v43  ;;  %v7321_v43 = vpack.c.b16 %v7305_v32, %v7305_v32  ;;  %v12572_v32 = vld [vmem:[%s12794_s29 + $0x4] ss:$0 sm:$0xff] }
 0x2f3   : > { %8265 = vmatpush.bf16.msrb.mxu0 %v12531_v48  ;;  %v7215_v5 = vpop.f32.mrf.mxu2  ;;  %v7191_v9 = vpop.f32.mrf.mxu0  ;;  %v8404_v48 = vld [vmem:[%s13517_s7 + $0x170] sm:$0xff] }
 0x2f4   : > { %8278 = vmatpush.bf16.msrb.mxu1 %v12539_v49  ;;  %v7216_v6 = vadd.f32 %v7215_v5, %v7203_v0  ;;  %v7228_v7 = vpop.f32.mrf.mxu3  ;;  %v7204_v14 = vpop.f32.mrf.mxu1  ;;  %v8420_v49 = vld [vmem:[%s13517_s7 + $0x1f0] sm:$0xff]  ;;  %v8367_v5 = vld [vmem:[%s13517_s7 + $0x48] sm:$0xff]  ;;  %v8366_v9 = vld [vmem:[%s13517_s7 + $0x40] sm:$0xff] }
 0x2f5   : > { %8291 = vmatpush.bf16.msrb.mxu2 %v12547_v50  ;;  %v8371_v50 = vld [vmem:[%s13517_s7 + $0x68] sm:$0xff]  ;;  %v8414_v14 = vld [vmem:[%s13517_s7 + $0x1c0] sm:$0xff] }
 0x2f6   : > { %8304 = vmatpush.bf16.msrb.mxu3 %v12555_v51  ;;  %v13502_v10 = vadd.f32 %v7228_v7, %v7216_v6  ;;  %v8387_v51 = vld [vmem:[%s13517_s7 + $0xe8] sm:$0xff] }
 0x2f7   : > { %8266 = vmatpush.bf16.msrb.mxu0 %v12530_v52  ;;  %v8403_v52 = vld [vmem:[%s13517_s7 + $0x168] sm:$0xff] }
 0x2f8   : > { %8279 = vmatpush.bf16.msrb.mxu1 %v12538_v53  ;;  %v8419_v53 = vld [vmem:[%s13517_s7 + $0x1e8] sm:$0xff] }
 0x2f9   : > { %8292 = vmatpush.bf16.msrb.mxu2 %v12546_v54  ;;  %v8370_v54 = vld [vmem:[%s13517_s7 + $0x60] sm:$0xff]  ;;  %v8383_v6 = vld [vmem:[%s13517_s7 + $0xc8] sm:$0xff] }
 0x2fa   : > { %8305 = vmatpush.bf16.msrb.mxu3 %v12554_v55  ;;  %v8386_v55 = vld [vmem:[%s13517_s7 + $0xe0] sm:$0xff]  ;;  %v8399_v7 = vld [vmem:[%s13517_s7 + $0x148] sm:$0xff] }
 0x2fb   : > { %8267 = vmatpush.bf16.msrb.mxu0 %v12529_v58  ;;  %v7217_v26 = vpop.f32.mrf.mxu2  ;;  %v8369_v58 = vld [vmem:[%s13517_s7 + $0x58] sm:$0xff] }
 0x2fc   : > { %8280 = vmatpush.bf16.msrb.mxu1 %v12537_v59  ;;  %v7230_v27 = vpop.f32.mrf.mxu3  ;;  %v8385_v59 = vld [vmem:[%s13517_s7 + $0xd8] sm:$0xff]  ;;  %v8396_v26 = vld [vmem:[%s13517_s7 + $0x130] sm:$0xff] }
 0x2fd   : > { %8293 = vmatpush.bf16.msrb.mxu2 %v12545_v62  ;;  %v8401_v62 = vld [vmem:[%s13517_s7 + $0x158] sm:$0xff]  ;;  %v8412_v27 = vld [vmem:[%s13517_s7 + $0x1b0] sm:$0xff] }
 0x2fe   : > { %8306 = vmatpush.bf16.msrb.mxu3 %v12553_v63  ;;  %v8417_v63 = vld [vmem:[%s13517_s7 + $0x1d8] sm:$0xff] }
 0x2ff   : > { %8268 = vmatpush.bf16.msrb.mxu0 %v12528_v1  ;;  %v8368_v1 = vld [vmem:[%s13517_s7 + $0x50] sm:$0xff] }
 0x300   : > { %8281 = vmatpush.bf16.msrb.mxu1 %v12536_v2  ;;  %v8384_v2 = vld [vmem:[%s13517_s7 + $0xd0] sm:$0xff] }
 0x301   : > { %8294 = vmatpush.bf16.msrb.mxu2 %v12544_v3  ;;  %v8400_v3 = vld [vmem:[%s13517_s7 + $0x150] sm:$0xff] }
 0x302   : > { %8307 = vmatpush.bf16.msrb.mxu3 %v12552_v4  ;;  %v8416_v4 = vld [vmem:[%s13517_s7 + $0x1d0] sm:$0xff] }
 0x303   : > { %8269 = vmatpush.bf16.msrb.mxu0 %v12527_v8  ;;  %v8415_v8 = vld [vmem:[%s13517_s7 + $0x1c8] sm:$0xff] }
 0x304   : > { %8282 = vmatpush.bf16.msrb.mxu1 %v12535_v11  ;;  %v8382_v11 = vld [vmem:[%s13517_s7 + $0xc0] sm:$0xff] }
 0x305   : > { %8295 = vmatpush.bf16.msrb.mxu2 %v12543_v12 }
 0x306   : > { %8308 = vmatpush.bf16.msrb.mxu3 %v12551_v13  ;;  %v8398_v13 = vld [vmem:[%s13517_s7 + $0x140] sm:$0xff] }
 0x307   : > { %8270 = vmatpush.bf16.msrb.mxu0 %v12526_v19  ;;  %v8397_v19 = vld [vmem:[%s13517_s7 + $0x138] sm:$0xff] }
 0x308   : > { %8283 = vmatpush.bf16.msrb.mxu1 %v12534_v21  ;;  %v8413_v21 = vld [vmem:[%s13517_s7 + $0x1b8] sm:$0xff] }
 0x309   : > { %8296 = vmatpush.bf16.msrb.mxu2 %v12542_v23  ;;  %v8364_v23 = vld [vmem:[%s13517_s7 + $0x30] sm:$0xff] }
 0x30a   : > { %8309 = vmatpush.bf16.msrb.mxu3 %v12550_v24  ;;  %v8380_v24 = vld [vmem:[%s13517_s7 + $0xb0] sm:$0xff] }
 0x30b   : > { %8271 = vmatpush.bf16.msrb.mxu0 %v12525_v28  ;;  %v13539_v61 = vpop.f32.mrf.mxu0  ;;  %v12570_v28 = vld [vmem:[%s12794_s29 + $0x2] ss:$0 sm:$0xff] }
 0x30c   : > { %8284 = vmatpush.bf16.msrb.mxu1 %v12533_v30  ;;  %v13543_v0 = vpop.f32.mrf.mxu1  ;;  %v8363_v30 = vld [vmem:[%s13517_s7 + $0x28] sm:$0xff] }
 0x30d   : > { %8297 = vmatpush.bf16.msrb.mxu2 %v12541_v33  ;;  %v8395_v33 = vld [vmem:[%s13517_s7 + $0x128] sm:$0xff] }
 0x30e   : > { %8310 = vmatpush.bf16.msrb.mxu3 %v12549_v34  ;;  %8272 = vmatmul.bf16.vlgmr.msrb.gmra.mxu0 %v7320_v41  ;;  %v8411_v34 = vld [vmem:[%s13517_s7 + $0x1a8] sm:$0xff]  ;;  %v8410_v41 = vld [vmem:[%s13517_s7 + $0x1a0] sm:$0xff] }
 0x30f   : > { %8454 = vmatpush.msra.mxu0 %v8373_v37  ;;  %8285 = vmatmul.bf16.vlgmr.msrb.gmra.mxu1 %v7321_v43  ;;  %v8378_v37 = vld [vmem:[%s13517_s7 + $0xa0] sm:$0xff] }
 0x310   : > { %8474 = vmatpush.msra.mxu1 %v8389_v38  ;;  %8298 = vmatmul.bf16.vlgmr.msrb.gmra.mxu2 %v7322_v44  ;;  %v12571_v44 = vld [vmem:[%s12794_s29 + $0x3] ss:$0 sm:$0xff] }
 0x311   : > { %8494 = vmatpush.msra.mxu2 %v8405_v39  ;;  %8311 = vmatmul.bf16.vlgmr.msrb.gmra.mxu3 %v7323_v45  ;;  %v12569_v39 = vld [vmem:[%s12794_s29 + $0x1] ss:$0 sm:$0xff]  ;;  %v8361_v45 = vld [vmem:[%s13517_s7 + $0x18] sm:$0xff] }
 0x312   : > { %8514 = vmatpush.msra.mxu3 %v8421_v40  ;;  %8455 = vmatpush.msra.mxu0 %v8372_v46  ;;  %v8394_v40 = vld [vmem:[%s13517_s7 + $0x120] sm:$0xff]  ;;  %v8377_v46 = vld [vmem:[%s13517_s7 + $0x98] sm:$0xff] }
 0x313   : > { %8475 = vmatpush.msra.mxu1 %v8388_v47  ;;  %8495 = vmatpush.msra.mxu2 %v8404_v48  ;;  %v13555_v12 = vpop.f32.mrf.mxu2  ;;  %v7243_v18 = vpop.f32.mrf.mxu0  ;;  %v8334_v47 = vmul.f32 %v12568_v25, %v12945_v60  ;;  %v8335_v48 = vmul.f32 %v12570_v28, %v13088_v42  ;;  %v8360_v60 = vld [vmem:[%s13517_s7 + $0x10] sm:$0xff] }
 0x314   : > { %8515 = vmatpush.msra.mxu3 %v8420_v49  ;;  %8456 = vmatpush.msra.mxu0 %v8371_v50  ;;  %v13559_v15 = vpop.f32.mrf.mxu3  ;;  %v7256_v22 = vpop.f32.mrf.mxu1  ;;  %v12573_v49 = vld [vmem:[%s12794_s29 + $0x5] ss:$0 sm:$0xff]  ;;  %v8393_v50 = vld [vmem:[%s13517_s7 + $0x118] sm:$0xff]  ;;  %v8392_v42 = vld [vmem:[%s13517_s7 + $0x110] sm:$0xff] }
 0x315   : > { %8476 = vmatpush.msra.mxu1 %v8387_v51  ;;  %8496 = vmatpush.msra.mxu2 %v8403_v52  ;;  %v8409_v51 = vld [vmem:[%s13517_s7 + $0x198] sm:$0xff]  ;;  %v8336_v52 = vmul.f32 %v12572_v32, %v13228_v29  ;;  %v8375_v29 = vld [vmem:[%s13517_s7 + $0x88] sm:$0xff]  ;;  %v8434_v18 = vld [vmem:[%s13517_s7 + $0x260] sm:$0xff]  ;;  %v7242_v22 = vadd.f32 %v13539_v61, %v13502_v10 }
 0x316   : > { %8516 = vmatpush.msra.mxu3 %v8419_v53  ;;  %8457 = vmatpush.msra.mxu0 %v8370_v54  ;;  %v8337_v53 = vmul.f32 %v12574_v35, %v13396_v20  ;;  %v12575_v54 = vld [vmem:[%s12794_s29 + $0x7] ss:$0 sm:$0xff]  ;;  %v8346_v20 = vadd.f32 %v12569_v39, %v8334_v47  ;;  %v8429_v61 = vld [vmem:[%s13517_s7 + $0x238] sm:$0xff]  ;;  %v8427_v39 = vld [vmem:[%s13517_s7 + $0x228] sm:$0xff] }
 0x317   : > { %8477 = vmatpush.msra.mxu1 %v8386_v55  ;;  %8497 = vmatpush.msra.mxu2 %v8402_v56  ;;  %v8376_v55 = vld [vmem:[%s13517_s7 + $0x90] sm:$0xff]  ;;  %v7255_v32 = vadd.f32 %v13543_v0, %v7242_v22  ;;  %v8426_v0 = vld [vmem:[%s13517_s7 + $0x220] sm:$0xff] }
 0x318   : > { %8517 = vmatpush.msra.mxu3 %v8418_v57  ;;  %8458 = vmatpush.msra.mxu0 %v8369_v58  ;;  %v8408_v56 = vld [vmem:[%s13517_s7 + $0x190] sm:$0xff]  ;;  %v8359_v57 = vld [vmem:[%s13517_s7 + $0x8] sm:$0xff]  ;;  %v8347_v58 = vadd.f32 %v12571_v44, %v8335_v48 }
 0x319   : > { %8478 = vmatpush.msra.mxu1 %v8385_v59  ;;  %8498 = vmatpush.msra.mxu2 %v8401_v62  ;;  %v8391_v59 = vld [vmem:[%s13517_s7 + $0x108] sm:$0xff]  ;;  %v7268_v10 = vadd.f32 %v13555_v12, %v7255_v32  ;;  %v8424_v12 = vld [vmem:[%s13517_s7 + $0x210] sm:$0xff] }
 0x31a   : > { %8518 = vmatpush.msra.mxu3 %v8417_v63  ;;  %8459 = vmatpush.msra.mxu0 %v8368_v1  ;;  %v8407_v62 = vld [vmem:[%s13517_s7 + $0x188] sm:$0xff]  ;;  %v8348_v63 = vadd.f32 %v12573_v49, %v8336_v52  ;;  %v8349_v1 = vadd.f32 %v12575_v54, %v8337_v53  ;;  %v8452_v52 = vld [vmem:[%s13517_s7 + $0x2f0] sm:$0xff] }
 0x31b   : > { %8479 = vmatpush.msra.mxu1 %v8384_v2  ;;  %8499 = vmatpush.msra.mxu2 %v8400_v3  ;;  %v7269_v38 = vpop.f32.mrf.mxu2  ;;  %v8358_v2 = vld [vmem:[%s13517_s7] sm:$0xff] }
 0x31c   : > { %8519 = vmatpush.msra.mxu3 %v8416_v4  ;;  %8460 = vmatpush.msra.mxu0 %v8367_v5  ;;  %v7282_v43 = vpop.f32.mrf.mxu3  ;;  %v8374_v3 = vld [vmem:[%s13517_s7 + $0x80] sm:$0xff]  ;;  %v12576_v38 = vld [vmem:[%s12794_s29 + $0x8] ss:$0 sm:$0xff] }
 0x31d   : > { %8480 = vmatpush.msra.mxu1 %v8383_v6  ;;  %8500 = vmatpush.msra.mxu2 %v8399_v7  ;;  %v8390_v4 = vld [vmem:[%s13517_s7 + $0x100] sm:$0xff]  ;;  %v8352_v6 = vmax.f32 %v8346_v20, 0.0  ;;  %v8353_v7 = vmax.f32 %v8347_v58, 0.0  ;;  %v8425_v43 = vld [vmem:[%s13517_s7 + $0x218] sm:$0xff]  ;;  %v8447_v20 = vld [vmem:[%s13517_s7 + $0x2c8] sm:$0xff] }
 0x31e   : > { %8520 = vmatpush.msra.mxu3 %v8415_v8  ;;  %8461 = vmatpush.msra.mxu0 %v8366_v9  ;;  %v8406_v5 = vld [vmem:[%s13517_s7 + $0x180] sm:$0xff]  ;;  %v8354_v8 = vmax.f32 %v8348_v63, 0.0  ;;  %v8355_v9 = vmax.f32 %v8349_v1, 0.0  ;;  %v8445_v63 = vld [vmem:[%s13517_s7 + $0x2b8] sm:$0xff]  ;;  %v8444_v1 = vld [vmem:[%s13517_s7 + $0x2b0] sm:$0xff] }
 0x31f   : > { %8481 = vmatpush.msra.mxu1 %v8382_v11  ;;  %8501 = vmatpush.msra.mxu2 %v8398_v13  ;;  %v8437_v11 = vld [vmem:[%s13517_s7 + $0x278] sm:$0xff]  ;;  %v8436_v13 = vld [vmem:[%s13517_s7 + $0x270] sm:$0xff] }
 0x320   : > { %8521 = vmatpush.msra.mxu3 %v8414_v14  ;;  %8462 = vmatpush.msra.mxu0 %v8365_v16  ;;  %v8435_v14 = vld [vmem:[%s13517_s7 + $0x268] sm:$0xff] }
 0x321   : > { %8482 = vmatpush.msra.mxu1 %v8381_v17  ;;  %8502 = vmatpush.msra.mxu2 %v8397_v19 }
 0x322   : > { %8522 = vmatpush.msra.mxu3 %v8413_v21  ;;  %8463 = vmatpush.msra.mxu0 %v8364_v23  ;;  %v8433_v21 = vld [vmem:[%s13517_s7 + $0x258] sm:$0xff]  ;;  %v8432_v23 = vld [vmem:[%s13517_s7 + $0x250] sm:$0xff] }
 0x323   : > { %8483 = vmatpush.msra.mxu1 %v8380_v24  ;;  %8503 = vmatpush.msra.mxu2 %v8396_v26 }
 0x324   : > { %8523 = vmatpush.msra.mxu3 %v8412_v27  ;;  %8464 = vmatpush.msra.mxu0 %v8363_v30  ;;  %v8431_v27 = vld [vmem:[%s13517_s7 + $0x248] sm:$0xff] }
 0x325   : > { %8484 = vmatpush.msra.mxu1 %v8379_v31  ;;  %8504 = vmatpush.msra.mxu2 %v8395_v33  ;;  %v8430_v33 = vld [vmem:[%s13517_s7 + $0x240] sm:$0xff] }
 0x326   : > { %8524 = vmatpush.msra.mxu3 %v8411_v34  ;;  %8465 = vmatpush.msra.mxu0 %v8362_v36  ;;  %v8428_v34 = vld [vmem:[%s13517_s7 + $0x230] sm:$0xff] }
 0x327   : > { %8485 = vmatpush.msra.mxu1 %v8378_v37  ;;  %8505 = vmatpush.msra.mxu2 %v8394_v40  ;;  %v7281_v37 = vadd.f32 %v13559_v15, %v7268_v10  ;;  %v12578_v10 = vld [vmem:[%s12794_s29 + $0xa] ss:$0 sm:$0xff] }
 0x328   : > { %8525 = vmatpush.msra.mxu3 %v8410_v41  ;;  %8466 = vmatpush.msra.mxu0 %v8361_v45  ;;  %v12577_v41 = vld [vmem:[%s12794_s29 + $0x9] ss:$0 sm:$0xff] }
 0x329   : > { %8486 = vmatpush.msra.mxu1 %v8377_v46  ;;  %8506 = vmatpush.msra.mxu2 %v8393_v50  ;;  %v8338_v40 = vmul.f32 %v12576_v38, %v7281_v37  ;;  %v8423_v45 = vld [vmem:[%s13517_s7 + $0x208] sm:$0xff]  ;;  %v8422_v46 = vld [vmem:[%s13517_s7 + $0x200] sm:$0xff] }
 0x32a   : > { %8526 = vmatpush.msra.mxu3 %v8409_v51  ;;  %8467 = vmatpush.msra.mxu0 %v8360_v60  ;;  %v8453_v51 = vld [vmem:[%s13517_s7 + $0x2f8] sm:$0xff]  ;;  %v8451_v60 = vld [vmem:[%s13517_s7 + $0x2e8] sm:$0xff] }
 0x32b   : > { %8487 = vmatpush.msra.mxu1 %v8376_v55  ;;  %8507 = vmatpush.msra.mxu2 %v8392_v42  ;;  %v8117_v16 = vpop.f32.mrf.mxu0  ;;  %v8350_v44 = vadd.f32 %v12577_v41, %v8338_v40  ;;  %v8450_v55 = vld [vmem:[%s13517_s7 + $0x2e0] sm:$0xff] }
 0x32c   : > { %8527 = vmatpush.msra.mxu3 %v8408_v56  ;;  %8468 = vmatpush.msra.mxu0 %v8359_v57  ;;  %v8130_v17 = vpop.f32.mrf.mxu1  ;;  %v8449_v56 = vld [vmem:[%s13517_s7 + $0x2d8] sm:$0xff] }
 0x32d   : > { %8488 = vmatpush.msra.mxu1 %v8375_v29  ;;  %8508 = vmatpush.msra.mxu2 %v8391_v59  ;;  %v8131_v19 = vadd.f32 %v8130_v17, %v8117_v16  ;;  %v8356_v15 = vmax.f32 %v8350_v44, 0.0  ;;  %v8448_v29 = vld [vmem:[%s13517_s7 + $0x2d0] sm:$0xff]  ;;  %v8439_v17 = vld [vmem:[%s13517_s7 + $0x288] sm:$0xff] }
 0x32e   : > { %8528 = vmatpush.msra.mxu3 %v8407_v62  ;;  %8469 = vmatpush.msra.mxu0 %v8358_v2  ;;  %v8446_v62 = vld [vmem:[%s13517_s7 + $0x2c0] sm:$0xff]  ;;  %v8440_v16 = vld [vmem:[%s13517_s7 + $0x290] sm:$0xff] }
 0x32f   : > { %8489 = vmatpush.msra.mxu1 %v8374_v3  ;;  %8509 = vmatpush.msra.mxu2 %v8390_v4 }
 0x330   : > { %8529 = vmatpush.msra.mxu3 %v8406_v5  ;;  %8470 = vmatmul.f32.vlgmr.msra.gmra.mxu0 %v8352_v6  ;;  %v8443_v6 = vld [vmem:[%s13517_s7 + $0x2a8] sm:$0xff] }
 0x331   : > { %8490 = vmatmul.f32.vlgmr.msra.gmra.mxu1 %v8353_v7  ;;  %8510 = vmatmul.f32.vlgmr.msra.gmra.mxu2 %v8354_v8 }
 0x332   : > { %8530 = vmatmul.f32.vlgmr.msra.gmra.mxu3 %v8355_v9  ;;  %8534 = vmatpush.msrb.mxu0 %v8437_v11  ;;  %v8442_v9 = vld [vmem:[%s13517_s7 + $0x2a0] sm:$0xff]  ;;  %v8441_v11 = vld [vmem:[%s13517_s7 + $0x298] sm:$0xff] }
 0x333   : > { %v8143_v24 = vpop.f32.mrf.mxu2  ;;  %v8119_v28 = vpop.f32.mrf.mxu0  ;;  %8554 = vmatpush.msrb.mxu1 %v8453_v51 }
 0x334   : > { %8535 = vmatpush.msrb.mxu0 %v8436_v13  ;;  %v8144_v25 = vadd.f32 %v8143_v24, %v8131_v19  ;;  %v8156_v26 = vpop.f32.mrf.mxu3  ;;  %v8132_v31 = vpop.f32.mrf.mxu1  ;;  %v8438_v19 = vld [vmem:[%s13517_s7 + $0x280] sm:$0xff] }
 0x335   : > { %8555 = vmatpush.msrb.mxu1 %v8452_v52 }
 0x336   : > { %8536 = vmatpush.msrb.mxu0 %v8435_v14  ;;  %v8157_v30 = vadd.f32 %v8156_v26, %v8144_v25 }
 0x337   : > { %8556 = vmatpush.msrb.mxu1 %v8451_v60 }
 0x338   : > { %8537 = vmatpush.msrb.mxu0 %v8434_v18 }
 0x339   : > { %8557 = vmatpush.msrb.mxu1 %v8450_v55 }
 0x33a   : > { %8538 = vmatpush.msrb.mxu0 %v8433_v21 }
 0x33b   : > { %v8145_v35 = vpop.f32.mrf.mxu2  ;;  %8558 = vmatpush.msrb.mxu1 %v8449_v56 }
 0x33c   : > { %8539 = vmatpush.msrb.mxu0 %v8432_v23  ;;  %v8158_v36 = vpop.f32.mrf.mxu3 }
 0x33d   : > { %8559 = vmatpush.msrb.mxu1 %v8448_v29  ;;  %v12579_v36 = vld [vmem:[%s12794_s29 + $0xb] ss:$0 sm:$0xff] }
 0x33e   : > { %8540 = vmatpush.msrb.mxu0 %v8431_v27 }
 0x33f   : > { %8560 = vmatpush.msrb.mxu1 %v8447_v20 }
 0x340   : > { %8541 = vmatpush.msrb.mxu0 %v8430_v33 }
 0x341   : > { %8561 = vmatpush.msrb.mxu1 %v8446_v62 }
 0x342   : > { %8542 = vmatpush.msrb.mxu0 %v8429_v61 }
 0x343   : > { %8562 = vmatpush.msrb.mxu1 %v8445_v63 }
 0x344   : > { %8543 = vmatpush.msrb.mxu0 %v8428_v34 }
 0x345   : > { %8563 = vmatpush.msrb.mxu1 %v8444_v1 }
 0x346   : > { %8544 = vmatpush.msrb.mxu0 %v8427_v39 }
 0x347   : > { %8564 = vmatpush.msrb.mxu1 %v8443_v6 }
 0x348   : > { %8545 = vmatpush.msrb.mxu0 %v8426_v0 }
 0x349   : > { %8565 = vmatpush.msrb.mxu1 %v8442_v9 }
 0x34a   : > { %8546 = vmatpush.msrb.mxu0 %v8425_v43 }
 0x34b   : > { %v8169_v47 = vpop.f32.mrf.mxu0  ;;  %8566 = vmatpush.msrb.mxu1 %v8441_v11 }
 0x34c   : > { %8547 = vmatpush.msrb.mxu0 %v8424_v12  ;;  %v8182_v48 = vpop.f32.mrf.mxu1  ;;  %v8170_v2 = vadd.f32 %v8169_v47, %v8157_v30 }
 0x34d   : > { %8567 = vmatpush.msrb.mxu1 %v8440_v16 }
 0x34e   : > { %8548 = vmatpush.msrb.mxu0 %v8423_v45  ;;  %v8183_v8 = vadd.f32 %v8182_v48, %v8170_v2 }
 0x34f   : > { %8568 = vmatpush.msrb.mxu1 %v8439_v17 }
 0x350   : > { %8549 = vmatpush.msrb.mxu0 %v8422_v46 }
 0x351   : > { %8550 = vmatmul.f32.vlgmr.msrb.gmra.mxu0 %v8356_v15  ;;  %8569 = vmatpush.msrb.mxu1 %v8438_v19 }
 0x353   : > { %v8195_v49 = vpop.f32.mrf.mxu2  ;;  %v8171_v53 = vpop.f32.mrf.mxu0 }
 0x354   : > { %v8208_v50 = vpop.f32.mrf.mxu3  ;;  %v8184_v54 = vpop.f32.mrf.mxu1  ;;  %v8196_v13 = vadd.f32 %v8195_v49, %v8183_v8 }
 0x356   : > { %v8209_v21 = vadd.f32 %v8208_v50, %v8196_v13 }
 0x35b   : > { %v8197_v42 = vpop.f32.mrf.mxu2 }
 0x35c   : > { %v8210_v57 = vpop.f32.mrf.mxu3 }
 0x36b   : > { %v8221_v58 = vpop.f32.mrf.mxu0 }
 0x36c   : > { %v8234_v59 = vpop.f32.mrf.mxu1  ;;  %v8222_v22 = vadd.f32 %v8221_v58, %v8209_v21 }
 0x36e   : > { %v8235_v23 = vadd.f32 %v8234_v59, %v8222_v22 }
 0x373   : > { %v8247_v3 = vpop.f32.mrf.mxu2  ;;  %v8223_v5 = vpop.f32.mrf.mxu0 }
 0x374   : > { %v8260_v4 = vpop.f32.mrf.mxu3  ;;  %v8236_v7 = vpop.f32.mrf.mxu1  ;;  %v8248_v24 = vadd.f32 %v8247_v3, %v8235_v23 }
 0x376   : > { %v8261_v25 = vadd.f32 %v8260_v4, %v8248_v24 }
 0x37b   : > { %v8249_v14 = vpop.f32.mrf.mxu2 }
 0x37c   : > { %v8262_v18 = vpop.f32.mrf.mxu3 }
 0x38b   : > { %v8273_v26 = vpop.f32.mrf.mxu0 }
 0x38c   : > { %v8286_v27 = vpop.f32.mrf.mxu1  ;;  %v8274_v28 = vadd.f32 %v8273_v26, %v8261_v25 }
 0x38e   : > { %v8287_v30 = vadd.f32 %v8286_v27, %v8274_v28 }
 0x393   : > { %v8299_v31 = vpop.f32.mrf.mxu2  ;;  %v8275_v61 = vpop.f32.mrf.mxu0 }
 0x394   : > { %v8312_v32 = vpop.f32.mrf.mxu3  ;;  %v8300_v33 = vadd.f32 %v8299_v31, %v8287_v30  ;;  %v8288_v34 = vpop.f32.mrf.mxu1 }
 0x396   : > { %v8313_v35 = vadd.f32 %v8312_v32, %v8300_v33 }
 0x398   : > { %v8339_v37 = vmul.f32 %v12578_v10, %v8313_v35 }
 0x39a   : > { %v8351_v38 = vadd.f32 %v12579_v36, %v8339_v37 }
 0x39b   : > { %v8301_v39 = vpop.f32.mrf.mxu2 }
 0x39c   : > { %v8314_v0 = vpop.f32.mrf.mxu3  ;;  %v8357_v40 = vmax.f32 %v8351_v38, 0.0 }
 0x39e   : > { %8570 = vmatmul.f32.vlgmr.msrb.gmra.mxu1 %v8357_v40 }
 0x3ad   : > { %v8471_v46 = vpop.f32.mrf.mxu0 }
 0x3ae   : > { %v8491_v41 = vpop.f32.mrf.mxu1 }
 0x3af   : > { %8575 = vrot.lane.b32.xlu0 %v8491_v41, %s12588_s8 }
 0x3b4   : > { %v8511_v43 = vpop.f32.mrf.mxu2 }
 0x3b5   : > { %8579 = vrot.lane.b32.xlu1 %v8511_v43, %s12589_s9  ;;  %v8531_v12 = vpop.f32.mrf.mxu3 }
 0x3bd   : > { %8583 = vrot.lane.b32.xlu1 %v8531_v12, %s12590_s10 }
 0x3ce   : > { %v8551_v47 = vpop.f32.mrf.mxu0 }
 0x41b   : > { %v8571_v44 = vpop.f32.mrf.mxu1 }
 0x41c   : > { %8587 = vrot.lane.b32.xlu0 %v8571_v44, %s12588_s8 }
 0x421   : > { %v8576_v15 = vpop.permute.xlu0 %8575 }
 0x422   : > { %v8591_v50 = vsel %vm8590_vm0, %v8471_v46, %v8576_v15 }
 0x427   : > { %v8580_v45 = vpop.permute.xlu1 %8579 }
 0x428   : > { %v8593_v52 = vsel %vm8592_vm1, %v8591_v50, %v8580_v45 }
 0x42f   : > { %v8584_v48 = vpop.permute.xlu1 %8583 }
 0x430   : > { %v8595_v54 = vsel %vm8594_vm4, %v8593_v52, %v8584_v48 }
 0x48e   : > { %v8588_v49 = vpop.permute.xlu0 %8587 }
 0x48f   : > { %v8596_v51 = vsel %vm8590_vm0, %v8551_v47, %v8588_v49 }
 0x490   : > { %v8599_v53 = vrot.slane %v8596_v51, 6 }
 0x492   : > { %v8601_v60 = vsel %vm8600_vm2, %v8595_v54, %v8599_v53 }
 0x493   : > { %8605 = vst.msk [vmem:[%s274_s14] sm:$0xf] %vm8604_vm5, %v8601_v60 }
 0x494 PF: > { %s14_s15 = sadd.s32 1, %s12586_s15  }
 0x495   : > { %p11_p5 = scmp.ge.s32.totalorder %s14_s15, 4  }
 0x497   :  { %13 = sbr.rel (!%p11_p5) target bundleno = 1 (0x1), region = 76 }

</bundles_post_ra>
